<compile_context>
chip_gen: v5e
topology: v5e:2x2
jax: 0.10.0
libtpu: 0.0.40
codegen_flags: <defaults>
</compile_context>

<pallas_src>
import math
import jax
import jax.numpy as jnp
from jax import lax
from jax.experimental import pallas as pl
from jax.experimental.pallas import tpu as pltpu

# ---------------- static config ----------------
BATCH = 2
SEQ = 16            # decoder / symbol sequence length
CTX_SEQ = 16        # encoder (context) sequence length
D_MODEL = 64
N_HEADS_SA = 2
N_HEADS_RA = 2
N_HEADS_CROSS = 4
DFF = 128

TOTAL_HEADS = N_HEADS_SA + N_HEADS_RA       # 4 dual-attn heads
HEAD_DIM = D_MODEL // TOTAL_HEADS           # 16
KEY_DIM = HEAD_DIM                          # default key_dim
N_RELATIONS = N_HEADS_RA                    # default n_relations = n_heads_ra
REL_PROJ_DIM = KEY_DIM                      # default rel_proj_dim
CROSS_HEAD_DIM = D_MODEL // N_HEADS_CROSS   # 16
SA_DIM = N_HEADS_SA * HEAD_DIM              # 32
RA_DIM = N_HEADS_RA * HEAD_DIM              # 32

N_GROUPS = TOTAL_HEADS + N_RELATIONS        # 6 score groups (sa0,sa1,ra0,ra1,rel0,rel1)
BS = BATCH * SEQ                            # 32 query rows (batch folded)
BSC = BATCH * CTX_SEQ                       # 32 context rows
PROJ_W = 128                                # lane width of all projection slabs

EPS = 1e-5
NEG_INF = -1e30
SCALE = 1.0 / math.sqrt(HEAD_DIM)           # folded into q-projection weights wrapper-side

assert TOTAL_HEADS == N_HEADS_CROSS         # lets the dual/cross stacks share select masks
assert N_GROUPS * KEY_DIM <= PROJ_W

# -------- packed-operand row offsets (shared by wrapper packing and kernel) --------
# acts slab (width D_MODEL): x | symbols | context | LN gammas/betas | ff_b2
ROW_X, ROW_SYM, ROW_CTX = 0, BS, BS + BS
VEC_BASE = ROW_CTX + BSC                    # 96
ROW_G1, ROW_B1 = VEC_BASE + 0, VEC_BASE + 1
ROW_G2, ROW_B2 = VEC_BASE + 2, VEC_BASE + 3
ROW_G3, ROW_B3 = VEC_BASE + 4, VEC_BASE + 5
ROW_FB2 = VEC_BASE + 6
ACT_ROWS = ((VEC_BASE + 7 + 7) // 8) * 8    # 104

# in-dim-64 weight slab (width 128): 7 row blocks of 64
R_WA, R_WB, R_WVA, R_WVS, R_WCQ, R_WCKV, R_FF1 = [i * D_MODEL for i in range(7)]
WIN_ROWS = 7 * D_MODEL                      # 448

# output-projection slab (width 64): 3 row blocks of 128
R_WO, R_WCO, R_FF2 = 0, PROJ_W, 2 * PROJ_W
WOUT_ROWS = 3 * PROJ_W                      # 384

# constants slab (width 128): QSEL | OM | OMC | wr rows | ff_b1
R_QSEL = 0                                  # (N_GROUPS*BS, 128)
R_OM = R_QSEL + N_GROUPS * BS               # 192
R_OMC = R_OM + TOTAL_HEADS * BS             # 320
R_WR = R_OMC + TOTAL_HEADS * BS             # 448
R_FB1 = R_WR + N_HEADS_RA * N_RELATIONS     # 452
CONST_ROWS = ((R_FB1 + 1 + 7) // 8) * 8     # 456

# additive attention masks (width BS=32): dual (causal, block-diag) | cross (block-diag)
R_DM = 0
R_CM = TOTAL_HEADS * BS                     # 128
MASK_ROWS = 2 * TOTAL_HEADS * BS            # 256


# ---------------- the fused Pallas kernel (whole batch, single invocation) ----------------
def dual_attn_decoder_kernel(acts_ref, w_in_ref, w_out_ref, consts_ref, masks_ref, out_ref):
    f32 = jnp.float32
    CONTRACT_LAST = (((1,), (1,)), ((), ()))   # A (m,k) x B (n,k) -> (m,n), no transposes

    def mm(a, b):
        return jnp.dot(a, b, preferred_element_type=f32)

    def mm_t(a, b):
        return lax.dot_general(a, b, CONTRACT_LAST, preferred_element_type=f32)

    def layernorm(h, g_row, b_row):
        g = acts_ref[g_row:g_row + 1, :]
        b = acts_ref[b_row:b_row + 1, :]
        mu = jnp.mean(h, axis=-1, keepdims=True)
        hc = h - mu
        var = jnp.mean(hc * hc, axis=-1, keepdims=True)
        return hc * lax.rsqrt(var + EPS) * g + b

    def softmax_rows(s):
        m = jnp.max(s, axis=-1, keepdims=True)
        e = jnp.exp(s - m)
        return e / jnp.sum(e, axis=-1, keepdims=True)   # exact divide (correctness fix)

    x = acts_ref[ROW_X:ROW_X + BS, :]          # (32, 64)
    sym = acts_ref[ROW_SYM:ROW_SYM + BS, :]    # (32, 64)
    ctx = acts_ref[ROW_CTX:ROW_CTX + BSC, :]   # (32, 64)

    qsel = consts_ref[R_QSEL:R_QSEL + N_GROUPS * BS, :]       # (192, 128) group lane select
    om = consts_ref[R_OM:R_OM + TOTAL_HEADS * BS, :]          # (128, 128) head-out / cross-q select
    omc = consts_ref[R_OMC:R_OMC + TOTAL_HEADS * BS, :]       # (128, 128) cross head-out select
    dmask = masks_ref[R_DM:R_DM + TOTAL_HEADS * BS, :]        # (128, 32) additive causal+batch
    cmask = masks_ref[R_CM:R_CM + TOTAL_HEADS * BS, :]        # (128, 32) additive batch-block

    # ============ sub-block 1: dual attention (pre-norm) ============
    h1 = layernorm(x, ROW_G1, ROW_B1)
    pa = mm(h1, w_in_ref[R_WA:R_WA + D_MODEL, :])             # (32,128) scaled q_sa|q_ra|q_rel|0
    pb = mm(h1, w_in_ref[R_WB:R_WB + D_MODEL, :])             # (32,128) k_sa|k_ra|k_rel|0
    pv = (mm(h1, w_in_ref[R_WVA:R_WVA + D_MODEL, :])          # (32,128) v_sa | sv(symbols) | 0
          + mm(sym, w_in_ref[R_WVS:R_WVS + D_MODEL, :]))

    # all 6 score groups in one matmul: sublane-stacked, lane-masked queries vs full key slab
    q_stack = jnp.concatenate([pa] * N_GROUPS, axis=0) * qsel     # (192,128)
    s_stack = mm_t(q_stack, pb)                                   # (192,32)

    a = softmax_rows(s_stack[0:TOTAL_HEADS * BS, :] + dmask)      # (128,32): sa0,sa1,ra0,ra1
    rel = s_stack[TOTAL_HEADS * BS:N_GROUPS * BS, :]              # (64,32): rel0, rel1 (no softmax)

    # fused A@V for all 4 heads, then block-select + fold sublane blocks -> concatenated heads
    z = mm(a, pv) * om                                            # (128,128)
    o = (z[0:BS, :] + z[BS:2 * BS, :] + z[2 * BS:3 * BS, :] + z[3 * BS:4 * BS, :])   # (32,128)

    # relational term: srel[(h,r), i] = sum_j A_ra_h[i,j] * rel_r[i,j]; VPU-accumulated
    a_ra0 = a[N_HEADS_SA * BS:(N_HEADS_SA + 1) * BS, :]
    a_ra1 = a[(N_HEADS_SA + 1) * BS:(N_HEADS_SA + 2) * BS, :]
    prod = (jnp.concatenate([a_ra0, a_ra0, a_ra1, a_ra1], axis=0)
            * jnp.concatenate([rel, rel], axis=0))                # (128,32)
    srel = jnp.sum(prod, axis=-1, keepdims=True)                  # (128,1)
    for pidx in range(N_HEADS_RA * N_RELATIONS):
        o = o + (srel[pidx * BS:(pidx + 1) * BS, :]
                 * consts_ref[R_WR + pidx:R_WR + pidx + 1, :])    # (32,1)*(1,128)

    x = x + mm(o, w_out_ref[R_WO:R_WO + PROJ_W, :])               # blockdiag(sa_wo, ra_wo), padded
    # TODO(synk): dropout_rate=0.0 -> dropout is the identity here (eval semantics).

    # ============ sub-block 2: cross attention (non-causal, per-batch blocks) ============
    h2 = layernorm(x, ROW_G2, ROW_B2)
    qc = mm(h2, w_in_ref[R_WCQ:R_WCQ + D_MODEL, :])               # (32,128) scaled q at lanes 0:64
    ckv = mm(ctx, w_in_ref[R_WCKV:R_WCKV + D_MODEL, :])           # (32,128) k 0:64 | v 64:128

    qcs = jnp.concatenate([qc] * N_HEADS_CROSS, axis=0) * om      # (128,128)
    sc = mm_t(qcs, ckv) + cmask                                   # (128,32)
    ac = softmax_rows(sc)
    zc = mm(ac, ckv) * omc                                        # (128,128)
    oc = (zc[0:BS, :] + zc[BS:2 * BS, :] + zc[2 * BS:3 * BS, :] + zc[3 * BS:4 * BS, :])
    x = x + mm(oc, w_out_ref[R_WCO:R_WCO + PROJ_W, :])            # ca_wo (padded rows 64:128)

    # ============ sub-block 3: feed-forward ============
    h3 = layernorm(x, ROW_G3, ROW_B3)
    ff = mm(h3, w_in_ref[R_FF1:R_FF1 + D_MODEL, :]) + consts_ref[R_FB1:R_FB1 + 1, :]
    ff = jnp.maximum(ff, 0.0)                                     # activation='relu'
    out_ref[...] = x + mm(ff, w_out_ref[R_FF2:R_FF2 + PROJ_W, :]) + acts_ref[ROW_FB2:ROW_FB2 + 1, :]


# ---------------- wrapper-side packing (activations + 22 weights -> 5 operands) ----------------
def pack_inputs(x, context, symbols, p):
    f32 = jnp.float32
    B, S, D = x.shape

    # --- activations + LN vectors (width 64) ---
    acts = jnp.zeros((ACT_ROWS, D_MODEL), f32)
    acts = acts.at[ROW_X:ROW_X + BS].set(x.reshape(B * S, D))
    acts = acts.at[ROW_SYM:ROW_SYM + BS].set(symbols.reshape(B * S, D))
    acts = acts.at[ROW_CTX:ROW_CTX + BSC].set(context.reshape(B * CTX_SEQ, D))
    for row, name in [(ROW_G1, 'g1'), (ROW_B1, 'b1'), (ROW_G2, 'g2'), (ROW_B2, 'b2'),
                      (ROW_G3, 'g3'), (ROW_B3, 'b3'), (ROW_FB2, 'ff_b2')]:
        acts = acts.at[row].set(p[name])

    # --- in-dim-64 weights (width 128), score scale folded into q projections ---
    z32 = jnp.zeros((D_MODEL, 32), f32)
    z64 = jnp.zeros((D_MODEL, 64), f32)
    wa = jnp.concatenate([p['sa_wq'] * SCALE, p['ra_wqa'] * SCALE, p['ra_wqr'], z32], axis=1)
    wb = jnp.concatenate([p['sa_wk'], p['ra_wka'], p['ra_wkr'], z32], axis=1)
    wva = jnp.concatenate([p['sa_wv'], z32, z64], axis=1)
    wvs = jnp.concatenate([z32, p['ra_wv'], z64], axis=1)
    wcq = jnp.concatenate([p['ca_wq'] * (1.0 / math.sqrt(CROSS_HEAD_DIM)), z64], axis=1)
    wckv = jnp.concatenate([p['ca_wk'], p['ca_wv']], axis=1)
    w_in = jnp.concatenate([wa, wb, wva, wvs, wcq, wckv, p['ff_w1']], axis=0)
    assert w_in.shape == (WIN_ROWS, PROJ_W)

    # --- output projections (in-dim 128, width 64) ---
    wo_dual = jnp.zeros((PROJ_W, D_MODEL), f32)
    wo_dual = wo_dual.at[0:SA_DIM, 0:SA_DIM].set(p['sa_wo'])
    wo_dual = wo_dual.at[SA_DIM:SA_DIM + RA_DIM, SA_DIM:SA_DIM + RA_DIM].set(p['ra_wo'])
    wco = jnp.zeros((PROJ_W, D_MODEL), f32).at[D_MODEL:, :].set(p['ca_wo'])
    w_out = jnp.concatenate([wo_dual, wco, p['ff_w2']], axis=0)
    assert w_out.shape == (WOUT_ROWS, D_MODEL)

    # --- select-mask / wr / ff_b1 constants (width 128) ---
    lane_grp = jnp.arange(PROJ_W)[None, :] // KEY_DIM
    grp_rows = jnp.arange(N_GROUPS * BS)[:, None] // BS
    head_rows = jnp.arange(TOTAL_HEADS * BS)[:, None] // BS
    qsel = (lane_grp == grp_rows).astype(f32)                       # group g -> lanes g*16
    omsk = (lane_grp == head_rows).astype(f32)                      # head h -> lanes h*16
    omsk_c = (lane_grp == head_rows + TOTAL_HEADS).astype(f32)      # head h -> lanes 64 + h*16
    wr_rows = jnp.zeros((N_HEADS_RA * N_RELATIONS, PROJ_W), f32)
    for h in range(N_HEADS_RA):
        for r in range(N_RELATIONS):
            base = SA_DIM + h * HEAD_DIM
            wr_rows = wr_rows.at[h * N_RELATIONS + r, base:base + HEAD_DIM].set(p['ra_wr'][h, r])
    fb1 = jnp.zeros((1, PROJ_W), f32).at[0, :DFF].set(p['ff_b1'])
    pad = jnp.zeros((CONST_ROWS - (R_FB1 + 1), PROJ_W), f32)
    consts = jnp.concatenate([qsel, omsk, omsk_c, wr_rows, fb1, pad], axis=0)
    assert consts.shape == (CONST_ROWS, PROJ_W)

    # --- additive attention masks (width 32), tiled per head block ---
    qi = jnp.arange(BS)
    kj = jnp.arange(BS)
    kc = jnp.arange(BSC)
    same_b = (qi[:, None] // SEQ) == (kj[None, :] // SEQ)
    causal = (qi[:, None] % SEQ) >= (kj[None, :] % SEQ)
    dmask32 = jnp.where(same_b & causal, 0.0, NEG_INF).astype(f32)
    same_c = (qi[:, None] // SEQ) == (kc[None, :] // CTX_SEQ)
    cmask32 = jnp.where(same_c, 0.0, NEG_INF).astype(f32)
    masks = jnp.concatenate([jnp.tile(dmask32, (TOTAL_HEADS, 1)),
                             jnp.tile(cmask32, (TOTAL_HEADS, 1))], axis=0)
    assert masks.shape == (MASK_ROWS, BS)

    return acts, w_in, w_out, consts, masks


def run_block(x, context, symbols, params):
    B, S, D = x.shape
    operands = pack_inputs(x, context, symbols, params)

    vmem = pltpu.MemorySpace.VMEM
    out = pl.pallas_call(
        dual_attn_decoder_kernel,
        out_shape=jax.ShapeDtypeStruct((B * S, D), jnp.float32),
        in_specs=[pl.BlockSpec(memory_space=vmem) for _ in range(len(operands))],
        out_specs=pl.BlockSpec(memory_space=vmem),
    )(*operands)
    return out.reshape(B, S, D)


# ---------------- deterministic parameter init (synthetic, not a checkpoint) ----------------
def init_params(key):
    keys = iter(jax.random.split(key, 24))

    def w(shape, fan_in):
        return jax.random.normal(next(keys), shape, jnp.float32) * (1.0 / math.sqrt(fan_in))

    D = D_MODEL
    return {
        'g1': jnp.ones((D,), jnp.float32), 'b1': jnp.zeros((D,), jnp.float32),
        'g2': jnp.ones((D,), jnp.float32), 'b2': jnp.zeros((D,), jnp.float32),
        'g3': jnp.ones((D,), jnp.float32), 'b3': jnp.zeros((D,), jnp.float32),
        # self-attention (sensory) heads
        'sa_wq': w((D, N_HEADS_SA * KEY_DIM), D),
        'sa_wk': w((D, N_HEADS_SA * KEY_DIM), D),
        'sa_wv': w((D, SA_DIM), D),
        'sa_wo': w((SA_DIM, SA_DIM), SA_DIM),
        # relational attention heads
        'ra_wqa': w((D, N_HEADS_RA * KEY_DIM), D),
        'ra_wka': w((D, N_HEADS_RA * KEY_DIM), D),
        'ra_wqr': w((D, N_RELATIONS * REL_PROJ_DIM), D),
        'ra_wkr': w((D, N_RELATIONS * REL_PROJ_DIM), D),
        'ra_wv': w((D, RA_DIM), D),
        'ra_wr': w((N_HEADS_RA, N_RELATIONS, HEAD_DIM), N_RELATIONS),
        'ra_wo': w((RA_DIM, RA_DIM), RA_DIM),
        # cross-attention
        'ca_wq': w((D, D), D), 'ca_wk': w((D, D), D),
        'ca_wv': w((D, D), D), 'ca_wo': w((D, D), D),
        # feed-forward (bias=True)
        'ff_w1': w((D, DFF), D), 'ff_b1': w((DFF,), DFF),
        'ff_w2': w((DFF, D), DFF), 'ff_b2': w((D,), D),
    }


# ---------------- pure-JAX reference (vectorized; correctness check) ----------------
def reference_forward(x, context, symbols, p):
    def ln(h, g, b):
        mu = jnp.mean(h, axis=-1, keepdims=True)
        var = jnp.mean((h - mu) ** 2, axis=-1, keepdims=True)
        return (h - mu) * lax.rsqrt(var + EPS) * g + b

    B, S, D = x.shape
    i = lax.broadcasted_iota(jnp.int32, (S, S), 0)
    j = lax.broadcasted_iota(jnp.int32, (S, S), 1)
    causal = (j <= i)[None, None]

    def split(t, nh, hd):
        return t.reshape(t.shape[0], t.shape[1], nh, hd)

    h = ln(x, p['g1'], p['b1'])
    # self attention
    q = split(h @ p['sa_wq'], N_HEADS_SA, KEY_DIM)
    k = split(h @ p['sa_wk'], N_HEADS_SA, KEY_DIM)
    v = split(h @ p['sa_wv'], N_HEADS_SA, HEAD_DIM)
    sc = jnp.einsum('bihd,bjhd->bhij', q, k) / math.sqrt(HEAD_DIM)
    sc = jnp.where(causal, sc, NEG_INF)
    a = jax.nn.softmax(sc, axis=-1)
    sa = jnp.einsum('bhij,bjhd->bihd', a, v).reshape(B, S, -1) @ p['sa_wo']
    # relational attention
    qa = split(h @ p['ra_wqa'], N_HEADS_RA, KEY_DIM)
    ka = split(h @ p['ra_wka'], N_HEADS_RA, KEY_DIM)
    sc = jnp.einsum('bihd,bjhd->bhij', qa, ka) / math.sqrt(HEAD_DIM)
    sc = jnp.where(causal, sc, NEG_INF)
    al = jax.nn.softmax(sc, axis=-1)
    qr = split(h @ p['ra_wqr'], N_RELATIONS, REL_PROJ_DIM)
    kr = split(h @ p['ra_wkr'], N_RELATIONS, REL_PROJ_DIM)
    rel = jnp.einsum('bird,bjrd->bijr', qr, kr)
    sv = split(symbols @ p['ra_wv'], N_HEADS_RA, HEAD_DIM)
    ra = (jnp.einsum('bhij,bjhd->bihd', al, sv)
          + jnp.einsum('bhij,bijr,hrd->bihd', al, rel, p['ra_wr']))
    ra = ra.reshape(B, S, -1) @ p['ra_wo']
    x = x + jnp.concatenate([sa, ra], axis=-1)
    # cross attention
    h2 = ln(x, p['g2'], p['b2'])
    qc = split(h2 @ p['ca_wq'], N_HEADS_CROSS, CROSS_HEAD_DIM)
    kc = split(context @ p['ca_wk'], N_HEADS_CROSS, CROSS_HEAD_DIM)
    vc = split(context @ p['ca_wv'], N_HEADS_CROSS, CROSS_HEAD_DIM)
    sc = jnp.einsum('bihd,bjhd->bhij', qc, kc) / math.sqrt(CROSS_HEAD_DIM)
    ac = jax.nn.softmax(sc, axis=-1)
    co = jnp.einsum('bhij,bjhd->bihd', ac, vc).reshape(B, S, -1) @ p['ca_wo']
    x = x + co
    # feed-forward
    h3 = ln(x, p['g3'], p['b3'])
    ff = jnp.maximum(h3 @ p['ff_w1'] + p['ff_b1'], 0.0) @ p['ff_w2'] + p['ff_b2']
    return x + ff


if __name__ == "__main__":
    key = jax.random.PRNGKey(0)
    kx, kc, ks, kp = jax.random.split(key, 4)
    x = jax.random.normal(kx, (BATCH, SEQ, D_MODEL), jnp.float32)
    context = jax.random.normal(kc, (BATCH, CTX_SEQ, D_MODEL), jnp.float32)
    symbols = jax.random.normal(ks, (BATCH, SEQ, D_MODEL), jnp.float32)
    params = init_params(kp)

    out = jax.block_until_ready(run_block(x, context, symbols, params))

    assert out.shape == (BATCH, SEQ, D_MODEL)
    assert bool(jnp.all(jnp.isfinite(out)))

    ref = reference_forward(x, context, symbols, params)
    err = float(jnp.max(jnp.abs(out - ref)))
    if err > 2e-3:
        raise AssertionError(f"Pallas kernel mismatch vs JAX reference: max abs err = {err}")

    print("KERNEL_OK")
</pallas_src>

<mosaic_0001>
module attributes {stable_mosaic.version = 11 : i64} {
  func.func @dual_attn_decoder_kernel(%arg0: memref<104x64xf32, #tpu.memory_space<vmem>>, %arg1: memref<448x128xf32, #tpu.memory_space<vmem>>, %arg2: memref<384x64xf32, #tpu.memory_space<vmem>>, %arg3: memref<456x128xf32, #tpu.memory_space<vmem>>, %arg4: memref<256x32xf32, #tpu.memory_space<vmem>>, %arg5: memref<32x64xf32, #tpu.memory_space<vmem>>) attributes {dimension_semantics = [], scalar_prefetch = 0 : i64, scratch_operands = 0 : i64, tpu.core_type = #tpu.core_type<tc>} {
    %c0 = arith.constant 0 : index
    %c0_0 = arith.constant 0 : index
    %0 = vector.load %arg0[%c0, %c0_0] : memref<104x64xf32, #tpu.memory_space<vmem>>, vector<32x64xf32>
    %c32 = arith.constant 32 : index
    %c0_1 = arith.constant 0 : index
    %1 = vector.load %arg0[%c32, %c0_1] : memref<104x64xf32, #tpu.memory_space<vmem>>, vector<32x64xf32>
    %c64 = arith.constant 64 : index
    %c0_2 = arith.constant 0 : index
    %2 = vector.load %arg0[%c64, %c0_2] : memref<104x64xf32, #tpu.memory_space<vmem>>, vector<32x64xf32>
    %c0_3 = arith.constant 0 : index
    %c0_4 = arith.constant 0 : index
    %3 = vector.load %arg3[%c0_3, %c0_4] : memref<456x128xf32, #tpu.memory_space<vmem>>, vector<192x128xf32>
    %c192 = arith.constant 192 : index
    %c0_5 = arith.constant 0 : index
    %4 = vector.load %arg3[%c192, %c0_5] : memref<456x128xf32, #tpu.memory_space<vmem>>, vector<128x128xf32>
    %c320 = arith.constant 320 : index
    %c0_6 = arith.constant 0 : index
    %5 = vector.load %arg3[%c320, %c0_6] : memref<456x128xf32, #tpu.memory_space<vmem>>, vector<128x128xf32>
    %c0_7 = arith.constant 0 : index
    %c0_8 = arith.constant 0 : index
    %6 = vector.load %arg4[%c0_7, %c0_8] : memref<256x32xf32, #tpu.memory_space<vmem>>, vector<128x32xf32>
    %c128 = arith.constant 128 : index
    %c0_9 = arith.constant 0 : index
    %7 = vector.load %arg4[%c128, %c0_9] : memref<256x32xf32, #tpu.memory_space<vmem>>, vector<128x32xf32>
    %c96 = arith.constant 96 : index
    %c0_10 = arith.constant 0 : index
    %8 = vector.load %arg0[%c96, %c0_10] : memref<104x64xf32, #tpu.memory_space<vmem>>, vector<1x64xf32>
    %c97 = arith.constant 97 : index
    %c0_11 = arith.constant 0 : index
    %9 = vector.load %arg0[%c97, %c0_11] : memref<104x64xf32, #tpu.memory_space<vmem>>, vector<1x64xf32>
    %cst = arith.constant dense<0.000000e+00> : vector<32xf32>
    %10 = vector.multi_reduction <add>, %0, %cst [1] : vector<32x64xf32> to vector<32xf32>
    %11 = vector.shape_cast %10 : vector<32xf32> to vector<32x1xf32>
    %cst_12 = arith.constant 6.400000e+01 : f32
    %12 = vector.broadcast %cst_12 : f32 to vector<32x1xf32>
    %13 = arith.divf %11, %12 : vector<32x1xf32>
    %14 = vector.broadcast %13 : vector<32x1xf32> to vector<32x64xf32>
    %15 = arith.subf %0, %14 : vector<32x64xf32>
    %16 = arith.mulf %15, %15 : vector<32x64xf32>
    %cst_13 = arith.constant dense<0.000000e+00> : vector<32xf32>
    %17 = vector.multi_reduction <add>, %16, %cst_13 [1] : vector<32x64xf32> to vector<32xf32>
    %18 = vector.shape_cast %17 : vector<32xf32> to vector<32x1xf32>
    %cst_14 = arith.constant 6.400000e+01 : f32
    %19 = vector.broadcast %cst_14 : f32 to vector<32x1xf32>
    %20 = arith.divf %18, %19 : vector<32x1xf32>
    %cst_15 = arith.constant 9.99999974E-6 : f32
    %21 = vector.broadcast %cst_15 : f32 to vector<32x1xf32>
    %22 = arith.addf %20, %21 : vector<32x1xf32>
    %23 = math.rsqrt %22 : vector<32x1xf32>
    %24 = vector.broadcast %23 : vector<32x1xf32> to vector<32x64xf32>
    %25 = arith.mulf %15, %24 : vector<32x64xf32>
    %26 = vector.broadcast %8 : vector<1x64xf32> to vector<32x64xf32>
    %27 = arith.mulf %25, %26 : vector<32x64xf32>
    %28 = vector.broadcast %9 : vector<1x64xf32> to vector<32x64xf32>
    %29 = arith.addf %27, %28 : vector<32x64xf32>
    %c0_16 = arith.constant 0 : index
    %c0_17 = arith.constant 0 : index
    %30 = vector.load %arg1[%c0_16, %c0_17] : memref<448x128xf32, #tpu.memory_space<vmem>>, vector<64x128xf32>
    %cst_18 = arith.constant dense<0.000000e+00> : vector<32x128xf32>
    %31 = tpu.matmul %29, %30, %cst_18 {dimension_numbers = #tpu.dot_dimension_numbers<[1], [0], [0], [1], [0, 0, 1, 1], [], []>} : vector<32x64xf32>, vector<64x128xf32>, vector<32x128xf32> -> vector<32x128xf32>
    %c64_19 = arith.constant 64 : index
    %c0_20 = arith.constant 0 : index
    %32 = vector.load %arg1[%c64_19, %c0_20] : memref<448x128xf32, #tpu.memory_space<vmem>>, vector<64x128xf32>
    %cst_21 = arith.constant dense<0.000000e+00> : vector<32x128xf32>
    %33 = tpu.matmul %29, %32, %cst_21 {dimension_numbers = #tpu.dot_dimension_numbers<[1], [0], [0], [1], [0, 0, 1, 1], [], []>} : vector<32x64xf32>, vector<64x128xf32>, vector<32x128xf32> -> vector<32x128xf32>
    %c128_22 = arith.constant 128 : index
    %c0_23 = arith.constant 0 : index
    %34 = vector.load %arg1[%c128_22, %c0_23] : memref<448x128xf32, #tpu.memory_space<vmem>>, vector<64x128xf32>
    %cst_24 = arith.constant dense<0.000000e+00> : vector<32x128xf32>
    %35 = tpu.matmul %29, %34, %cst_24 {dimension_numbers = #tpu.dot_dimension_numbers<[1], [0], [0], [1], [0, 0, 1, 1], [], []>} : vector<32x64xf32>, vector<64x128xf32>, vector<32x128xf32> -> vector<32x128xf32>
    %c192_25 = arith.constant 192 : index
    %c0_26 = arith.constant 0 : index
    %36 = vector.load %arg1[%c192_25, %c0_26] : memref<448x128xf32, #tpu.memory_space<vmem>>, vector<64x128xf32>
    %cst_27 = arith.constant dense<0.000000e+00> : vector<32x128xf32>
    %37 = tpu.matmul %1, %36, %cst_27 {dimension_numbers = #tpu.dot_dimension_numbers<[1], [0], [0], [1], [0, 0, 1, 1], [], []>} : vector<32x64xf32>, vector<64x128xf32>, vector<32x128xf32> -> vector<32x128xf32>
    %38 = arith.addf %35, %37 : vector<32x128xf32>
    %39 = tpu.concatenate %31, %31, %31, %31, %31, %31 in 0 : vector<32x128xf32>, vector<32x128xf32>, vector<32x128xf32>, vector<32x128xf32>, vector<32x128xf32>, vector<32x128xf32> -> vector<192x128xf32>
    %40 = arith.mulf %39, %3 : vector<192x128xf32>
    %cst_28 = arith.constant dense<0.000000e+00> : vector<192x32xf32>
    %41 = tpu.matmul %40, %33, %cst_28 {dimension_numbers = #tpu.dot_dimension_numbers<[1], [1], [0], [0], [0, 0, 1, 0], [], []>} : vector<192x128xf32>, vector<32x128xf32>, vector<192x32xf32> -> vector<192x32xf32>
    %42 = vector.extract_strided_slice %41 {offsets = [0, 0], sizes = [128, 32], strides = [1, 1]} : vector<192x32xf32> to vector<128x32xf32>
    %43 = arith.addf %42, %6 : vector<128x32xf32>
    %cst_29 = arith.constant dense<0xFF800000> : vector<128xf32>
    %44 = vector.multi_reduction <maximumf>, %43, %cst_29 [1] : vector<128x32xf32> to vector<128xf32>
    %45 = vector.shape_cast %44 : vector<128xf32> to vector<128x1xf32>
    %46 = vector.broadcast %45 : vector<128x1xf32> to vector<128x32xf32>
    %47 = arith.subf %43, %46 : vector<128x32xf32>
    %48 = math.exp %47 : vector<128x32xf32>
    %cst_30 = arith.constant dense<0.000000e+00> : vector<128xf32>
    %49 = vector.multi_reduction <add>, %48, %cst_30 [1] : vector<128x32xf32> to vector<128xf32>
    %50 = vector.shape_cast %49 : vector<128xf32> to vector<128x1xf32>
    %51 = vector.broadcast %50 : vector<128x1xf32> to vector<128x32xf32>
    %52 = arith.divf %48, %51 : vector<128x32xf32>
    %53 = vector.extract_strided_slice %41 {offsets = [128, 0], sizes = [64, 32], strides = [1, 1]} : vector<192x32xf32> to vector<64x32xf32>
    %cst_31 = arith.constant dense<0.000000e+00> : vector<128x128xf32>
    %54 = tpu.matmul %52, %38, %cst_31 {dimension_numbers = #tpu.dot_dimension_numbers<[1], [0], [0], [1], [0, 0, 1, 1], [], []>} : vector<128x32xf32>, vector<32x128xf32>, vector<128x128xf32> -> vector<128x128xf32>
    %55 = arith.mulf %54, %4 : vector<128x128xf32>
    %56 = vector.extract_strided_slice %55 {offsets = [0, 0], sizes = [32, 128], strides = [1, 1]} : vector<128x128xf32> to vector<32x128xf32>
    %57 = vector.extract_strided_slice %55 {offsets = [32, 0], sizes = [32, 128], strides = [1, 1]} : vector<128x128xf32> to vector<32x128xf32>
    %58 = arith.addf %56, %57 : vector<32x128xf32>
    %59 = vector.extract_strided_slice %55 {offsets = [64, 0], sizes = [32, 128], strides = [1, 1]} : vector<128x128xf32> to vector<32x128xf32>
    %60 = arith.addf %58, %59 : vector<32x128xf32>
    %61 = vector.extract_strided_slice %55 {offsets = [96, 0], sizes = [32, 128], strides = [1, 1]} : vector<128x128xf32> to vector<32x128xf32>
    %62 = arith.addf %60, %61 : vector<32x128xf32>
    %63 = vector.extract_strided_slice %52 {offsets = [64, 0], sizes = [32, 32], strides = [1, 1]} : vector<128x32xf32> to vector<32x32xf32>
    %64 = vector.extract_strided_slice %52 {offsets = [96, 0], sizes = [32, 32], strides = [1, 1]} : vector<128x32xf32> to vector<32x32xf32>
    %65 = tpu.concatenate %63, %63, %64, %64 in 0 : vector<32x32xf32>, vector<32x32xf32>, vector<32x32xf32>, vector<32x32xf32> -> vector<128x32xf32>
    %66 = tpu.concatenate %53, %53 in 0 : vector<64x32xf32>, vector<64x32xf32> -> vector<128x32xf32>
    %67 = arith.mulf %65, %66 : vector<128x32xf32>
    %cst_32 = arith.constant dense<0.000000e+00> : vector<128xf32>
    %68 = vector.multi_reduction <add>, %67, %cst_32 [1] : vector<128x32xf32> to vector<128xf32>
    %69 = vector.shape_cast %68 : vector<128xf32> to vector<128x1xf32>
    %70 = vector.extract_strided_slice %69 {offsets = [0, 0], sizes = [32, 1], strides = [1, 1]} : vector<128x1xf32> to vector<32x1xf32>
    %c448 = arith.constant 448 : index
    %c0_33 = arith.constant 0 : index
    %71 = vector.load %arg3[%c448, %c0_33] : memref<456x128xf32, #tpu.memory_space<vmem>>, vector<1x128xf32>
    %72 = vector.broadcast %70 : vector<32x1xf32> to vector<32x128xf32>
    %73 = vector.broadcast %71 : vector<1x128xf32> to vector<32x128xf32>
    %74 = arith.mulf %72, %73 : vector<32x128xf32>
    %75 = arith.addf %62, %74 : vector<32x128xf32>
    %76 = vector.extract_strided_slice %69 {offsets = [32, 0], sizes = [32, 1], strides = [1, 1]} : vector<128x1xf32> to vector<32x1xf32>
    %c449 = arith.constant 449 : index
    %c0_34 = arith.constant 0 : index
    %77 = vector.load %arg3[%c449, %c0_34] : memref<456x128xf32, #tpu.memory_space<vmem>>, vector<1x128xf32>
    %78 = vector.broadcast %76 : vector<32x1xf32> to vector<32x128xf32>
    %79 = vector.broadcast %77 : vector<1x128xf32> to vector<32x128xf32>
    %80 = arith.mulf %78, %79 : vector<32x128xf32>
    %81 = arith.addf %75, %80 : vector<32x128xf32>
    %82 = vector.extract_strided_slice %69 {offsets = [64, 0], sizes = [32, 1], strides = [1, 1]} : vector<128x1xf32> to vector<32x1xf32>
    %c450 = arith.constant 450 : index
    %c0_35 = arith.constant 0 : index
    %83 = vector.load %arg3[%c450, %c0_35] : memref<456x128xf32, #tpu.memory_space<vmem>>, vector<1x128xf32>
    %84 = vector.broadcast %82 : vector<32x1xf32> to vector<32x128xf32>
    %85 = vector.broadcast %83 : vector<1x128xf32> to vector<32x128xf32>
    %86 = arith.mulf %84, %85 : vector<32x128xf32>
    %87 = arith.addf %81, %86 : vector<32x128xf32>
    %88 = vector.extract_strided_slice %69 {offsets = [96, 0], sizes = [32, 1], strides = [1, 1]} : vector<128x1xf32> to vector<32x1xf32>
    %c451 = arith.constant 451 : index
    %c0_36 = arith.constant 0 : index
    %89 = vector.load %arg3[%c451, %c0_36] : memref<456x128xf32, #tpu.memory_space<vmem>>, vector<1x128xf32>
    %90 = vector.broadcast %88 : vector<32x1xf32> to vector<32x128xf32>
    %91 = vector.broadcast %89 : vector<1x128xf32> to vector<32x128xf32>
    %92 = arith.mulf %90, %91 : vector<32x128xf32>
    %93 = arith.addf %87, %92 : vector<32x128xf32>
    %c0_37 = arith.constant 0 : index
    %c0_38 = arith.constant 0 : index
    %94 = vector.load %arg2[%c0_37, %c0_38] : memref<384x64xf32, #tpu.memory_space<vmem>>, vector<128x64xf32>
    %cst_39 = arith.constant dense<0.000000e+00> : vector<32x64xf32>
    %95 = tpu.matmul %93, %94, %cst_39 {dimension_numbers = #tpu.dot_dimension_numbers<[1], [0], [0], [1], [0, 0, 1, 1], [], []>} : vector<32x128xf32>, vector<128x64xf32>, vector<32x64xf32> -> vector<32x64xf32>
    %96 = arith.addf %0, %95 : vector<32x64xf32>
    %c98 = arith.constant 98 : index
    %c0_40 = arith.constant 0 : index
    %97 = vector.load %arg0[%c98, %c0_40] : memref<104x64xf32, #tpu.memory_space<vmem>>, vector<1x64xf32>
    %c99 = arith.constant 99 : index
    %c0_41 = arith.constant 0 : index
    %98 = vector.load %arg0[%c99, %c0_41] : memref<104x64xf32, #tpu.memory_space<vmem>>, vector<1x64xf32>
    %cst_42 = arith.constant dense<0.000000e+00> : vector<32xf32>
    %99 = vector.multi_reduction <add>, %96, %cst_42 [1] : vector<32x64xf32> to vector<32xf32>
    %100 = vector.shape_cast %99 : vector<32xf32> to vector<32x1xf32>
    %cst_43 = arith.constant 6.400000e+01 : f32
    %101 = vector.broadcast %cst_43 : f32 to vector<32x1xf32>
    %102 = arith.divf %100, %101 : vector<32x1xf32>
    %103 = vector.broadcast %102 : vector<32x1xf32> to vector<32x64xf32>
    %104 = arith.subf %96, %103 : vector<32x64xf32>
    %105 = arith.mulf %104, %104 : vector<32x64xf32>
    %cst_44 = arith.constant dense<0.000000e+00> : vector<32xf32>
    %106 = vector.multi_reduction <add>, %105, %cst_44 [1] : vector<32x64xf32> to vector<32xf32>
    %107 = vector.shape_cast %106 : vector<32xf32> to vector<32x1xf32>
    %cst_45 = arith.constant 6.400000e+01 : f32
    %108 = vector.broadcast %cst_45 : f32 to vector<32x1xf32>
    %109 = arith.divf %107, %108 : vector<32x1xf32>
    %cst_46 = arith.constant 9.99999974E-6 : f32
    %110 = vector.broadcast %cst_46 : f32 to vector<32x1xf32>
    %111 = arith.addf %109, %110 : vector<32x1xf32>
    %112 = math.rsqrt %111 : vector<32x1xf32>
    %113 = vector.broadcast %112 : vector<32x1xf32> to vector<32x64xf32>
    %114 = arith.mulf %104, %113 : vector<32x64xf32>
    %115 = vector.broadcast %97 : vector<1x64xf32> to vector<32x64xf32>
    %116 = arith.mulf %114, %115 : vector<32x64xf32>
    %117 = vector.broadcast %98 : vector<1x64xf32> to vector<32x64xf32>
    %118 = arith.addf %116, %117 : vector<32x64xf32>
    %c256 = arith.constant 256 : index
    %c0_47 = arith.constant 0 : index
    %119 = vector.load %arg1[%c256, %c0_47] : memref<448x128xf32, #tpu.memory_space<vmem>>, vector<64x128xf32>
    %cst_48 = arith.constant dense<0.000000e+00> : vector<32x128xf32>
    %120 = tpu.matmul %118, %119, %cst_48 {dimension_numbers = #tpu.dot_dimension_numbers<[1], [0], [0], [1], [0, 0, 1, 1], [], []>} : vector<32x64xf32>, vector<64x128xf32>, vector<32x128xf32> -> vector<32x128xf32>
    %c320_49 = arith.constant 320 : index
    %c0_50 = arith.constant 0 : index
    %121 = vector.load %arg1[%c320_49, %c0_50] : memref<448x128xf32, #tpu.memory_space<vmem>>, vector<64x128xf32>
    %cst_51 = arith.constant dense<0.000000e+00> : vector<32x128xf32>
    %122 = tpu.matmul %2, %121, %cst_51 {dimension_numbers = #tpu.dot_dimension_numbers<[1], [0], [0], [1], [0, 0, 1, 1], [], []>} : vector<32x64xf32>, vector<64x128xf32>, vector<32x128xf32> -> vector<32x128xf32>
    %123 = tpu.concatenate %120, %120, %120, %120 in 0 : vector<32x128xf32>, vector<32x128xf32>, vector<32x128xf32>, vector<32x128xf32> -> vector<128x128xf32>
    %124 = arith.mulf %123, %4 : vector<128x128xf32>
    %cst_52 = arith.constant dense<0.000000e+00> : vector<128x32xf32>
    %125 = tpu.matmul %124, %122, %cst_52 {dimension_numbers = #tpu.dot_dimension_numbers<[1], [1], [0], [0], [0, 0, 1, 0], [], []>} : vector<128x128xf32>, vector<32x128xf32>, vector<128x32xf32> -> vector<128x32xf32>
    %126 = arith.addf %125, %7 : vector<128x32xf32>
    %cst_53 = arith.constant dense<0xFF800000> : vector<128xf32>
    %127 = vector.multi_reduction <maximumf>, %126, %cst_53 [1] : vector<128x32xf32> to vector<128xf32>
    %128 = vector.shape_cast %127 : vector<128xf32> to vector<128x1xf32>
    %129 = vector.broadcast %128 : vector<128x1xf32> to vector<128x32xf32>
    %130 = arith.subf %126, %129 : vector<128x32xf32>
    %131 = math.exp %130 : vector<128x32xf32>
    %cst_54 = arith.constant dense<0.000000e+00> : vector<128xf32>
    %132 = vector.multi_reduction <add>, %131, %cst_54 [1] : vector<128x32xf32> to vector<128xf32>
    %133 = vector.shape_cast %132 : vector<128xf32> to vector<128x1xf32>
    %134 = vector.broadcast %133 : vector<128x1xf32> to vector<128x32xf32>
    %135 = arith.divf %131, %134 : vector<128x32xf32>
    %cst_55 = arith.constant dense<0.000000e+00> : vector<128x128xf32>
    %136 = tpu.matmul %135, %122, %cst_55 {dimension_numbers = #tpu.dot_dimension_numbers<[1], [0], [0], [1], [0, 0, 1, 1], [], []>} : vector<128x32xf32>, vector<32x128xf32>, vector<128x128xf32> -> vector<128x128xf32>
    %137 = arith.mulf %136, %5 : vector<128x128xf32>
    %138 = vector.extract_strided_slice %137 {offsets = [0, 0], sizes = [32, 128], strides = [1, 1]} : vector<128x128xf32> to vector<32x128xf32>
    %139 = vector.extract_strided_slice %137 {offsets = [32, 0], sizes = [32, 128], strides = [1, 1]} : vector<128x128xf32> to vector<32x128xf32>
    %140 = arith.addf %138, %139 : vector<32x128xf32>
    %141 = vector.extract_strided_slice %137 {offsets = [64, 0], sizes = [32, 128], strides = [1, 1]} : vector<128x128xf32> to vector<32x128xf32>
    %142 = arith.addf %140, %141 : vector<32x128xf32>
    %143 = vector.extract_strided_slice %137 {offsets = [96, 0], sizes = [32, 128], strides = [1, 1]} : vector<128x128xf32> to vector<32x128xf32>
    %144 = arith.addf %142, %143 : vector<32x128xf32>
    %c128_56 = arith.constant 128 : index
    %c0_57 = arith.constant 0 : index
    %145 = vector.load %arg2[%c128_56, %c0_57] : memref<384x64xf32, #tpu.memory_space<vmem>>, vector<128x64xf32>
    %cst_58 = arith.constant dense<0.000000e+00> : vector<32x64xf32>
    %146 = tpu.matmul %144, %145, %cst_58 {dimension_numbers = #tpu.dot_dimension_numbers<[1], [0], [0], [1], [0, 0, 1, 1], [], []>} : vector<32x128xf32>, vector<128x64xf32>, vector<32x64xf32> -> vector<32x64xf32>
    %147 = arith.addf %96, %146 : vector<32x64xf32>
    %c100 = arith.constant 100 : index
    %c0_59 = arith.constant 0 : index
    %148 = vector.load %arg0[%c100, %c0_59] : memref<104x64xf32, #tpu.memory_space<vmem>>, vector<1x64xf32>
    %c101 = arith.constant 101 : index
    %c0_60 = arith.constant 0 : index
    %149 = vector.load %arg0[%c101, %c0_60] : memref<104x64xf32, #tpu.memory_space<vmem>>, vector<1x64xf32>
    %cst_61 = arith.constant dense<0.000000e+00> : vector<32xf32>
    %150 = vector.multi_reduction <add>, %147, %cst_61 [1] : vector<32x64xf32> to vector<32xf32>
    %151 = vector.shape_cast %150 : vector<32xf32> to vector<32x1xf32>
    %cst_62 = arith.constant 6.400000e+01 : f32
    %152 = vector.broadcast %cst_62 : f32 to vector<32x1xf32>
    %153 = arith.divf %151, %152 : vector<32x1xf32>
    %154 = vector.broadcast %153 : vector<32x1xf32> to vector<32x64xf32>
    %155 = arith.subf %147, %154 : vector<32x64xf32>
    %156 = arith.mulf %155, %155 : vector<32x64xf32>
    %cst_63 = arith.constant dense<0.000000e+00> : vector<32xf32>
    %157 = vector.multi_reduction <add>, %156, %cst_63 [1] : vector<32x64xf32> to vector<32xf32>
    %158 = vector.shape_cast %157 : vector<32xf32> to vector<32x1xf32>
    %cst_64 = arith.constant 6.400000e+01 : f32
    %159 = vector.broadcast %cst_64 : f32 to vector<32x1xf32>
    %160 = arith.divf %158, %159 : vector<32x1xf32>
    %cst_65 = arith.constant 9.99999974E-6 : f32
    %161 = vector.broadcast %cst_65 : f32 to vector<32x1xf32>
    %162 = arith.addf %160, %161 : vector<32x1xf32>
    %163 = math.rsqrt %162 : vector<32x1xf32>
    %164 = vector.broadcast %163 : vector<32x1xf32> to vector<32x64xf32>
    %165 = arith.mulf %155, %164 : vector<32x64xf32>
    %166 = vector.broadcast %148 : vector<1x64xf32> to vector<32x64xf32>
    %167 = arith.mulf %165, %166 : vector<32x64xf32>
    %168 = vector.broadcast %149 : vector<1x64xf32> to vector<32x64xf32>
    %169 = arith.addf %167, %168 : vector<32x64xf32>
    %c384 = arith.constant 384 : index
    %c0_66 = arith.constant 0 : index
    %170 = vector.load %arg1[%c384, %c0_66] : memref<448x128xf32, #tpu.memory_space<vmem>>, vector<64x128xf32>
    %cst_67 = arith.constant dense<0.000000e+00> : vector<32x128xf32>
    %171 = tpu.matmul %169, %170, %cst_67 {dimension_numbers = #tpu.dot_dimension_numbers<[1], [0], [0], [1], [0, 0, 1, 1], [], []>} : vector<32x64xf32>, vector<64x128xf32>, vector<32x128xf32> -> vector<32x128xf32>
    %c452 = arith.constant 452 : index
    %c0_68 = arith.constant 0 : index
    %172 = vector.load %arg3[%c452, %c0_68] : memref<456x128xf32, #tpu.memory_space<vmem>>, vector<1x128xf32>
    %173 = vector.broadcast %172 : vector<1x128xf32> to vector<32x128xf32>
    %174 = arith.addf %171, %173 : vector<32x128xf32>
    %cst_69 = arith.constant 0.000000e+00 : f32
    %175 = vector.broadcast %cst_69 : f32 to vector<32x128xf32>
    %176 = arith.maximumf %174, %175 : vector<32x128xf32>
    %c256_70 = arith.constant 256 : index
    %c0_71 = arith.constant 0 : index
    %177 = vector.load %arg2[%c256_70, %c0_71] : memref<384x64xf32, #tpu.memory_space<vmem>>, vector<128x64xf32>
    %cst_72 = arith.constant dense<0.000000e+00> : vector<32x64xf32>
    %178 = tpu.matmul %176, %177, %cst_72 {dimension_numbers = #tpu.dot_dimension_numbers<[1], [0], [0], [1], [0, 0, 1, 1], [], []>} : vector<32x128xf32>, vector<128x64xf32>, vector<32x64xf32> -> vector<32x64xf32>
    %179 = arith.addf %147, %178 : vector<32x64xf32>
    %c102 = arith.constant 102 : index
    %c0_73 = arith.constant 0 : index
    %180 = vector.load %arg0[%c102, %c0_73] : memref<104x64xf32, #tpu.memory_space<vmem>>, vector<1x64xf32>
    %181 = vector.broadcast %180 : vector<1x64xf32> to vector<32x64xf32>
    %182 = arith.addf %179, %181 : vector<32x64xf32>
    %c0_74 = arith.constant 0 : index
    %c0_75 = arith.constant 0 : index
    %183 = vector.load %arg5[%c0_74, %c0_75] : memref<32x64xf32, #tpu.memory_space<vmem>>, vector<32x64xf32>
    tpu.vector_store %arg5[%c0_74, %c0_75], %182 {strides = array<i32>} : memref<32x64xf32, #tpu.memory_space<vmem>>, vector<32x64xf32>,
    return
  }
}

</mosaic_0001>

<bundles_post_ra>
// kernel: tpu_custom_call.1
= control target key start
LH: loop header
LB: loop body
LE: loop exit
PB: predicated region body
PF: predicated region fallthrough
CT: control target
= control target key end

     0   :  { %10 = vsyncpa [#allocation3], 0  ;;  %s3859_s0 = inlined_call_operand.vmem [shape: f32[104,64], index: 0, kind: input, shape index: {}]   ;;  %s3860_s1 = inlined_call_operand.hbm [shape: f32[448,128], index: 1, kind: input, shape index: {}]   ;;  %s3861_s2 = inlined_call_operand.vmem [shape: f32[384,64], index: 2, kind: input, shape index: {}]   ;;  %s3862_s3 = inlined_call_operand.vmem [shape: f32[456,128], index: 3, kind: input, shape index: {}]   ;;  %s3863_s4 = inlined_call_operand.vmem [shape: f32[256,32], index: 4, kind: input, shape index: {}]   ;;  %s3864_s5 = inlined_call_operand.hbm [shape: f32[32,64], index: 5, kind: output, shape index: {}]  }
   0x1   :  { %11 = vsyncpa [#allocation4], 0  ;;  %s18_s20 = sshll.u32 %s3860_s1, 4  ;;  %s2598_s21 = smov [#allocation2]   ;;  %s19_s20 = int_to_ptr.hbm [resolvable:$true] %s18_s20 }
   0x2   :  { %s20_s22 = sshll.u32 %s2598_s21, 4  ;;  %s2599_s23 = smov 128   ;;  %s21_s22 = int_to_ptr.vmem [resolvable:$true] %s20_s22 }
   0x3   :  { %s2600_s24 = smov 8  }
   0x4   :  { %26 = dma.hbm_to_vmem [thread:$0]  %s19_s20, 7168, %s21_s22, [#allocation3], %s2599_s23, %s2599_s23, %s2600_s24  }
   0x5   :  { %2594 = dma.done.wait [#allocation3], 7168  }
   0x6   :  { %2595 = vsyncadd [#allocation3], 4294960128  ;;  %vm139_vm0 = vcmask 523264   ;;  %v39_v0 = vld [vmem:[%s3859_s0 + $0x10] sm:$0xff]  ;;  %v37_v1 = vld [vmem:[%s3859_s0] sm:$0xff]  ;;  %v2601_v8 = vmov 64.0  }
   0x7   :  { %v146_v2 = vsel %vm139_vm0, %v39_v0, 0.0  ;;  %v140_v3 = vsel %vm139_vm0, %v37_v1, 0.0  ;;  %v40_v4 = vld [vmem:[%s3859_s0 + $0x18] sm:$0xff]  ;;  %v38_v5 = vld [vmem:[%s3859_s0 + $0x8] sm:$0xff]  ;;  %2388 = vrcp.f32 %v2601_v8  ;;  %v251_v39 = vld [vmem:[#allocation2 + $0x30] sm:$0xff]  ;;  %vm546_vm14 = vcmask 261120  }
   0x8   :  { %147 = vadd.xlane.f32.xlu1 %v146_v2  ;;  %141 = vadd.xlane.f32.xlu0 %v140_v3  ;;  %v149_v6 = vsel %vm139_vm0, %v40_v4, 0.0  ;;  %v143_v7 = vsel %vm139_vm0, %v38_v5, 0.0  ;;  %v252_v35 = vld [vmem:[#allocation2 + $0x38] sm:$0xff]  ;;  %v300_v40 = vld [vmem:[#allocation2 + $0x70] sm:$0xff]  ;;  %v250_v43 = vld [vmem:[#allocation2 + $0x28] sm:$0xff]  ;;  %s2298_s11 = sshll.u32 %s3864_s5, 4  ;;  %s2299_s11 = int_to_ptr.hbm [resolvable:$true] %s2298_s11 }
   0x9   :  { %v301_v36 = vld [vmem:[#allocation2 + $0x78] sm:$0xff]  ;;  %273 = vmatpush.msra.mxu0 %v252_v35  ;;  %v345_v41 = vld [vmem:[#allocation2 + $0xf0] sm:$0xff]  ;;  %v299_v44 = vld [vmem:[#allocation2 + $0x68] sm:$0xff] }
   0xa   :  { %v346_v37 = vld [vmem:[#allocation2 + $0xf8] sm:$0xff]  ;;  %310 = vmatpush.msra.mxu1 %v301_v36  ;;  %v337_v42 = vld [vmem:[#allocation2 + $0xb0] sm:$0xff]  ;;  %v344_v45 = vld [vmem:[#allocation2 + $0xe8] sm:$0xff] }
   0xb   :  { %v338_v38 = vld [vmem:[#allocation2 + $0xb8] sm:$0xff]  ;;  %367 = vmatpush.msra.mxu2 %v346_v37  ;;  %274 = vmatpush.msra.mxu0 %v251_v39  ;;  %v336_v46 = vld [vmem:[#allocation2 + $0xa8] sm:$0xff]  ;;  %v249_v47 = vld [vmem:[#allocation2 + $0x20] sm:$0xff] }
   0xc   :  { %396 = vmatpush.msra.mxu3 %v338_v38  ;;  %311 = vmatpush.msra.mxu1 %v300_v40  ;;  %v298_v48 = vld [vmem:[#allocation2 + $0x60] sm:$0xff]  ;;  %v248_v51 = vld [vmem:[#allocation2 + $0x18] sm:$0xff]  ;;  %v247_v55 = vld [vmem:[#allocation2 + $0x10] sm:$0xff] }
   0xd   :  { %v2389_v9 = vpop.eup %2388  ;;  %368 = vmatpush.msra.mxu2 %v345_v41  ;;  %275 = vmatpush.msra.mxu0 %v250_v43  ;;  %v343_v49 = vld [vmem:[#allocation2 + $0xe0] sm:$0xff]  ;;  %v297_v52 = vld [vmem:[#allocation2 + $0x58] sm:$0xff]  ;;  %v296_v56 = vld [vmem:[#allocation2 + $0x50] sm:$0xff] }
   0xe   :  { %v153_v10 = vmul.f32 64.0, %v2389_v9  ;;  %vm157_vm1 = vweird.f32 %v2389_v9  ;;  %397 = vmatpush.msra.mxu3 %v337_v42  ;;  %312 = vmatpush.msra.mxu1 %v299_v44  ;;  %v335_v50 = vld [vmem:[#allocation2 + $0xa0] sm:$0xff]  ;;  %v342_v53 = vld [vmem:[#allocation2 + $0xd8] sm:$0xff]  ;;  %v341_v57 = vld [vmem:[#allocation2 + $0xd0] sm:$0xff] }
   0xf   :  { %369 = vmatpush.msra.mxu2 %v344_v45  ;;  %276 = vmatpush.msra.mxu0 %v249_v47  ;;  %v334_v54 = vld [vmem:[#allocation2 + $0x98] sm:$0xff]  ;;  %v333_v58 = vld [vmem:[#allocation2 + $0x90] sm:$0xff]  ;;  %v246_v59 = vld [vmem:[#allocation2 + $0x8] sm:$0xff] }
  0x10   :  { %150 = vadd.xlane.f32.xlu1 %v149_v6  ;;  %144 = vadd.xlane.f32.xlu0 %v143_v7  ;;  %v154_v11 = vsub.f32 1.0, %v153_v10  ;;  %v295_v60 = vld [vmem:[#allocation2 + $0x48] sm:$0xff]  ;;  %v245_v63 = vld [vmem:[#allocation2] sm:$0xff]  ;;  %v44_v39 = vld [vmem:[%s3859_s0 + $0x38] sm:$0xff] }
  0x11   :  { %398 = vmatpush.msra.mxu3 %v336_v46  ;;  %313 = vmatpush.msra.mxu1 %v298_v48  ;;  %v340_v61 = vld [vmem:[#allocation2 + $0xc8] sm:$0xff]  ;;  %v331_v2 = vld [vmem:[#allocation2 + $0x80] sm:$0xff] }
  0x12   :  { %v155_v12 = vmul.f32 %v2389_v9, %v154_v11  ;;  %370 = vmatpush.msra.mxu2 %v343_v49  ;;  %277 = vmatpush.msra.mxu0 %v248_v51  ;;  %v332_v62 = vld [vmem:[#allocation2 + $0x88] sm:$0xff]  ;;  %v41_v3 = vld [vmem:[%s3859_s0 + $0x20] sm:$0xff] }
  0x13   :  { %399 = vmatpush.msra.mxu3 %v335_v50  ;;  %314 = vmatpush.msra.mxu1 %v297_v52  ;;  %v42_v10 = vld [vmem:[%s3859_s0 + $0x28] sm:$0xff]  ;;  %v2376_v37 = vld [vmem:[%s3859_s0 + $0x60] ss:$0 sm:$0xff]  ;;  %v2377_v42 = vld [vmem:[%s3859_s0 + $0x61] ss:$0 sm:$0xff] }
  0x14   :  { %v156_v13 = vadd.f32 %v2389_v9, %v155_v12  ;;  %371 = vmatpush.msra.mxu2 %v342_v53  ;;  %278 = vmatpush.msra.mxu0 %v247_v55  ;;  %v62_v50 = vld [vmem:[%s3862_s3 + $0x68] sm:$0xff] }
  0x15   :  { %400 = vmatpush.msra.mxu3 %v334_v54  ;;  %315 = vmatpush.msra.mxu1 %v296_v56 }
  0x16   :  { %v2655_v14 = vsel %vm157_vm1, %v2389_v9, %v156_v13  ;;  %372 = vmatpush.msra.mxu2 %v341_v57  ;;  %279 = vmatpush.msra.mxu0 %v246_v59 }
  0x17   :  { %401 = vmatpush.msra.mxu3 %v333_v58  ;;  %316 = vmatpush.msra.mxu1 %v295_v60 }
  0x18   :  { %373 = vmatpush.msra.mxu2 %v340_v61  ;;  %280 = vmatpush.msra.mxu0 %v245_v63 }
  0x19   :  { %402 = vmatpush.msra.mxu3 %v332_v62 }
  0x1b   :  { %403 = vmatpush.msra.mxu3 %v331_v2 }
  0x7b   :  { %v148_v15 = vpop.xlane.xlu1 %147  ;;  %v142_v16 = vpop.xlane.xlu0 %141 }
  0x7c   :  { %v161_v17 = vmul.f32 %v2655_v14, %v148_v15  ;;  %v159_v18 = vmul.f32 %v2655_v14, %v142_v16 }
  0x7e   :  { %v2659_v19 = vsub.f32 %v39_v0, %v161_v17  ;;  %v2661_v20 = vsub.f32 %v37_v1, %v159_v18  ;;  %v294_v0 = vld [vmem:[#allocation2 + $0x40] sm:$0xff] }
  0x7f   :  { %v339_v1 = vld [vmem:[#allocation2 + $0xc0] sm:$0xff]  ;;  %317 = vmatpush.msra.mxu1 %v294_v0 }
  0x80   :  { %v169_v21 = vmul.f32 %v2659_v19, %v2659_v19  ;;  %v167_v22 = vmul.f32 %v2661_v20, %v2661_v20  ;;  %374 = vmatpush.msra.mxu2 %v339_v1 }
  0x81   :  { %2319 = vmatmul.msk.f32.vlgmr.msra.gmra.mxu2 %vm139_vm0, %v41_v3 }
  0x82   :  { %v177_v23 = vsel %vm139_vm0, %v169_v21, 0.0  ;;  %v171_v24 = vsel %vm139_vm0, %v167_v22, 0.0 }
  0x83   :  { %v151_v25 = vpop.xlane.xlu1 %150  ;;  %178 = vadd.xlane.f32.xlu0 %v177_v23  ;;  %172 = vadd.xlane.f32.xlu2 %v171_v24  ;;  %v145_v26 = vpop.xlane.xlu0 %144 }
  0x84   :  { %v162_v27 = vmul.f32 %v2655_v14, %v151_v25  ;;  %v160_v28 = vmul.f32 %v2655_v14, %v145_v26  ;;  %v43_v25 = vld [vmem:[%s3859_s0 + $0x30] sm:$0xff] }
  0x86   :  { %v2671_v29 = vsub.f32 %v40_v4, %v162_v27  ;;  %v2673_v30 = vsub.f32 %v38_v5, %v160_v28 }
  0x88   :  { %v170_v31 = vmul.f32 %v2671_v29, %v2671_v29  ;;  %v168_v32 = vmul.f32 %v2673_v30, %v2673_v30 }
  0x89   :  { %2320 = vmatmul.msk.f32.gmra.mxu2 %vm139_vm0, %v42_v10 }
  0x8a   :  { %v180_v33 = vsel %vm139_vm0, %v170_v31, 0.0  ;;  %v174_v34 = vsel %vm139_vm0, %v168_v32, 0.0 }
  0x8b   :  { %181 = vadd.xlane.f32.xlu1 %v180_v33  ;;  %175 = vadd.xlane.f32.xlu2 %v174_v34 }
  0x91   :  { %2321 = vmatmul.msk.f32.gmra.mxu2 %vm139_vm0, %v43_v25  ;;  %v51_v25 = vld [vmem:[%s3862_s3 + $0x10] sm:$0xff] }
  0x99   :  { %2322 = vmatmul.msk.f32.gmra.mxu2 %vm139_vm0, %v44_v39 }
  0xf6   :  { %v173_v4 = vpop.xlane.xlu2 %172  ;;  %v179_v5 = vpop.xlane.xlu0 %178 }
  0xf7   :  { %v183_v6 = vmul.f32 %v173_v4, %v2655_v14  ;;  %v185_v7 = vmul.f32 %v179_v5, %v2655_v14 }
  0xf9   :  { %v187_v8 = vadd.f32 1e-05, %v183_v6  ;;  %v189_v9 = vadd.f32 1e-05, %v185_v7 }
  0xfb   :  { %2390 = vrsqrt.f32 %v187_v8  ;;  %vm197_vm3 = vweird.f32 %v187_v8  ;;  %vm217_vm5 = vweird.f32 %v189_v9 }
  0xfc   :  { %2392 = vrsqrt.f32 %v189_v9 }
  0xfe   :  { %v182_v11 = vpop.xlane.xlu1 %181  ;;  %v176_v12 = vpop.xlane.xlu2 %175 }
  0xff   :  { %v186_v13 = vmul.f32 %v182_v11, %v2655_v14  ;;  %v184_v15 = vmul.f32 %v176_v12, %v2655_v14 }
 0x101   :  { %v2391_v16 = vpop.eup %2390  ;;  %v190_v17 = vadd.f32 1e-05, %v186_v13  ;;  %v188_v18 = vadd.f32 1e-05, %v184_v15  ;;  %v49_v15 = vld [vmem:[%s3862_s3] sm:$0xff] }
 0x102   :  { %v2393_v21 = vpop.eup %2392  ;;  %v192_v22 = vmul.f32 %v2391_v16, %v187_v8  ;;  %vm198_vm2 = vweird.f32 %v2391_v16 }
 0x103   :  { %v212_v23 = vmul.f32 %v2393_v21, %v189_v9  ;;  %2394 = vrsqrt.f32 %v190_v17  ;;  %vm199_vm4 = vmor %vm197_vm3, %vm198_vm2  ;;  %vm218_vm6 = vweird.f32 %v2393_v21  ;;  %vm207_vm9 = vweird.f32 %v188_v18 }
 0x104   :  { %v193_v24 = vmul.f32 %v2391_v16, %v192_v22  ;;  %2396 = vrsqrt.f32 %v188_v18  ;;  %vm2708_vm8 = vmor %vm217_vm5, %vm218_vm6  ;;  %vm227_vm11 = vweird.f32 %v190_v17  ;;  %v376_v1 = vpop.f32.mrf.mxu2  ;;  %v50_v22 = vld [vmem:[%s3862_s3 + $0x8] sm:$0xff] }
 0x105   :  { %v213_v27 = vmul.f32 %v2393_v21, %v212_v23 }
 0x106   :  { %v194_v26 = vmul.f32 0.5, %v193_v24 }
 0x107   :  { %v214_v34 = vmul.f32 0.5, %v213_v27 }
 0x108   :  { %v195_v28 = vsub.f32 1.5, %v194_v26 }
 0x109   :  { %v2395_v31 = vpop.eup %2394  ;;  %v215_v43 = vsub.f32 1.5, %v214_v34  ;;  %v54_v34 = vld [vmem:[%s3862_s3 + $0x28] sm:$0xff] }
 0x10a   :  { %v2397_v32 = vpop.eup %2396  ;;  %v196_v33 = vmul.f32 %v2391_v16, %v195_v28  ;;  %v222_v35 = vmul.f32 %v2395_v31, %v190_v17  ;;  %vm228_vm12 = vweird.f32 %v2395_v31  ;;  %v52_v28 = vld [vmem:[%s3862_s3 + $0x18] sm:$0xff] }
 0x10b   :  { %v202_v36 = vmul.f32 %v2397_v32, %v188_v18  ;;  %vm208_vm7 = vweird.f32 %v2397_v32  ;;  %v216_v49 = vmul.f32 %v2393_v21, %v215_v43  ;;  %vm229_vm13 = vmor %vm227_vm11, %vm228_vm12 }
 0x10c   :  { %v200_v38 = vsel %vm199_vm4, %v2391_v16, %v196_v33  ;;  %v223_v44 = vmul.f32 %v2395_v31, %v222_v35  ;;  %vm209_vm10 = vmor %vm207_vm9, %vm208_vm7  ;;  %v379_v4 = vpop.f32.mrf.mxu2 }
 0x10d   :  { %v203_v40 = vmul.f32 %v2397_v32, %v202_v36  ;;  %v231_v41 = vmul.f32 %v200_v38, %v2661_v20  ;;  %v220_v54 = vsel %vm2708_vm8, %v2393_v21, %v216_v49  ;;  %v55_v36 = vld [vmem:[%s3862_s3 + $0x30] sm:$0xff]  ;;  %v56_v38 = vld [vmem:[%s3862_s3 + $0x38] sm:$0xff] }
 0x10e   :  { %v224_v20 = vmul.f32 0.5, %v223_v44  ;;  %v233_v58 = vmul.f32 %v220_v54, %v2659_v19  ;;  %v59_v44 = vld [vmem:[%s3862_s3 + $0x50] sm:$0xff] }
 0x10f   :  { %v204_v45 = vmul.f32 0.5, %v203_v40  ;;  %v236_v46 = vmul.f32 %v2376_v37, %v231_v41  ;;  %v57_v40 = vld [vmem:[%s3862_s3 + $0x40] sm:$0xff] }
 0x110   :  { %v225_v55 = vsub.f32 1.5, %v224_v20  ;;  %v238_v60 = vmul.f32 %v2376_v37, %v233_v58 }
 0x111   :  { %v205_v47 = vsub.f32 1.5, %v204_v45  ;;  %v241_v48 = vadd.f32 %v2377_v42, %v236_v46  ;;  %v60_v46 = vld [vmem:[%s3862_s3 + $0x58] sm:$0xff] }
 0x112   :  { %v226_v59 = vmul.f32 %v2395_v31, %v225_v55  ;;  %v243_v61 = vadd.f32 %v2377_v42, %v238_v60  ;;  %v105_v55 = vld [vmem:[%s3863_s4] sm:$0xff] }
 0x113   :  { %v206_v51 = vmul.f32 %v2397_v32, %v205_v47  ;;  %2311 = vmatmul.msk.f32.vlgmr.msra.gmra.mxu0 %vm139_vm0, %v241_v48  ;;  %2315 = vmatmul.msk.f32.vlgmr.msra.gmra.mxu1 %vm139_vm0, %v241_v48 }
 0x114   :  { %2323 = vmatmul.msk.f32.vlgmr.msra.gmra.mxu3 %vm139_vm0, %v241_v48  ;;  %v382_v6 = vpop.f32.mrf.mxu2  ;;  %v61_v48 = vld [vmem:[%s3862_s3 + $0x60] sm:$0xff] }
 0x115   :  { %v210_v52 = vsel %vm209_vm10, %v2397_v32, %v206_v51  ;;  %v53_v32 = vld [vmem:[%s3862_s3 + $0x20] sm:$0xff]  ;;  %v63_v51 = vld [vmem:[%s3862_s3 + $0x70] sm:$0xff] }
 0x116   :  { %v232_v53 = vmul.f32 %v210_v52, %v2673_v30  ;;  %v230_v30 = vsel %vm229_vm13, %v2395_v31, %v226_v59 }
 0x117   :  { %v234_v62 = vmul.f32 %v230_v30, %v2671_v29  ;;  %v106_v30 = vld [vmem:[%s3863_s4 + $0x8] sm:$0xff] }
 0x118   :  { %v237_v56 = vmul.f32 %v2376_v37, %v232_v53  ;;  %v64_v53 = vld [vmem:[%s3862_s3 + $0x78] sm:$0xff] }
 0x119   :  { %v239_v19 = vmul.f32 %v2376_v37, %v234_v62 }
 0x11a   :  { %v242_v57 = vadd.f32 %v2377_v42, %v237_v56  ;;  %v65_v56 = vld [vmem:[%s3862_s3 + $0x80] sm:$0xff] }
 0x11b   :  { %v244_v63 = vadd.f32 %v2377_v42, %v239_v19  ;;  %v58_v42 = vld [vmem:[%s3862_s3 + $0x48] sm:$0xff] }
 0x11c   :  { %2312 = vmatmul.msk.f32.gmra.mxu0 %vm139_vm0, %v242_v57  ;;  %2316 = vmatmul.msk.f32.gmra.mxu1 %vm139_vm0, %v242_v57  ;;  %v385_v10 = vpop.f32.mrf.mxu2 }
 0x11d   :  { %2324 = vmatmul.msk.f32.gmra.mxu3 %vm139_vm0, %v242_v57 }
 0x124   :  { %2313 = vmatmul.msk.f32.gmra.mxu0 %vm139_vm0, %v243_v61  ;;  %2317 = vmatmul.msk.f32.gmra.mxu1 %vm139_vm0, %v243_v61 }
 0x125   :  { %2325 = vmatmul.msk.f32.gmra.mxu3 %vm139_vm0, %v243_v61  ;;  %v66_v61 = vld [vmem:[%s3862_s3 + $0x88] sm:$0xff] }
 0x12c   :  { %2314 = vmatmul.msk.f32.gmra.mxu0 %vm139_vm0, %v244_v63  ;;  %2318 = vmatmul.msk.f32.gmra.mxu1 %vm139_vm0, %v244_v63 }
 0x12d   :  { %2326 = vmatmul.msk.f32.gmra.mxu3 %vm139_vm0, %v244_v63 }
 0x190   :  { %v319_v0 = vpop.f32.mrf.mxu1  ;;  %v2729_v9 = vpop.f32.mrf.mxu0 }
 0x191   :  { %v417_v18 = vmul.f32 %v2729_v9, %v49_v15  ;;  %v421_v33 = vmul.f32 %v2729_v9, %v53_v32  ;;  %v425_v41 = vmul.f32 %v2729_v9, %v57_v40  ;;  %v429_v49 = vmul.f32 %v2729_v9, %v61_v48  ;;  %v69_v15 = vld [vmem:[%s3862_s3 + $0xa0] sm:$0xff]  ;;  %v111_v32 = vld [vmem:[%s3863_s4 + $0x30] sm:$0xff] }
 0x192   :  { %v433_v59 = vmul.f32 %v2729_v9, %v65_v56 }
 0x197   :  { %v405_v2 = vpop.f32.mrf.mxu3 }
 0x198   :  { %v406_v17 = vadd.f32 %v405_v2, %v376_v1  ;;  %v107_v1 = vld [vmem:[%s3863_s4 + $0x10] sm:$0xff] }
 0x199   :  { %v322_v3 = vpop.f32.mrf.mxu1  ;;  %v2735_v21 = vpop.f32.mrf.mxu0  ;;  %v67_v2 = vld [vmem:[%s3862_s3 + $0x90] sm:$0xff] }
 0x19a   :  { %v418_v23 = vmul.f32 %v2735_v21, %v50_v22  ;;  %v422_v35 = vmul.f32 %v2735_v21, %v54_v34  ;;  %v426_v43 = vmul.f32 %v2735_v21, %v58_v42  ;;  %v430_v20 = vmul.f32 %v2735_v21, %v62_v50 }
 0x19b   :  { %v434_v63 = vmul.f32 %v2735_v21, %v66_v61 }
 0x1a0   :  { %v408_v29 = vpop.f32.mrf.mxu3 }
 0x1a1   :  { %v325_v5 = vpop.f32.mrf.mxu1  ;;  %v409_v16 = vadd.f32 %v408_v29, %v379_v4  ;;  %v2741_v24 = vpop.f32.mrf.mxu0 }
 0x1a2   :  { %v419_v26 = vmul.f32 %v2741_v24, %v51_v25  ;;  %v423_v37 = vmul.f32 %v2741_v24, %v55_v36  ;;  %v427_v45 = vmul.f32 %v2741_v24, %v59_v44  ;;  %v431_v52 = vmul.f32 %v2741_v24, %v63_v51  ;;  %v70_v25 = vld [vmem:[%s3862_s3 + $0xa8] sm:$0xff] }
 0x1a3   :  { %v435_v29 = vmul.f32 %v2741_v24, %v67_v2 }
 0x1a8   :  { %v411_v7 = vpop.f32.mrf.mxu3 }
 0x1a9   :  { %v328_v8 = vpop.f32.mrf.mxu1  ;;  %v412_v13 = vadd.f32 %v411_v7, %v382_v6  ;;  %v2747_v27 = vpop.f32.mrf.mxu0  ;;  %v108_v6 = vld [vmem:[%s3863_s4 + $0x18] sm:$0xff] }
 0x1aa   :  { %453 = vmatpush.xpose.msrb.mxu0 %v328_v8  ;;  %v420_v31 = vmul.f32 %v2747_v27, %v52_v28  ;;  %v424_v39 = vmul.f32 %v2747_v27, %v56_v38  ;;  %v428_v47 = vmul.f32 %v2747_v27, %v60_v46  ;;  %v432_v54 = vmul.f32 %v2747_v27, %v64_v53  ;;  %v68_v7 = vld [vmem:[%s3862_s3 + $0x98] sm:$0xff] }
 0x1ab   :  { %v72_v38 = vld [vmem:[%s3862_s3 + $0xb8] sm:$0xff] }
 0x1ae   :  { %454 = vmatpush.xpose.msrb.mxu0 %v325_v5 }
 0x1b0   :  { %v414_v11 = vpop.f32.mrf.mxu3 }
 0x1b1   :  { %v415_v12 = vadd.f32 %v414_v11, %v385_v10  ;;  %v436_v11 = vmul.f32 %v2747_v27, %v68_v7 }
 0x1b2   :  { %455 = vmatpush.xpose.msrb.mxu0 %v322_v3 }
 0x1b3   :  { %991 = vmatpush.msrb.mxu1 %v415_v12 }
 0x1b5   :  { %992 = vmatpush.msrb.mxu1 %v412_v13  ;;  %v109_v13 = vld [vmem:[%s3863_s4 + $0x20] sm:$0xff] }
 0x1b6   :  { %456 = vmatpush.xpose.msrb.mxu0 %v319_v0 }
 0x1b7   :  { %993 = vmatpush.msrb.mxu1 %v409_v16 }
 0x1b9   :  { %994 = vmatpush.msrb.mxu1 %v406_v17  ;;  %457 = vmatmul.f32.vlgmr.msrb.gmra.mxu0 %v417_v18  ;;  %v437_v18 = vmul.f32 %v2729_v9, %v69_v15 }
 0x1c1   :  { %460 = vmatmul.f32.gmra.mxu0 %v418_v23  ;;  %v110_v23 = vld [vmem:[%s3863_s4 + $0x28] sm:$0xff] }
 0x1c9   :  { %463 = vmatmul.f32.gmra.mxu0 %v419_v26 }
 0x1d1   :  { %466 = vmatmul.f32.gmra.mxu0 %v420_v31  ;;  %v438_v31 = vmul.f32 %v2735_v21, %v70_v25 }
 0x1d9   :  { %469 = vmatmul.f32.gmra.mxu0 %v421_v33  ;;  %v71_v33 = vld [vmem:[%s3862_s3 + $0xb0] sm:$0xff] }
 0x1da   :  { %v439_v36 = vmul.f32 %v2741_v24, %v71_v33 }
 0x1e1   :  { %472 = vmatmul.f32.gmra.mxu0 %v422_v35 }
 0x1e9   :  { %475 = vmatmul.f32.gmra.mxu0 %v423_v37  ;;  %v112_v37 = vld [vmem:[%s3863_s4 + $0x38] sm:$0xff] }
 0x1f1   :  { %478 = vmatmul.f32.gmra.mxu0 %v424_v39 }
 0x1f9   :  { %481 = vmatmul.f32.gmra.mxu0 %v425_v41  ;;  %v440_v41 = vmul.f32 %v2747_v27, %v72_v38 }
 0x201   :  { %484 = vmatmul.f32.gmra.mxu0 %v426_v43 }
 0x209   :  { %487 = vmatmul.f32.gmra.mxu0 %v427_v45 }
 0x211   :  { %490 = vmatmul.f32.gmra.mxu0 %v428_v47 }
 0x219   :  { %493 = vmatmul.f32.gmra.mxu0 %v429_v49 }
 0x221   :  { %496 = vmatmul.f32.gmra.mxu0 %v430_v20  ;;  %v113_v20 = vld [vmem:[%s3863_s4 + $0x40] sm:$0xff] }
 0x229   :  { %499 = vmatmul.f32.gmra.mxu0 %v431_v52 }
 0x231   :  { %502 = vmatmul.f32.gmra.mxu0 %v432_v54 }
 0x236   :  { %v458_v57 = vpop.f32.mrf.mxu0 }
 0x237   :  { %v2807_v58 = vadd.f32 %v458_v57, %v105_v55 }
 0x239   :  { %505 = vmatmul.f32.gmra.mxu0 %v433_v59  ;;  %v547_v60 = vsel %vm546_vm14, %v2807_v58, -inf  ;;  %v114_v59 = vld [vmem:[%s3863_s4 + $0x48] sm:$0xff] }
 0x23a   :  { %548 = vmax.xlane.f32.xlu2 %v547_v60 }
 0x23e   :  { %v461_v62 = vpop.f32.mrf.mxu0 }
 0x23f   :  { %v531_v19 = vadd.f32 %v461_v62, %v106_v30 }
 0x241   :  { %508 = vmatmul.f32.gmra.mxu0 %v434_v63  ;;  %v550_v0 = vsel %vm546_vm14, %v531_v19, -inf }
 0x242   :  { %551 = vmax.xlane.f32.xlu0 %v550_v0 }
 0x246   :  { %v464_v3 = vpop.f32.mrf.mxu0 }
 0x247   :  { %v2826_v4 = vadd.f32 %v464_v3, %v107_v1  ;;  %v115_v1 = vld [vmem:[%s3863_s4 + $0x50] sm:$0xff] }
 0x249   :  { %511 = vmatmul.f32.gmra.mxu0 %v435_v29  ;;  %v553_v5 = vsel %vm546_vm14, %v2826_v4, -inf }
 0x24a   :  { %554 = vmax.xlane.f32.xlu1 %v553_v5 }
 0x24e   :  { %v467_v8 = vpop.f32.mrf.mxu0 }
 0x24f   :  { %v2837_v10 = vadd.f32 %v467_v8, %v108_v6 }
 0x251   :  { %514 = vmatmul.f32.gmra.mxu0 %v436_v11  ;;  %v556_v12 = vsel %vm546_vm14, %v2837_v10, -inf }
 0x252   :  { %557 = vmax.xlane.f32.xlu2 %v556_v12 }
 0x256   :  { %v470_v16 = vpop.f32.mrf.mxu0 }
 0x257   :  { %v2848_v17 = vadd.f32 %v470_v16, %v109_v13 }
 0x259   :  { %517 = vmatmul.f32.gmra.mxu0 %v437_v18  ;;  %v559_v22 = vsel %vm546_vm14, %v2848_v17, -inf }
 0x25a   :  { %560 = vmax.xlane.f32.xlu0 %v559_v22 }
 0x25e   :  { %v473_v26 = vpop.f32.mrf.mxu0 }
 0x25f   :  { %v2859_v28 = vadd.f32 %v473_v26, %v110_v23  ;;  %v117_v23 = vld [vmem:[%s3863_s4 + $0x60] sm:$0xff] }
 0x261   :  { %520 = vmatmul.f32.gmra.mxu0 %v438_v31  ;;  %v562_v9 = vsel %vm546_vm14, %v2859_v28, -inf }
 0x262   :  { %563 = vmax.xlane.f32.xlu1 %v562_v9 }
 0x266   :  { %v476_v34 = vpop.f32.mrf.mxu0 }
 0x267   :  { %v2870_v35 = vadd.f32 %v476_v34, %v111_v32 }
 0x269   :  { %523 = vmatmul.f32.gmra.mxu0 %v439_v36  ;;  %v565_v21 = vsel %vm546_vm14, %v2870_v35, -inf  ;;  %v118_v36 = vld [vmem:[%s3863_s4 + $0x68] sm:$0xff] }
 0x26a   :  { %566 = vmax.xlane.f32.xlu2 %v565_v21 }
 0x26e   :  { %v479_v39 = vpop.f32.mrf.mxu0 }
 0x26f   :  { %v2881_v40 = vadd.f32 %v479_v39, %v112_v37 }
 0x271   :  { %526 = vmatmul.f32.gmra.mxu0 %v440_v41  ;;  %v568_v24 = vsel %vm546_vm14, %v2881_v40, -inf }
 0x272   :  { %569 = vmax.xlane.f32.xlu1 %v568_v24 }
 0x276   :  { %v482_v42 = vpop.f32.mrf.mxu0 }
 0x277   :  { %v2894_v51 = vadd.f32 %v482_v42, %v113_v20 }
 0x27e   :  { %v485_v47 = vpop.f32.mrf.mxu0 }
 0x27f   :  { %v2906_v60 = vadd.f32 %v485_v47, %v114_v59  ;;  %v120_v47 = vld [vmem:[%s3863_s4 + $0x78] sm:$0xff] }
 0x281   :  { %v574_v0 = vsel %vm546_vm14, %v2906_v60, -inf }
 0x286   :  { %v488_v55 = vpop.f32.mrf.mxu0 }
 0x287   :  { %v2918_v3 = vadd.f32 %v488_v55, %v115_v1 }
 0x289   :  { %v577_v8 = vsel %vm546_vm14, %v2918_v3, -inf }
 0x28e   :  { %v491_v2 = vpop.f32.mrf.mxu0 }
 0x296   :  { %v494_v11 = vpop.f32.mrf.mxu0 }
 0x297   :  { %v2942_v25 = vadd.f32 %v494_v11, %v117_v23 }
 0x299   :  { %v583_v34 = vsel %vm546_vm14, %v2942_v25, -inf }
 0x2ad   :  { %v549_v43 = vpop.xlane.xlu2 %548 }
 0x2ae   :  { %v595_v44 = vsub.f32 %v2807_v58, %v549_v43  ;;  %v571_v58 = vsel %vm546_vm14, %v2894_v51, -inf  ;;  %v119_v43 = vld [vmem:[%s3863_s4 + $0x70] sm:$0xff] }
 0x2b0   :  { %v611_v45 = vmul.f32 1.442695, %v595_v44 }
 0x2b2   :  { %2398 = vpow2.f32 %v611_v45 }
 0x2b5   :  { %v552_v46 = vpop.xlane.xlu0 %551 }
 0x2b6   :  { %v596_v48 = vsub.f32 %v531_v19, %v552_v46 }
 0x2b8   :  { %v2887_v49 = vpop.eup %2398  ;;  %v613_v50 = vmul.f32 1.442695, %v596_v48 }
 0x2b9   :  { %v643_v27 = vsel %vm546_vm14, %v2887_v49, 0.0 }
 0x2ba   :  { %2400 = vpow2.f32 %v613_v50  ;;  %644 = vadd.xlane.f32.xlu0 %v643_v27 }
 0x2bd   :  { %v555_v52 = vpop.xlane.xlu1 %554 }
 0x2be   :  { %v597_v53 = vsub.f32 %v2826_v4, %v555_v52 }
 0x2c0   :  { %v2897_v54 = vpop.eup %2400  ;;  %v615_v56 = vmul.f32 1.442695, %v597_v53 }
 0x2c1   :  { %v646_v57 = vsel %vm546_vm14, %v2897_v54, 0.0 }
 0x2c2   :  { %2402 = vpow2.f32 %v615_v56  ;;  %647 = vadd.xlane.f32.xlu2 %v646_v57  ;;  %572 = vmax.xlane.f32.xlu0 %v571_v58 }
 0x2c5   :  { %v558_v30 = vpop.xlane.xlu2 %557 }
 0x2c6   :  { %v598_v61 = vsub.f32 %v2837_v10, %v558_v30  ;;  %v116_v10 = vld [vmem:[%s3863_s4 + $0x58] sm:$0xff] }
 0x2c7   :  { %v2930_v12 = vadd.f32 %v491_v2, %v116_v10 }
 0x2c8   :  { %v2909_v62 = vpop.eup %2402  ;;  %v617_v19 = vmul.f32 1.442695, %v598_v61 }
 0x2c9   :  { %v649_v63 = vsel %vm546_vm14, %v2909_v62, 0.0  ;;  %v580_v22 = vsel %vm546_vm14, %v2930_v12, -inf }
 0x2ca   :  { %2404 = vpow2.f32 %v617_v19  ;;  %650 = vadd.xlane.f32.xlu1 %v649_v63  ;;  %575 = vmax.xlane.f32.xlu2 %v574_v0 }
 0x2cd   :  { %v561_v4 = vpop.xlane.xlu0 %560 }
 0x2ce   :  { %v599_v29 = vsub.f32 %v2848_v17, %v561_v4 }
 0x2d0   :  { %v2921_v5 = vpop.eup %2404  ;;  %v619_v6 = vmul.f32 1.442695, %v599_v29 }
 0x2d1   :  { %v652_v7 = vsel %vm546_vm14, %v2921_v5, 0.0 }
 0x2d2   :  { %2406 = vpow2.f32 %v619_v6  ;;  %653 = vadd.xlane.f32.xlu0 %v652_v7  ;;  %578 = vmax.xlane.f32.xlu1 %v577_v8 }
 0x2d5   :  { %v564_v13 = vpop.xlane.xlu1 %563 }
 0x2d6   :  { %v600_v15 = vsub.f32 %v2859_v28, %v564_v13  ;;  %v497_v28 = vpop.f32.mrf.mxu0 }
 0x2d7   :  { %v2954_v21 = vadd.f32 %v497_v28, %v118_v36 }
 0x2d8   :  { %v2933_v16 = vpop.eup %2406  ;;  %v621_v17 = vmul.f32 1.442695, %v600_v15 }
 0x2d9   :  { %v655_v18 = vsel %vm546_vm14, %v2933_v16, 0.0  ;;  %v586_v42 = vsel %vm546_vm14, %v2954_v21, -inf }
 0x2da   :  { %2408 = vpow2.f32 %v621_v17  ;;  %656 = vadd.xlane.f32.xlu2 %v655_v18  ;;  %581 = vmax.xlane.f32.xlu0 %v580_v22 }
 0x2dd   :  { %v567_v26 = vpop.xlane.xlu2 %566 }
 0x2de   :  { %v601_v31 = vsub.f32 %v2870_v35, %v567_v26  ;;  %v500_v39 = vpop.f32.mrf.mxu0 }
 0x2df   :  { %v2966_v44 = vadd.f32 %v500_v39, %v119_v43 }
 0x2e0   :  { %v2945_v9 = vpop.eup %2408  ;;  %v623_v32 = vmul.f32 1.442695, %v601_v31 }
 0x2e1   :  { %v658_v33 = vsel %vm546_vm14, %v2945_v9, 0.0  ;;  %v589_v46 = vsel %vm546_vm14, %v2966_v44, -inf }
 0x2e2   :  { %2410 = vpow2.f32 %v623_v32  ;;  %659 = vadd.xlane.f32.xlu1 %v658_v33  ;;  %584 = vmax.xlane.f32.xlu2 %v583_v34 }
 0x2e5   :  { %v570_v37 = vpop.xlane.xlu1 %569 }
 0x2e6   :  { %v602_v35 = vsub.f32 %v2881_v40, %v570_v37  ;;  %v503_v48 = vpop.f32.mrf.mxu0 }
 0x2e7   :  { %v2977_v50 = vadd.f32 %v503_v48, %v120_v47 }
 0x2e8   :  { %v2957_v38 = vpop.eup %2410  ;;  %v625_v41 = vmul.f32 1.442695, %v602_v35 }
 0x2e9   :  { %v661_v24 = vsel %vm546_vm14, %v2957_v38, 0.0  ;;  %v592_v27 = vsel %vm546_vm14, %v2977_v50, -inf }
 0x2ea   :  { %2412 = vpow2.f32 %v625_v41  ;;  %662 = vadd.xlane.f32.xlu0 %v661_v24  ;;  %587 = vmax.xlane.f32.xlu1 %v586_v42 }
 0x2f0   :  { %v2968_v40 = vpop.eup %2412 }
 0x2f1   :  { %v664_v45 = vsel %vm546_vm14, %v2968_v40, 0.0 }
 0x2f2   :  { %665 = vadd.xlane.f32.xlu2 %v664_v45  ;;  %590 = vmax.xlane.f32.xlu0 %v589_v46 }
 0x2fa   :  { %593 = vmax.xlane.f32.xlu2 %v592_v27 }
 0x32d   :  { %v645_v20 = vpop.xlane.xlu0 %644 }
 0x32e   :  { %2414 = vrcp.f32 %v645_v20  ;;  %v702_v61 = vand.u32 2147483648, %v645_v20  ;;  %v700_v19 = vand.u32 2147483647, %v645_v20  ;;  %vm696_vm1 = vweird.f32 %v645_v20 }
 0x330   :  { %v703_v1 = vor.u32 1.1754944e-38, %v702_v61  ;;  %vm701_vm3 = vcmp.eq.f32.partialorder %v700_v19, 8.507059e+37 }
 0x334   :  { %v2415_v52 = vpop.eup %2414 }
 0x335   :  { %v692_v53 = vmul.f32 %v2415_v52, %v645_v20  ;;  %v648_v55 = vpop.xlane.xlu2 %647  ;;  %v573_v56 = vpop.xlane.xlu0 %572  ;;  %vm697_vm15 = vweird.f32 %v2415_v52 }
 0x336   :  { %2416 = vrcp.f32 %v648_v55  ;;  %v603_v57 = vsub.f32 %v2894_v51, %v573_v56  ;;  %vm698_vm2 = vmor %vm696_vm1, %vm697_vm15  ;;  %v717_v17 = vand.u32 2147483648, %v648_v55  ;;  %v715_v22 = vand.u32 2147483647, %v648_v55 }
 0x337   :  { %v693_v58 = vsub.f32 1.0, %v692_v53  ;;  %vm711_vm5 = vweird.f32 %v648_v55 }
 0x338   :  { %v627_v59 = vmul.f32 1.442695, %v603_v57  ;;  %v718_v26 = vor.u32 1.1754944e-38, %v717_v17  ;;  %vm716_vm7 = vcmp.eq.f32.partialorder %v715_v22, 8.507059e+37 }
 0x339   :  { %v694_v30 = vmul.f32 %v2415_v52, %v693_v58 }
 0x33a   :  { %2418 = vpow2.f32 %v627_v59 }
 0x33b   :  { %v695_v63 = vadd.f32 %v2415_v52, %v694_v30 }
 0x33c   :  { %v2417_v0 = vpop.eup %2416 }
 0x33d   :  { %v707_v2 = vmul.f32 %v2417_v0, %v648_v55  ;;  %v651_v4 = vpop.xlane.xlu1 %650  ;;  %v576_v29 = vpop.xlane.xlu2 %575  ;;  %v699_v6 = vsel %vm698_vm2, %v2415_v52, %v695_v63  ;;  %vm712_vm4 = vweird.f32 %v2417_v0 }
 0x33e   :  { %2420 = vrcp.f32 %v651_v4  ;;  %v604_v51 = vsub.f32 %v2906_v60, %v576_v29  ;;  %v704_v8 = vsel %vm701_vm3, %v703_v1, %v699_v6  ;;  %vm713_vm6 = vmor %vm711_vm5, %vm712_vm4  ;;  %v732_v24 = vand.u32 2147483648, %v651_v4 }
 0x33f   :  { %v708_v7 = vsub.f32 1.0, %v707_v2  ;;  %v705_v13 = vmul.f32 %v2887_v49, %v704_v8  ;;  %v730_v43 = vand.u32 2147483647, %v651_v4  ;;  %vm726_vm9 = vweird.f32 %v651_v4 }
 0x340   :  { %v2983_v10 = vpop.eup %2418  ;;  %v629_v11 = vmul.f32 1.442695, %v604_v51  ;;  %v733_v46 = vor.u32 1.1754944e-38, %v732_v24 }
 0x341   :  { %v709_v15 = vmul.f32 %v2417_v0, %v708_v7  ;;  %v667_v18 = vsel %vm546_vm14, %v2983_v10, 0.0  ;;  %2327 = vmatmul.msk.f32.vlgmr.msrb.gmra.mxu1 %vm546_vm14, %v705_v13  ;;  %vm731_vm11 = vcmp.eq.f32.partialorder %v730_v43, 8.507059e+37 }
 0x342   :  { %2422 = vpow2.f32 %v629_v11  ;;  %668 = vadd.xlane.f32.xlu1 %v667_v18 }
 0x343   :  { %v710_v60 = vadd.f32 %v2417_v0, %v709_v15 }
 0x344   :  { %v2421_v23 = vpop.eup %2420 }
 0x345   :  { %v722_v28 = vmul.f32 %v2421_v23, %v651_v4  ;;  %v654_v31 = vpop.xlane.xlu0 %653  ;;  %v579_v32 = vpop.xlane.xlu1 %578  ;;  %v714_v49 = vsel %vm713_vm6, %v2417_v0, %v710_v60  ;;  %vm727_vm8 = vweird.f32 %v2421_v23 }
 0x346   :  { %2424 = vrcp.f32 %v654_v31  ;;  %v605_v33 = vsub.f32 %v2918_v3, %v579_v32  ;;  %v719_v36 = vsel %vm716_vm7, %v718_v26, %v714_v49  ;;  %vm728_vm10 = vmor %vm726_vm9, %vm727_vm8  ;;  %v747_v59 = vand.u32 2147483648, %v654_v31 }
 0x347   :  { %v723_v34 = vsub.f32 1.0, %v722_v28  ;;  %v720_v39 = vmul.f32 %v2897_v54, %v719_v36  ;;  %v745_v61 = vand.u32 2147483647, %v654_v31  ;;  %vm741_vm13 = vweird.f32 %v654_v31 }
 0x348   :  { %v2990_v37 = vpop.eup %2422  ;;  %v631_v35 = vmul.f32 1.442695, %v605_v33  ;;  %v748_v63 = vor.u32 1.1754944e-38, %v747_v59 }
 0x349   :  { %v724_v41 = vmul.f32 %v2421_v23, %v723_v34  ;;  %v670_v42 = vsel %vm546_vm14, %v2990_v37, 0.0  ;;  %2328 = vmatmul.msk.f32.gmra.mxu1 %vm546_vm14, %v720_v39  ;;  %vm746_vm1 = vcmp.eq.f32.partialorder %v745_v61, 8.507059e+37 }
 0x34a   :  { %2426 = vpow2.f32 %v631_v35  ;;  %671 = vadd.xlane.f32.xlu0 %v670_v42 }
 0x34b   :  { %v725_v3 = vadd.f32 %v2421_v23, %v724_v41 }
 0x34c   :  { %v2425_v45 = vpop.eup %2424 }
 0x34d   :  { %v737_v47 = vmul.f32 %v2425_v45, %v654_v31  ;;  %v657_v48 = vpop.xlane.xlu2 %656  ;;  %v582_v27 = vpop.xlane.xlu0 %581  ;;  %v729_v54 = vsel %vm728_vm10, %v2421_v23, %v725_v3  ;;  %vm742_vm12 = vweird.f32 %v2425_v45 }
 0x34e   :  { %2428 = vrcp.f32 %v657_v48  ;;  %v606_v20 = vsub.f32 %v2930_v12, %v582_v27  ;;  %v734_v53 = vsel %vm731_vm11, %v733_v46, %v729_v54  ;;  %vm743_vm15 = vmor %vm741_vm13, %vm742_vm12  ;;  %v762_v13 = vand.u32 2147483648, %v657_v48 }
 0x34f   :  { %v738_v52 = vsub.f32 1.0, %v737_v47  ;;  %v735_v57 = vmul.f32 %v2909_v62, %v734_v53  ;;  %v760_v17 = vand.u32 2147483647, %v657_v48  ;;  %vm756_vm3 = vweird.f32 %v657_v48 }
 0x350   :  { %v2997_v55 = vpop.eup %2426  ;;  %v633_v56 = vmul.f32 1.442695, %v606_v20  ;;  %v763_v22 = vor.u32 1.1754944e-38, %v762_v13 }
 0x351   :  { %v739_v58 = vmul.f32 %v2425_v45, %v738_v52  ;;  %v673_v30 = vsel %vm546_vm14, %v2997_v55, 0.0  ;;  %2329 = vmatmul.msk.f32.gmra.mxu1 %vm546_vm14, %v735_v57  ;;  %vm761_vm5 = vcmp.eq.f32.partialorder %v760_v17, 8.507059e+37  ;;  %v3037_v17 = vpop.f32.mrf.mxu0 }
 0x352   :  { %2430 = vpow2.f32 %v633_v56  ;;  %674 = vadd.xlane.f32.xlu1 %v673_v30 }
 0x353   :  { %v740_v12 = vadd.f32 %v2425_v45, %v739_v58 }
 0x354   :  { %v2429_v19 = vpop.eup %2428 }
 0x355   :  { %v752_v0 = vmul.f32 %v2429_v19, %v657_v48  ;;  %v660_v1 = vpop.xlane.xlu1 %659  ;;  %v585_v2 = vpop.xlane.xlu2 %584  ;;  %v744_v62 = vsel %vm743_vm15, %v2425_v45, %v740_v12  ;;  %vm757_vm2 = vweird.f32 %v2429_v19 }
 0x356   :  { %2432 = vrcp.f32 %v660_v1  ;;  %v607_v4 = vsub.f32 %v2942_v25, %v585_v2  ;;  %v749_v6 = vsel %vm746_vm1, %v748_v63, %v744_v62  ;;  %vm758_vm4 = vmor %vm756_vm3, %vm757_vm2  ;;  %v777_v35 = vand.u32 2147483648, %v660_v1 }
 0x357   :  { %v753_v29 = vsub.f32 1.0, %v752_v0  ;;  %v750_v8 = vmul.f32 %v2921_v5, %v749_v6  ;;  %v775_v41 = vand.u32 2147483647, %v660_v1  ;;  %vm771_vm7 = vweird.f32 %v660_v1 }
 0x358   :  { %v3004_v51 = vpop.eup %2430  ;;  %v635_v7 = vmul.f32 1.442695, %v607_v4  ;;  %v778_v42 = vor.u32 1.1754944e-38, %v777_v35 }
 0x359   :  { %v754_v11 = vmul.f32 %v2429_v19, %v753_v29  ;;  %v676_v15 = vsel %vm546_vm14, %v3004_v51, 0.0  ;;  %2330 = vmatmul.msk.f32.gmra.mxu1 %vm546_vm14, %v750_v8  ;;  %vm776_vm9 = vcmp.eq.f32.partialorder %v775_v41, 8.507059e+37 }
 0x35a   :  { %2434 = vpow2.f32 %v635_v7  ;;  %677 = vadd.xlane.f32.xlu2 %v676_v15 }
 0x35b   :  { %v755_v25 = vadd.f32 %v2429_v19, %v754_v11 }
 0x35c   :  { %v2433_v18 = vpop.eup %2432 }
 0x35d   :  { %v767_v60 = vmul.f32 %v2433_v18, %v660_v1  ;;  %v663_v23 = vpop.xlane.xlu0 %662  ;;  %v588_v26 = vpop.xlane.xlu1 %587  ;;  %v759_v5 = vsel %vm758_vm4, %v2429_v19, %v755_v25  ;;  %vm772_vm6 = vweird.f32 %v2433_v18 }
 0x35e   :  { %2436 = vrcp.f32 %v663_v23  ;;  %v608_v28 = vsub.f32 %v2954_v21, %v588_v26  ;;  %v764_v32 = vsel %vm761_vm5, %v763_v22, %v759_v5  ;;  %vm773_vm8 = vmor %vm771_vm7, %vm772_vm6  ;;  %v792_v54 = vand.u32 2147483648, %v663_v23  ;;  %v3039_v25 = vpop.f32.mrf.mxu0 }
 0x35f   :  { %v768_v31 = vsub.f32 1.0, %v767_v60  ;;  %v765_v34 = vmul.f32 %v2933_v16, %v764_v32  ;;  %v790_v57 = vand.u32 2147483647, %v663_v23  ;;  %vm786_vm11 = vweird.f32 %v663_v23 }
 0x360   :  { %v3011_v49 = vpop.eup %2434  ;;  %v637_v33 = vmul.f32 1.442695, %v608_v28  ;;  %v793_v59 = vor.u32 1.1754944e-38, %v792_v54 }
 0x361   :  { %v769_v36 = vmul.f32 %v2433_v18, %v768_v31  ;;  %v679_v39 = vsel %vm546_vm14, %v3011_v49, 0.0  ;;  %2331 = vmatmul.msk.f32.gmra.mxu1 %vm546_vm14, %v765_v34  ;;  %vm791_vm13 = vcmp.eq.f32.partialorder %v790_v57, 8.507059e+37 }
 0x362   :  { %2438 = vpow2.f32 %v637_v33  ;;  %680 = vadd.xlane.f32.xlu0 %v679_v39 }
 0x363   :  { %v770_v21 = vadd.f32 %v2433_v18, %v769_v36 }
 0x364   :  { %v2437_v24 = vpop.eup %2436 }
 0x365   :  { %v782_v43 = vmul.f32 %v2437_v24, %v663_v23  ;;  %v666_v3 = vpop.xlane.xlu2 %665  ;;  %v591_v45 = vpop.xlane.xlu0 %590  ;;  %v774_v16 = vsel %vm773_vm8, %v2433_v18, %v770_v21  ;;  %vm787_vm10 = vweird.f32 %v2437_v24 }
 0x366   :  { %2440 = vrcp.f32 %v666_v3  ;;  %v609_v46 = vsub.f32 %v2966_v44, %v591_v45  ;;  %v779_v48 = vsel %vm776_vm9, %v778_v42, %v774_v16  ;;  %vm788_vm12 = vmor %vm786_vm11, %vm787_vm10  ;;  %v807_v2 = vand.u32 2147483648, %v666_v3  ;;  %v3041_v18 = vpop.f32.mrf.mxu0 }
 0x367   :  { %v783_v47 = vsub.f32 1.0, %v782_v43  ;;  %v780_v52 = vmul.f32 %v2945_v9, %v779_v48  ;;  %v805_v6 = vand.u32 2147483647, %v666_v3  ;;  %vm801_vm1 = vweird.f32 %v666_v3 }
 0x368   :  { %v3018_v27 = vpop.eup %2438  ;;  %v639_v20 = vmul.f32 1.442695, %v609_v46  ;;  %v808_v7 = vor.u32 1.1754944e-38, %v807_v2 }
 0x369   :  { %v784_v53 = vmul.f32 %v2437_v24, %v783_v47  ;;  %v682_v56 = vsel %vm546_vm14, %v3018_v27, 0.0  ;;  %2332 = vmatmul.msk.f32.gmra.mxu1 %vm546_vm14, %v780_v52  ;;  %vm806_vm3 = vcmp.eq.f32.partialorder %v805_v6, 8.507059e+37 }
 0x36a   :  { %2442 = vpow2.f32 %v639_v20  ;;  %683 = vadd.xlane.f32.xlu1 %v682_v56 }
 0x36b   :  { %v785_v44 = vadd.f32 %v2437_v24, %v784_v53 }
 0x36c   :  { %v2441_v58 = vpop.eup %2440 }
 0x36d   :  { %v797_v30 = vmul.f32 %v2441_v58, %v666_v3  ;;  %v594_v61 = vpop.xlane.xlu2 %593  ;;  %v789_v12 = vsel %vm788_vm12, %v2437_v24, %v785_v44  ;;  %vm802_vm15 = vweird.f32 %v2441_v58 }
 0x36e   :  { %v610_v9 = vsub.f32 %v2977_v50, %v594_v61  ;;  %v794_v19 = vsel %vm791_vm13, %v793_v59, %v789_v12  ;;  %vm803_vm2 = vmor %vm801_vm1, %vm802_vm15  ;;  %v3043_v23 = vpop.f32.mrf.mxu0 }
 0x36f   :  { %v798_v63 = vsub.f32 1.0, %v797_v30  ;;  %v795_v0 = vmul.f32 %v2957_v38, %v794_v19 }
 0x370   :  { %v3026_v1 = vpop.eup %2442  ;;  %v641_v62 = vmul.f32 1.442695, %v610_v9 }
 0x371   :  { %v799_v4 = vmul.f32 %v2441_v58, %v798_v63  ;;  %v685_v29 = vsel %vm546_vm14, %v3026_v1, 0.0  ;;  %2333 = vmatmul.msk.f32.gmra.mxu1 %vm546_vm14, %v795_v0 }
 0x372   :  { %2444 = vpow2.f32 %v641_v62  ;;  %686 = vadd.xlane.f32.xlu2 %v685_v29 }
 0x373   :  { %v800_v50 = vadd.f32 %v2441_v58, %v799_v4 }
 0x375   :  { %v804_v8 = vsel %vm803_vm2, %v2441_v58, %v800_v50 }
 0x376   :  { %v809_v38 = vsel %vm806_vm3, %v808_v7, %v804_v8  ;;  %v3045_v21 = vpop.f32.mrf.mxu0 }
 0x377   :  { %v810_v11 = vmul.f32 %v2968_v40, %v809_v38 }
 0x378   :  { %v3032_v13 = vpop.eup %2444 }
 0x379   :  { %v688_v15 = vsel %vm546_vm14, %v3032_v13, 0.0  ;;  %2334 = vmatmul.msk.f32.gmra.mxu1 %vm546_vm14, %v810_v11 }
 0x37a   :  { %689 = vadd.xlane.f32.xlu0 %v688_v15 }
 0x37e   :  { %v3054_v30 = vpop.f32.mrf.mxu0 }
 0x3b5   :  { %v669_v22 = vpop.xlane.xlu1 %668 }
 0x3b6   :  { %2446 = vrcp.f32 %v669_v22  ;;  %v822_v28 = vand.u32 2147483648, %v669_v22  ;;  %v820_v32 = vand.u32 2147483647, %v669_v22  ;;  %vm816_vm5 = vweird.f32 %v669_v22 }
 0x3b8   :  { %v823_v36 = vor.u32 1.1754944e-38, %v822_v28  ;;  %vm821_vm7 = vcmp.eq.f32.partialorder %v820_v32, 8.507059e+37 }
 0x3bc   :  { %v2447_v60 = vpop.eup %2446 }
 0x3bd   :  { %v812_v40 = vmul.f32 %v2447_v60, %v669_v22  ;;  %v672_v26 = vpop.xlane.xlu0 %671  ;;  %vm817_vm4 = vweird.f32 %v2447_v60 }
 0x3be   :  { %2448 = vrcp.f32 %v672_v26  ;;  %vm818_vm6 = vmor %vm816_vm5, %vm817_vm4  ;;  %v837_v3 = vand.u32 2147483648, %v672_v26  ;;  %v835_v45 = vand.u32 2147483647, %v672_v26  ;;  %vm831_vm9 = vweird.f32 %v672_v26 }
 0x3bf   :  { %v813_v5 = vsub.f32 1.0, %v812_v40 }
 0x3c0   :  { %v838_v53 = vor.u32 1.1754944e-38, %v837_v3  ;;  %vm836_vm11 = vcmp.eq.f32.partialorder %v835_v45, 8.507059e+37 }
 0x3c1   :  { %v814_v31 = vmul.f32 %v2447_v60, %v813_v5 }
 0x3c3   :  { %v815_v33 = vadd.f32 %v2447_v60, %v814_v31 }
 0x3c4   :  { %v2449_v34 = vpop.eup %2448 }
 0x3c5   :  { %v827_v35 = vmul.f32 %v2449_v34, %v672_v26  ;;  %v675_v39 = vpop.xlane.xlu1 %674  ;;  %v819_v41 = vsel %vm818_vm6, %v2447_v60, %v815_v33  ;;  %vm832_vm8 = vweird.f32 %v2449_v34 }
 0x3c6   :  { %2450 = vrcp.f32 %v675_v39  ;;  %v824_v24 = vsel %vm821_vm7, %v823_v36, %v819_v41  ;;  %vm833_vm10 = vmor %vm831_vm9, %vm832_vm8  ;;  %v852_v61 = vand.u32 2147483648, %v675_v39  ;;  %v850_v12 = vand.u32 2147483647, %v675_v39 }
 0x3c7   :  { %v828_v42 = vsub.f32 1.0, %v827_v35  ;;  %v825_v43 = vmul.f32 %v2983_v10, %v824_v24  ;;  %vm846_vm13 = vweird.f32 %v675_v39 }
 0x3c8   :  { %vm851_vm1 = vcmp.eq.f32.partialorder %v850_v12, 8.507059e+37 }
 0x3c9   :  { %v829_v16 = vmul.f32 %v2449_v34, %v828_v42  ;;  %2335 = vmatmul.msk.f32.gmra.mxu1 %vm546_vm14, %v825_v43  ;;  %v1072_v46 = vmul.f32 %v825_v43, %v3037_v17  ;;  %v1076_v47 = vmul.f32 %v825_v43, %v3045_v21 }
 0x3cb   :  { %v1088_v48 = vsel %vm546_vm14, %v1072_v46, 0.0  ;;  %v1100_v54 = vsel %vm546_vm14, %v1076_v47, 0.0  ;;  %v830_v20 = vadd.f32 %v2449_v34, %v829_v16 }
 0x3cc   :  { %v2451_v52 = vpop.eup %2450  ;;  %1089 = vadd.xlane.f32.xlu1 %v1088_v48  ;;  %1101 = vadd.xlane.f32.xlu2 %v1100_v54 }
 0x3cd   :  { %v842_v10 = vmul.f32 %v2451_v52, %v675_v39  ;;  %v678_v56 = vpop.xlane.xlu2 %677  ;;  %v834_v57 = vsel %vm833_vm10, %v2449_v34, %v830_v20  ;;  %vm847_vm12 = vweird.f32 %v2451_v52 }
 0x3ce   :  { %2452 = vrcp.f32 %v678_v56  ;;  %v839_v44 = vsel %vm836_vm11, %v838_v53, %v834_v57  ;;  %vm848_vm15 = vmor %vm846_vm13, %vm847_vm12  ;;  %v867_v11 = vand.u32 2147483648, %v678_v56  ;;  %v865_v22 = vand.u32 2147483647, %v678_v56 }
 0x3cf   :  { %v843_v58 = vsub.f32 1.0, %v842_v10  ;;  %v840_v59 = vmul.f32 %v2990_v37, %v839_v44  ;;  %v853_v37 = vor.u32 1.1754944e-38, %v852_v61  ;;  %vm861_vm3 = vweird.f32 %v678_v56 }
 0x3d0   :  { %v868_v26 = vor.u32 1.1754944e-38, %v867_v11  ;;  %vm866_vm5 = vcmp.eq.f32.partialorder %v865_v22, 8.507059e+37 }
 0x3d1   :  { %v844_v9 = vmul.f32 %v2451_v52, %v843_v58  ;;  %2336 = vmatmul.msk.f32.gmra.mxu1 %vm546_vm14, %v840_v59  ;;  %v1073_v19 = vmul.f32 %v840_v59, %v3039_v25  ;;  %v1077_v63 = vmul.f32 %v840_v59, %v3054_v30 }
 0x3d3   :  { %v1091_v0 = vsel %vm546_vm14, %v1073_v19, 0.0  ;;  %v1103_v2 = vsel %vm546_vm14, %v1077_v63, 0.0  ;;  %v845_v62 = vadd.f32 %v2451_v52, %v844_v9 }
 0x3d4   :  { %v2453_v4 = vpop.eup %2452  ;;  %1092 = vadd.xlane.f32.xlu2 %v1091_v0  ;;  %1104 = vadd.xlane.f32.xlu0 %v1103_v2 }
 0x3d5   :  { %v857_v29 = vmul.f32 %v2453_v4, %v678_v56  ;;  %v681_v6 = vpop.xlane.xlu0 %680  ;;  %v849_v50 = vsel %vm848_vm15, %v2451_v52, %v845_v62  ;;  %vm862_vm2 = vweird.f32 %v2453_v4 }
 0x3d6   :  { %2454 = vrcp.f32 %v681_v6  ;;  %v854_v7 = vsel %vm851_vm1, %v853_v37, %v849_v50  ;;  %vm863_vm4 = vmor %vm861_vm3, %vm862_vm2  ;;  %v882_v34 = vand.u32 2147483648, %v681_v6  ;;  %v880_v35 = vand.u32 2147483647, %v681_v6  ;;  %v524_v37 = vpop.f32.mrf.mxu0 }
 0x3d7   :  { %v858_v8 = vsub.f32 1.0, %v857_v29  ;;  %v3062_v38 = vmul.f32 %v2997_v55, %v854_v7  ;;  %vm876_vm7 = vweird.f32 %v681_v6 }
 0x3d8   :  { %v883_v24 = vor.u32 1.1754944e-38, %v882_v34  ;;  %vm881_vm9 = vcmp.eq.f32.partialorder %v880_v35, 8.507059e+37 }
 0x3d9   :  { %v859_v15 = vmul.f32 %v2453_v4, %v858_v8  ;;  %2337 = vmatmul.msk.f32.gmra.mxu1 %vm546_vm14, %v3062_v38  ;;  %v1074_v12 = vmul.f32 %v3062_v38, %v3041_v18  ;;  %v1078_v7 = vmul.f32 %v3062_v38, %v524_v37 }
 0x3db   :  { %v860_v60 = vadd.f32 %v2453_v4, %v859_v15  ;;  %v3088_v15 = vpop.f32.mrf.mxu1 }
 0x3dc   :  { %v2455_v40 = vpop.eup %2454 }
 0x3dd   :  { %v872_v5 = vmul.f32 %v2455_v40, %v681_v6  ;;  %v684_v28 = vpop.xlane.xlu1 %683  ;;  %v864_v31 = vsel %vm863_vm4, %v2453_v4, %v860_v60  ;;  %vm877_vm6 = vweird.f32 %v2455_v40  ;;  %v1094_v6 = vsel %vm546_vm14, %v1074_v12, 0.0  ;;  %v1178_v12 = vld [vmem:[%s3861_s2 + $0x10] sm:$0xff] }
 0x3de   :  { %2456 = vrcp.f32 %v684_v28  ;;  %v869_v32 = vsel %vm866_vm5, %v868_v26, %v864_v31  ;;  %vm878_vm8 = vmor %vm876_vm7, %vm877_vm6  ;;  %v897_v46 = vand.u32 2147483648, %v684_v28  ;;  %v895_v47 = vand.u32 2147483647, %v684_v28  ;;  %v527_v34 = vpop.f32.mrf.mxu0 }
 0x3df   :  { %v873_v55 = vsub.f32 1.0, %v872_v5  ;;  %v3067_v33 = vmul.f32 %v3004_v51, %v869_v32  ;;  %vm891_vm11 = vweird.f32 %v684_v28 }
 0x3e0   :  { %v898_v57 = vor.u32 1.1754944e-38, %v897_v46  ;;  %vm896_vm13 = vcmp.eq.f32.partialorder %v895_v47, 8.507059e+37  ;;  %v1191_v46 = vld [vmem:[%s3861_s2 + $0x78] sm:$0xff] }
 0x3e1   :  { %v874_v36 = vmul.f32 %v2455_v40, %v873_v55  ;;  %2338 = vmatmul.msk.f32.gmra.mxu1 %vm546_vm14, %v3067_v33  ;;  %v1075_v35 = vmul.f32 %v3067_v33, %v3043_v23  ;;  %1192 = vmatpush.msrb.mxu2 %v1191_v46 }
 0x3e3   :  { %v875_v39 = vadd.f32 %v2455_v40, %v874_v36 }
 0x3e4   :  { %v2457_v41 = vpop.eup %2456 }
 0x3e5   :  { %v887_v42 = vmul.f32 %v2457_v41, %v684_v28  ;;  %v687_v43 = vpop.xlane.xlu2 %686  ;;  %v879_v3 = vsel %vm878_vm8, %v2455_v40, %v875_v39  ;;  %vm892_vm10 = vweird.f32 %v2457_v41  ;;  %v1106_v28 = vsel %vm546_vm14, %v1078_v7, 0.0 }
 0x3e6   :  { %2458 = vrcp.f32 %v687_v43  ;;  %v884_v45 = vsel %vm881_vm9, %v883_v24, %v879_v3  ;;  %vm893_vm12 = vmor %vm891_vm11, %vm892_vm10  ;;  %v912_v61 = vand.u32 2147483648, %v687_v43  ;;  %v910_v9 = vand.u32 2147483647, %v687_v43  ;;  %v3101_v24 = vpop.f32.mrf.mxu1 }
 0x3e7   :  { %v888_v51 = vsub.f32 1.0, %v887_v42  ;;  %v885_v16 = vmul.f32 %v3011_v49, %v884_v45  ;;  %vm906_vm1 = vweird.f32 %v687_v43  ;;  %v1079_v39 = vmul.f32 %v3067_v33, %v527_v34 }
 0x3e8   :  { %v913_v29 = vor.u32 1.1754944e-38, %v912_v61  ;;  %vm911_vm3 = vcmp.eq.f32.partialorder %v910_v9, 8.507059e+37  ;;  %v1177_v9 = vld [vmem:[%s3861_s2 + $0x8] sm:$0xff] }
 0x3e9   :  { %v889_v48 = vmul.f32 %v2457_v41, %v888_v51  ;;  %2339 = vmatmul.msk.f32.gmra.mxu1 %vm546_vm14, %v885_v16  ;;  %v1084_v54 = vmul.f32 %v885_v16, %v3045_v21  ;;  %v1080_v20 = vmul.f32 %v885_v16, %v3037_v17  ;;  %v1109_v3 = vsel %vm546_vm14, %v1079_v39, 0.0 }
 0x3eb   :  { %v1124_v52 = vsel %vm546_vm14, %v1084_v54, 0.0  ;;  %v1112_v53 = vsel %vm546_vm14, %v1080_v20, 0.0  ;;  %v890_v10 = vadd.f32 %v2457_v41, %v889_v48  ;;  %v1190_v48 = vld [vmem:[%s3861_s2 + $0x70] sm:$0xff]  ;;  %v1189_v54 = vld [vmem:[%s3861_s2 + $0x68] sm:$0xff]  ;;  %v1188_v20 = vld [vmem:[%s3861_s2 + $0x60] sm:$0xff] }
 0x3ec   :  { %v2459_v56 = vpop.eup %2458  ;;  %1125 = vadd.xlane.f32.xlu1 %v1124_v52  ;;  %1113 = vadd.xlane.f32.xlu0 %v1112_v53  ;;  %v1187_v52 = vld [vmem:[%s3861_s2 + $0x58] sm:$0xff] }
 0x3ed   :  { %v902_v49 = vmul.f32 %v2459_v56, %v687_v43  ;;  %v690_v44 = vpop.xlane.xlu0 %689  ;;  %v894_v58 = vsel %vm893_vm12, %v2457_v41, %v890_v10  ;;  %vm907_vm15 = vweird.f32 %v2459_v56  ;;  %v1097_v43 = vsel %vm546_vm14, %v1075_v35, 0.0  ;;  %1193 = vmatpush.msrb.mxu2 %v1190_v48  ;;  %v1186_v10 = vld [vmem:[%s3861_s2 + $0x50] sm:$0xff] }
 0x3ee   :  { %2460 = vrcp.f32 %v690_v44  ;;  %v899_v21 = vsel %vm896_vm13, %v898_v57, %v894_v58  ;;  %vm908_vm2 = vmor %vm906_vm1, %vm907_vm15  ;;  %v927_v22 = vand.u32 2147483648, %v690_v44  ;;  %v925_v60 = vand.u32 2147483647, %v690_v44  ;;  %v3107_v51 = vpop.f32.mrf.mxu1  ;;  %v1184_v57 = vld [vmem:[%s3861_s2 + $0x40] sm:$0xff]  ;;  %v1182_v58 = vld [vmem:[%s3861_s2 + $0x30] sm:$0xff] }
 0x3ef   :  { %v903_v59 = vsub.f32 1.0, %v902_v49  ;;  %v900_v17 = vmul.f32 %v3018_v27, %v899_v21  ;;  %vm921_vm5 = vweird.f32 %v690_v44  ;;  %1194 = vmatpush.msrb.mxu2 %v1189_v54  ;;  %v1183_v49 = vld [vmem:[%s3861_s2 + $0x38] sm:$0xff]  ;;  %v1181_v21 = vld [vmem:[%s3861_s2 + $0x28] sm:$0xff] }
 0x3f0   :  { %vm926_vm7 = vcmp.eq.f32.partialorder %v925_v60, 8.507059e+37  ;;  %v3192_v60 = vld [vmem:[%s3862_s3 + $0x1c0] ss:$0 sm:$0xff] }
 0x3f1   :  { %v904_v19 = vmul.f32 %v2459_v56, %v903_v59  ;;  %2340 = vmatmul.msk.f32.gmra.mxu1 %vm546_vm14, %v900_v17  ;;  %v1081_v63 = vmul.f32 %v900_v17, %v3039_v25  ;;  %v1085_v0 = vmul.f32 %v900_v17, %v3054_v30  ;;  %1195 = vmatpush.msrb.mxu2 %v1188_v20  ;;  %v1180_v59 = vld [vmem:[%s3861_s2 + $0x20] sm:$0xff]  ;;  %v1179_v17 = vld [vmem:[%s3861_s2 + $0x18] sm:$0xff] }
 0x3f3   :  { %v1115_v2 = vsel %vm546_vm14, %v1081_v63, 0.0  ;;  %v1127_v62 = vsel %vm546_vm14, %v1085_v0, 0.0  ;;  %v905_v4 = vadd.f32 %v2459_v56, %v904_v19  ;;  %1196 = vmatpush.msrb.mxu2 %v1187_v52  ;;  %v1176_v19 = vld [vmem:[%s3861_s2] sm:$0xff] }
 0x3f4   :  { %v2461_v27 = vpop.eup %2460  ;;  %1116 = vadd.xlane.f32.xlu1 %v1115_v2  ;;  %1128 = vadd.xlane.f32.xlu2 %v1127_v62 }
 0x3f5   :  { %v917_v50 = vmul.f32 %v2461_v27, %v690_v44  ;;  %1095 = vadd.xlane.f32.xlu0 %v1094_v6  ;;  %v909_v25 = vsel %vm908_vm2, %v2459_v56, %v905_v4  ;;  %vm922_vm4 = vweird.f32 %v2461_v27  ;;  %1197 = vmatpush.msrb.mxu2 %v1186_v10  ;;  %v1185_v56 = vld [vmem:[%s3861_s2 + $0x48] sm:$0xff]  ;;  %v3166_v4 = vld [vmem:[%s3862_s3 + $0xe0] sm:$0xff]  ;;  %v3247_v10 = vld [vmem:[%s3862_s3 + $0xd0] sm:$0xff] }
 0x3f6   :  { %v914_v30 = vsel %vm911_vm3, %v913_v29, %v909_v25  ;;  %vm923_vm6 = vmor %vm921_vm5, %vm922_vm4  ;;  %v3109_v33 = vpop.f32.mrf.mxu1  ;;  %v3173_v29 = vld [vmem:[%s3862_s3 + $0xc0] sm:$0xff] }
 0x3f7   :  { %v918_v8 = vsub.f32 1.0, %v917_v50  ;;  %v915_v11 = vmul.f32 %v3026_v1, %v914_v30  ;;  %v928_v1 = vor.u32 1.1754944e-38, %v927_v22  ;;  %1198 = vmatpush.msrb.mxu2 %v1185_v56  ;;  %v3178_v6 = vld [vmem:[%s3862_s3 + $0x100] sm:$0xff]  ;;  %v1044_v25 = vmul.f32 %v3088_v15, %v3173_v29  ;;  %v3252_v56 = vld [vmem:[%s3862_s3 + $0x110] sm:$0xff] }
 0x3f9   :  { %v919_v40 = vmul.f32 %v2461_v27, %v918_v8  ;;  %2341 = vmatmul.msk.f32.gmra.mxu1 %vm546_vm14, %v915_v11  ;;  %v1082_v26 = vmul.f32 %v915_v11, %v3041_v18  ;;  %v1086_v5 = vmul.f32 %v915_v11, %v524_v37  ;;  %1199 = vmatpush.msrb.mxu2 %v1184_v57  ;;  %v3187_v11 = vld [vmem:[%s3862_s3 + $0x120] sm:$0xff] }
 0x3fb   :  { %v1118_v31 = vsel %vm546_vm14, %v1082_v26, 0.0  ;;  %v1130_v38 = vsel %vm546_vm14, %v1086_v5, 0.0  ;;  %v920_v32 = vadd.f32 %v2461_v27, %v919_v40  ;;  %1200 = vmatpush.msrb.mxu2 %v1183_v49  ;;  %v3197_v40 = vld [vmem:[%s3862_s3 + $0xe8] sm:$0xff]  ;;  %v3202_v26 = vld [vmem:[%s3862_s3 + $0x1c1] ss:$0 sm:$0xff] }
 0x3fc   :  { %1119 = vadd.xlane.f32.xlu2 %v1118_v31  ;;  %1107 = vadd.xlane.f32.xlu1 %v1106_v28 }
 0x3fd   :  { %1131 = vadd.xlane.f32.xlu0 %v1130_v38  ;;  %v924_v55 = vsel %vm923_vm6, %v2461_v27, %v920_v32  ;;  %1201 = vmatpush.msrb.mxu2 %v1182_v58  ;;  %v3208_v38 = vld [vmem:[%s3862_s3 + $0xc8] sm:$0xff] }
 0x3fe   :  { %v929_v36 = vsel %vm926_vm7, %v928_v1, %v924_v55  ;;  %v3213_v32 = vld [vmem:[%s3862_s3 + $0x108] sm:$0xff] }
 0x3ff   :  { %v930_v18 = vmul.f32 %v3032_v13, %v929_v36  ;;  %1202 = vmatpush.msrb.mxu2 %v1181_v21 }
 0x401   :  { %2342 = vmatmul.msk.f32.gmra.mxu1 %vm546_vm14, %v930_v18  ;;  %v1083_v41 = vmul.f32 %v930_v18, %v3043_v23  ;;  %v1087_v13 = vmul.f32 %v930_v18, %v527_v34  ;;  %v1008_v23 = vpop.f32.mrf.mxu1  ;;  %1203 = vmatpush.msrb.mxu2 %v1180_v59  ;;  %v3220_v34 = vld [vmem:[%s3862_s3 + $0x1c2] ss:$0 sm:$0xff]  ;;  %v1045_v18 = vmul.f32 %v3101_v24, %v3208_v38 }
 0x402   :  { %v1048_v50 = vmul.f32 %v1008_v23, %v3166_v4  ;;  %v3240_v23 = vld [vmem:[%s3862_s3 + $0xf0] sm:$0xff]  ;;  %v1046_v59 = vmul.f32 %v3107_v51, %v3247_v10 }
 0x403   :  { %v1121_v42 = vsel %vm546_vm14, %v1083_v41, 0.0  ;;  %v1133_v45 = vsel %vm546_vm14, %v1087_v13, 0.0  ;;  %1204 = vmatpush.msrb.mxu2 %v1179_v17  ;;  %v3229_v41 = vld [vmem:[%s3862_s3 + $0x1c3] ss:$0 sm:$0xff] }
 0x404   :  { %1098 = vadd.xlane.f32.xlu1 %v1097_v43  ;;  %1110 = vadd.xlane.f32.xlu2 %v1109_v3  ;;  %v1060_v22 = vadd.f32 %v1048_v50, %v1044_v25  ;;  %v3234_v3 = vld [vmem:[%s3862_s3 + $0x128] sm:$0xff] }
 0x405   :  { %1122 = vadd.xlane.f32.xlu0 %v1121_v42  ;;  %1205 = vmatpush.msrb.mxu2 %v1178_v12 }
 0x407   :  { %1206 = vmatpush.msrb.mxu2 %v1177_v9  ;;  %v3264_v9 = vld [vmem:[%s3862_s3 + $0x130] sm:$0xff] }
 0x409   :  { %v1011_v16 = vpop.f32.mrf.mxu1  ;;  %1207 = vmatpush.msrb.mxu2 %v1176_v19 }
 0x40a   :  { %v1049_v1 = vmul.f32 %v1011_v16, %v3197_v40 }
 0x40c   :  { %1134 = vadd.xlane.f32.xlu1 %v1133_v45  ;;  %v1061_v13 = vadd.f32 %v1049_v1, %v1045_v18 }
 0x411   :  { %v3114_v47 = vpop.f32.mrf.mxu1 }
 0x412   :  { %v1050_v49 = vmul.f32 %v3114_v47, %v3240_v23 }
 0x414   :  { %v1062_v19 = vadd.f32 %v1050_v49, %v1046_v59 }
 0x419   :  { %v3128_v53 = vpop.f32.mrf.mxu1 }
 0x43f   :  { %v1090_v0 = vpop.xlane.xlu1 %1089  ;;  %v1102_v2 = vpop.xlane.xlu2 %1101 }
 0x440   :  { %v1138_v55 = vmul.f32 %v3192_v60, %v1090_v0  ;;  %v1148_v35 = vmul.f32 %v3202_v26, %v1102_v2  ;;  %v3270_v2 = vld [vmem:[%s3862_s3 + $0xf8] sm:$0xff] }
 0x446   :  { %v1020_v44 = vpop.f32.mrf.mxu1 }
 0x447   :  { %v1105_v62 = vpop.xlane.xlu0 %1104  ;;  %v1052_v30 = vmul.f32 %v1020_v44, %v3178_v6  ;;  %v1093_v7 = vpop.xlane.xlu2 %1092 }
 0x448   :  { %v1139_v44 = vmul.f32 %v3192_v60, %v1093_v7  ;;  %v1149_v17 = vmul.f32 %v3202_v26, %v1105_v62  ;;  %v3282_v7 = vld [vmem:[%s3862_s3 + $0x118] sm:$0xff] }
 0x449   :  { %v1064_v5 = vadd.f32 %v1060_v22, %v1052_v30  ;;  %v3277_v30 = vld [vmem:[%s3862_s3 + $0xd8] sm:$0xff]  ;;  %v1051_v22 = vmul.f32 %v3128_v53, %v3270_v2 }
 0x44a   :  { %v1047_v1 = vmul.f32 %v3109_v33, %v3277_v30 }
 0x44c   :  { %v1063_v53 = vadd.f32 %v1051_v22, %v1047_v1  ;;  %v1381_v22 = vld [vmem:[#allocation2 + $0x178] sm:$0xff]  ;;  %v1378_v1 = vld [vmem:[#allocation2 + $0x160] sm:$0xff] }
 0x44d   :  { %1402 = vmatpush.msra.mxu2 %v1381_v22 }
 0x44e   :  { %v1023_v61 = vpop.f32.mrf.mxu1 }
 0x44f   :  { %v1053_v39 = vmul.f32 %v1023_v61, %v3213_v32 }
 0x451   :  { %v1065_v48 = vadd.f32 %v1061_v13, %v1053_v39 }
 0x456   :  { %v1026_v63 = vpop.f32.mrf.mxu1 }
 0x457   :  { %v1054_v61 = vmul.f32 %v1026_v63, %v3252_v56 }
 0x45e   :  { %v3168_v27 = vpop.f32.mrf.mxu1 }
 0x45f   :  { %v1126_v37 = vpop.xlane.xlu1 %1125  ;;  %v1114_v8 = vpop.xlane.xlu0 %1113 }
 0x460   :  { %v1158_v45 = vmul.f32 %v3220_v34, %v1114_v8  ;;  %v1168_v54 = vmul.f32 %v3229_v41, %v1126_v37  ;;  %v1066_v37 = vadd.f32 %v1062_v19, %v1054_v61 }
 0x466   :  { %v1032_v15 = vpop.f32.mrf.mxu1 }
 0x467   :  { %v1056_v28 = vmul.f32 %v1032_v15, %v3187_v11  ;;  %v1117_v31 = vpop.xlane.xlu1 %1116  ;;  %v1129_v43 = vpop.xlane.xlu2 %1128 }
 0x468   :  { %v1096_v16 = vpop.xlane.xlu0 %1095  ;;  %v1159_v47 = vmul.f32 %v3220_v34, %v1117_v31  ;;  %v1169_v63 = vmul.f32 %v3229_v41, %v1129_v43 }
 0x469   :  { %v1068_v36 = vadd.f32 %v1064_v5, %v1056_v28  ;;  %v1140_v15 = vmul.f32 %v3192_v60, %v1096_v16 }
 0x46b   :  { %v1142_v42 = vadd.f32 %v1138_v55, %v1068_v36  ;;  %v1055_v55 = vmul.f32 %v3168_v27, %v3282_v7 }
 0x46d   :  { %v1152_v24 = vadd.f32 %v1148_v35, %v1142_v42  ;;  %v3295_v35 = vld [vmem:[%s3862_s3 + $0x138] sm:$0xff]  ;;  %v1067_v13 = vadd.f32 %v1063_v53, %v1055_v55 }
 0x46e   :  { %v1035_v46 = vpop.f32.mrf.mxu1 }
 0x46f   :  { %v1057_v20 = vmul.f32 %v1035_v46, %v3234_v3  ;;  %v1162_v52 = vadd.f32 %v1158_v45, %v1152_v24  ;;  %v1108_v57 = vpop.xlane.xlu1 %1107  ;;  %v1120_v51 = vpop.xlane.xlu2 %1119 }
 0x470   :  { %v1132_v8 = vpop.xlane.xlu0 %1131  ;;  %v1150_v36 = vmul.f32 %v3202_v26, %v1108_v57  ;;  %v1160_v39 = vmul.f32 %v3220_v34, %v1120_v51 }
 0x471   :  { %v1069_v58 = vadd.f32 %v1065_v48, %v1057_v20  ;;  %v1172_v21 = vadd.f32 %v1168_v54, %v1162_v52  ;;  %v1170_v33 = vmul.f32 %v3229_v41, %v1132_v8 }
 0x473   :  { %v1143_v12 = vadd.f32 %v1139_v44, %v1069_v58  ;;  %1208 = vmatmul.f32.vlgmr.msrb.gmra.mxu2 %v1172_v21 }
 0x475   :  { %v1153_v0 = vadd.f32 %v1149_v17, %v1143_v12 }
 0x476   :  { %v1038_v62 = vpop.f32.mrf.mxu1 }
 0x477   :  { %v1058_v50 = vmul.f32 %v1038_v62, %v3264_v9  ;;  %v1163_v25 = vadd.f32 %v1159_v47, %v1153_v0  ;;  %v1099_v31 = vpop.xlane.xlu1 %1098  ;;  %v1111_v24 = vpop.xlane.xlu2 %1110  ;;  %v2544_v0 = vld [vmem:[%s3859_s0 + $0x10] sm:$0xff] }
 0x478   :  { %v1141_v16 = vmul.f32 %v3192_v60, %v1099_v31  ;;  %v1123_v54 = vpop.xlane.xlu0 %1122  ;;  %v1151_v20 = vmul.f32 %v3202_v26, %v1111_v24  ;;  %v2542_v60 = vld [vmem:[%s3859_s0] sm:$0xff] }
 0x479   :  { %v1070_v5 = vadd.f32 %v1066_v37, %v1058_v50  ;;  %v1173_v28 = vadd.f32 %v1169_v63, %v1163_v25  ;;  %v1161_v49 = vmul.f32 %v3220_v34, %v1123_v54  ;;  %v2543_v34 = vld [vmem:[%s3859_s0 + $0x8] sm:$0xff]  ;;  %v2545_v63 = vld [vmem:[%s3859_s0 + $0x18] sm:$0xff] }
 0x47b   :  { %v1144_v18 = vadd.f32 %v1140_v15, %v1070_v5  ;;  %1211 = vmatmul.f32.gmra.mxu2 %v1173_v28  ;;  %v1380_v15 = vld [vmem:[#allocation2 + $0x170] sm:$0xff]  ;;  %v1379_v28 = vld [vmem:[#allocation2 + $0x168] sm:$0xff] }
 0x47c   :  { %1403 = vmatpush.msra.mxu2 %v1380_v15 }
 0x47d   :  { %v1154_v42 = vadd.f32 %v1150_v36, %v1144_v18  ;;  %v1377_v36 = vld [vmem:[#allocation2 + $0x158] sm:$0xff] }
 0x47e   :  { %v1041_v43 = vpop.f32.mrf.mxu1  ;;  %1404 = vmatpush.msra.mxu2 %v1379_v28 }
 0x47f   :  { %v1059_v45 = vmul.f32 %v1041_v43, %v3295_v35  ;;  %v1164_v27 = vadd.f32 %v1160_v39, %v1154_v42  ;;  %v1135_v57 = vpop.xlane.xlu1 %1134  ;;  %v1376_v39 = vld [vmem:[#allocation2 + $0x150] sm:$0xff]  ;;  %v1375_v43 = vld [vmem:[#allocation2 + $0x148] sm:$0xff] }
 0x480   :  { %v1171_v58 = vmul.f32 %v3229_v41, %v1135_v57  ;;  %1405 = vmatpush.msra.mxu2 %v1378_v1 }
 0x481   :  { %v1071_v46 = vadd.f32 %v1067_v13, %v1059_v45  ;;  %v1174_v48 = vadd.f32 %v1170_v33, %v1164_v27  ;;  %v1374_v33 = vld [vmem:[#allocation2 + $0x140] sm:$0xff] }
 0x482   :  { %1406 = vmatpush.msra.mxu2 %v1377_v36  ;;  %v45_v27 = vld [vmem:[%s3859_s0 + $0x40] sm:$0xff] }
 0x483   :  { %v1145_v52 = vadd.f32 %v1141_v16, %v1071_v46  ;;  %1214 = vmatmul.f32.gmra.mxu2 %v1174_v48 }
 0x484   :  { %1407 = vmatpush.msra.mxu2 %v1376_v39 }
 0x485   :  { %v1155_v44 = vadd.f32 %v1151_v20, %v1145_v52  ;;  %v46_v20 = vld [vmem:[%s3859_s0 + $0x48] sm:$0xff] }
 0x486   :  { %1408 = vmatpush.msra.mxu2 %v1375_v43 }
 0x487   :  { %v1165_v21 = vadd.f32 %v1161_v49, %v1155_v44 }
 0x488   :  { %1409 = vmatpush.msra.mxu2 %v1374_v33 }
 0x489   :  { %v1175_v59 = vadd.f32 %v1171_v58, %v1165_v21  ;;  %v47_v21 = vld [vmem:[%s3859_s0 + $0x50] sm:$0xff] }
 0x48b   :  { %1217 = vmatmul.f32.gmra.mxu2 %v1175_v59 }
 0x493   :  { %2347 = vmatmul.msk.f32.vlgmr.msra.gmra.mxu2 %vm139_vm0, %v45_v27 }
 0x49b   :  { %2348 = vmatmul.msk.f32.gmra.mxu2 %vm139_vm0, %v46_v20 }
 0x4a3   :  { %2349 = vmatmul.msk.f32.gmra.mxu2 %vm139_vm0, %v47_v21 }
 0x4f6   :  { %v1209_v17 = vpop.f32.mrf.mxu2 }
 0x4f7   :  { %v3307_v61 = vadd.f32 %v2542_v60, %v1209_v17  ;;  %v48_v17 = vld [vmem:[%s3859_s0 + $0x58] sm:$0xff] }
 0x4f8   :  { %2350 = vmatmul.msk.f32.gmra.mxu2 %vm139_vm0, %v48_v17  ;;  %v1332_v60 = vld [vmem:[#allocation2 + $0x138] sm:$0xff] }
 0x4f9   :  { %v1227_v26 = vsel %vm139_vm0, %v3307_v61, 0.0  ;;  %1353 = vmatpush.msrb.mxu3 %v1332_v60 }
 0x4fa   :  { %1228 = vadd.xlane.f32.xlu2 %v1227_v26  ;;  %v1331_v26 = vld [vmem:[#allocation2 + $0x130] sm:$0xff] }
 0x4fb   :  { %1354 = vmatpush.msrb.mxu3 %v1331_v26 }
 0x4fe   :  { %v1212_v12 = vpop.f32.mrf.mxu2 }
 0x4ff   :  { %v3314_v41 = vadd.f32 %v2543_v34, %v1212_v12  ;;  %v1330_v12 = vld [vmem:[#allocation2 + $0x128] sm:$0xff]  ;;  %v1329_v34 = vld [vmem:[#allocation2 + $0x120] sm:$0xff] }
 0x500   :  { %1355 = vmatpush.msrb.mxu3 %v1330_v12 }
 0x501   :  { %v1230_v19 = vsel %vm139_vm0, %v3314_v41, 0.0 }
 0x502   :  { %1231 = vadd.xlane.f32.xlu0 %v1230_v19  ;;  %1356 = vmatpush.msrb.mxu3 %v1329_v34  ;;  %v1328_v19 = vld [vmem:[#allocation2 + $0x118] sm:$0xff] }
 0x504   :  { %1357 = vmatpush.msrb.mxu3 %v1328_v19 }
 0x506   :  { %v1215_v47 = vpop.f32.mrf.mxu2 }
 0x507   :  { %v3321_v51 = vadd.f32 %v2544_v0, %v1215_v47  ;;  %v1327_v47 = vld [vmem:[#allocation2 + $0x110] sm:$0xff]  ;;  %v1326_v0 = vld [vmem:[#allocation2 + $0x108] sm:$0xff] }
 0x508   :  { %1358 = vmatpush.msrb.mxu3 %v1327_v47 }
 0x509   :  { %v1233_v62 = vsel %vm139_vm0, %v3321_v51, 0.0 }
 0x50a   :  { %1234 = vadd.xlane.f32.xlu1 %v1233_v62  ;;  %1359 = vmatpush.msrb.mxu3 %v1326_v0  ;;  %v1325_v62 = vld [vmem:[#allocation2 + $0x100] sm:$0xff] }
 0x50c   :  { %1360 = vmatpush.msrb.mxu3 %v1325_v62 }
 0x50e   :  { %v1218_v37 = vpop.f32.mrf.mxu2 }
 0x50f   :  { %v3328_v50 = vadd.f32 %v2545_v63, %v1218_v37 }
 0x511   :  { %v1236_v25 = vsel %vm139_vm0, %v3328_v50, 0.0 }
 0x512   :  { %1237 = vadd.xlane.f32.xlu2 %v1236_v25 }
 0x56d   :  { %v1229_v8 = vpop.xlane.xlu2 %1228 }
 0x56e   :  { %v1239_v5 = vmul.f32 %v1229_v8, %v2655_v14 }
 0x570   :  { %v3334_v31 = vsub.f32 %v3307_v61, %v1239_v5 }
 0x572   :  { %v1247_v55 = vmul.f32 %v3334_v31, %v3334_v31 }
 0x574   :  { %v1251_v18 = vsel %vm139_vm0, %v1247_v55, 0.0 }
 0x575   :  { %v1232_v53 = vpop.xlane.xlu0 %1231  ;;  %1252 = vadd.xlane.f32.xlu0 %v1251_v18 }
 0x576   :  { %v1240_v42 = vmul.f32 %v1232_v53, %v2655_v14 }
 0x578   :  { %v3341_v13 = vsub.f32 %v3314_v41, %v1240_v42 }
 0x57a   :  { %v1248_v45 = vmul.f32 %v3341_v13, %v3341_v13 }
 0x57c   :  { %v1254_v24 = vsel %vm139_vm0, %v1248_v45, 0.0  ;;  %v2382_v45 = vld [vmem:[%s3859_s0 + $0x62] ss:$0 sm:$0xff] }
 0x57d   :  { %1255 = vadd.xlane.f32.xlu1 %v1254_v24  ;;  %v1235_v16 = vpop.xlane.xlu1 %1234 }
 0x57e   :  { %v1241_v46 = vmul.f32 %v1235_v16, %v2655_v14 }
 0x580   :  { %v3352_v48 = vsub.f32 %v3321_v51, %v1241_v46  ;;  %v2383_v46 = vld [vmem:[%s3859_s0 + $0x63] ss:$0 sm:$0xff] }
 0x582   :  { %v1249_v54 = vmul.f32 %v3352_v48, %v3352_v48 }
 0x584   :  { %v1257_v52 = vsel %vm139_vm0, %v1249_v54, 0.0 }
 0x585   :  { %1258 = vadd.xlane.f32.xlu2 %v1257_v52  ;;  %v1238_v57 = vpop.xlane.xlu2 %1237  ;;  %v1411_v52 = vpop.f32.mrf.mxu2 }
 0x586   :  { %v1242_v49 = vmul.f32 %v1238_v57, %v2655_v14 }
 0x588   :  { %v3363_v44 = vsub.f32 %v3328_v50, %v1242_v49 }
 0x58a   :  { %v1250_v58 = vmul.f32 %v3363_v44, %v3363_v44 }
 0x58c   :  { %v1260_v59 = vsel %vm139_vm0, %v1250_v58, 0.0 }
 0x58d   :  { %1261 = vadd.xlane.f32.xlu0 %v1260_v59  ;;  %v1414_v47 = vpop.f32.mrf.mxu2 }
 0x5e8   :  { %v1253_v37 = vpop.xlane.xlu0 %1252 }
 0x5e9   :  { %v1263_v63 = vmul.f32 %v1253_v37, %v2655_v14 }
 0x5eb   :  { %v1267_v25 = vadd.f32 1e-05, %v1263_v63 }
 0x5ed   :  { %2462 = vrsqrt.f32 %v1267_v25  ;;  %vm1277_vm9 = vweird.f32 %v1267_v25 }
 0x5f0   :  { %v1256_v8 = vpop.xlane.xlu1 %1255 }
 0x5f1   :  { %v1264_v22 = vmul.f32 %v1256_v8, %v2655_v14 }
 0x5f3   :  { %v2463_v15 = vpop.eup %2462  ;;  %v1268_v5 = vadd.f32 1e-05, %v1264_v22 }
 0x5f4   :  { %v1272_v28 = vmul.f32 %v2463_v15, %v1267_v25  ;;  %vm1278_vm8 = vweird.f32 %v2463_v15 }
 0x5f5   :  { %2464 = vrsqrt.f32 %v1268_v5  ;;  %vm1279_vm10 = vmor %vm1277_vm9, %vm1278_vm8  ;;  %vm1287_vm12 = vweird.f32 %v1268_v5 }
 0x5f6   :  { %v1273_v1 = vmul.f32 %v2463_v15, %v1272_v28 }
 0x5f8   :  { %v1274_v55 = vmul.f32 0.5, %v1273_v1  ;;  %v1259_v36 = vpop.xlane.xlu2 %1258  ;;  %v1417_v1 = vpop.f32.mrf.mxu2 }
 0x5f9   :  { %v1265_v18 = vmul.f32 %v1259_v36, %v2655_v14 }
 0x5fa   :  { %v1275_v53 = vsub.f32 1.5, %v1274_v55 }
 0x5fb   :  { %v2465_v39 = vpop.eup %2464  ;;  %v1269_v42 = vadd.f32 1e-05, %v1265_v18 }
 0x5fc   :  { %v1276_v43 = vmul.f32 %v2463_v15, %v1275_v53  ;;  %v1282_v33 = vmul.f32 %v2465_v39, %v1268_v5  ;;  %vm1288_vm11 = vweird.f32 %v2465_v39 }
 0x5fd   :  { %2466 = vrsqrt.f32 %v1269_v42  ;;  %vm1289_vm13 = vmor %vm1287_vm12, %vm1288_vm11  ;;  %vm1297_vm1 = vweird.f32 %v1269_v42 }
 0x5fe   :  { %v1280_v27 = vsel %vm1279_vm10, %v2463_v15, %v1276_v43  ;;  %v1283_v24 = vmul.f32 %v2465_v39, %v1282_v33 }
 0x5ff   :  { %v1311_v16 = vmul.f32 %v1280_v27, %v3334_v31 }
 0x600   :  { %v1284_v54 = vmul.f32 0.5, %v1283_v24  ;;  %v1262_v20 = vpop.xlane.xlu0 %1261 }
 0x601   :  { %v1266_v57 = vmul.f32 %v1262_v20, %v2655_v14  ;;  %v1316_v49 = vmul.f32 %v2382_v45, %v1311_v16 }
 0x602   :  { %v1285_v58 = vsub.f32 1.5, %v1284_v54 }
 0x603   :  { %v2467_v21 = vpop.eup %2466  ;;  %v1270_v59 = vadd.f32 1e-05, %v1266_v57  ;;  %v1321_v17 = vadd.f32 %v2383_v46, %v1316_v49 }
 0x604   :  { %v1286_v60 = vmul.f32 %v2465_v39, %v1285_v58  ;;  %v1292_v26 = vmul.f32 %v2467_v21, %v1269_v42  ;;  %vm1298_vm15 = vweird.f32 %v2467_v21  ;;  %v1420_v42 = vpop.f32.mrf.mxu2 }
 0x605   :  { %2468 = vrsqrt.f32 %v1270_v59  ;;  %2343 = vmatmul.msk.f32.vlgmr.msrb.gmra.mxu3 %vm139_vm0, %v1321_v17  ;;  %vm1299_vm2 = vmor %vm1297_vm1, %vm1298_vm15  ;;  %vm1307_vm4 = vweird.f32 %v1270_v59  ;;  %1948 = vmatpush.msrb.mxu2 %v1420_v42 }
 0x606   :  { %v1290_v31 = vsel %vm1289_vm13, %v2465_v39, %v1286_v60  ;;  %v1293_v12 = vmul.f32 %v2467_v21, %v1292_v26  ;;  %1451 = vmatpush.xpose.msra.mxu3 %v1420_v42  ;;  %v124_v60 = vld [vmem:[%s3863_s4 + $0x98] sm:$0xff] }
 0x607   :  { %v1312_v34 = vmul.f32 %v1290_v31, %v3341_v13  ;;  %1949 = vmatpush.msrb.mxu2 %v1417_v1 }
 0x608   :  { %v1294_v19 = vmul.f32 0.5, %v1293_v12 }
 0x609   :  { %v1317_v0 = vmul.f32 %v2382_v45, %v1312_v34  ;;  %1950 = vmatpush.msrb.mxu2 %v1414_v47  ;;  %v125_v34 = vld [vmem:[%s3863_s4 + $0xa0] sm:$0xff] }
 0x60a   :  { %v1295_v62 = vsub.f32 1.5, %v1294_v19  ;;  %1452 = vmatpush.xpose.msra.mxu3 %v1417_v1 }
 0x60b   :  { %v2469_v37 = vpop.eup %2468  ;;  %v1322_v63 = vadd.f32 %v2383_v46, %v1317_v0  ;;  %1951 = vmatpush.msrb.mxu2 %v1411_v52 }
 0x60c   :  { %v1296_v25 = vmul.f32 %v2467_v21, %v1295_v62  ;;  %v1302_v8 = vmul.f32 %v2469_v37, %v1270_v59  ;;  %vm1308_vm3 = vweird.f32 %v2469_v37  ;;  %v126_v62 = vld [vmem:[%s3863_s4 + $0xa8] sm:$0xff] }
 0x60d   :  { %2344 = vmatmul.msk.f32.gmra.mxu3 %vm139_vm0, %v1322_v63  ;;  %vm1309_vm5 = vmor %vm1307_vm4, %vm1308_vm3 }
 0x60e   :  { %v1300_v22 = vsel %vm1299_vm2, %v2467_v21, %v1296_v25  ;;  %v1303_v15 = vmul.f32 %v2469_v37, %v1302_v8  ;;  %1453 = vmatpush.xpose.msra.mxu3 %v1414_v47  ;;  %v127_v8 = vld [vmem:[%s3863_s4 + $0xb0] sm:$0xff] }
 0x60f   :  { %v1313_v5 = vmul.f32 %v1300_v22, %v3352_v48 }
 0x610   :  { %v1304_v28 = vmul.f32 0.5, %v1303_v15 }
 0x611   :  { %v1318_v13 = vmul.f32 %v2382_v45, %v1313_v5 }
 0x612   :  { %v1305_v55 = vsub.f32 1.5, %v1304_v28  ;;  %1454 = vmatpush.xpose.msra.mxu3 %v1411_v52  ;;  %v128_v28 = vld [vmem:[%s3863_s4 + $0xb8] sm:$0xff] }
 0x613   :  { %v1323_v36 = vadd.f32 %v2383_v46, %v1318_v13 }
 0x614   :  { %v1306_v18 = vmul.f32 %v2469_v37, %v1305_v55 }
 0x615   :  { %2345 = vmatmul.msk.f32.gmra.mxu3 %vm139_vm0, %v1323_v36 }
 0x616   :  { %v1310_v53 = vsel %vm1309_vm5, %v2469_v37, %v1306_v18 }
 0x617   :  { %v1314_v39 = vmul.f32 %v1310_v53, %v3363_v44 }
 0x619   :  { %v1319_v43 = vmul.f32 %v2382_v45, %v1314_v39 }
 0x61b   :  { %v1324_v33 = vadd.f32 %v2383_v46, %v1319_v43 }
 0x61d   :  { %2346 = vmatmul.msk.f32.gmra.mxu3 %vm139_vm0, %v1324_v33 }
 0x688   :  { %v1362_v48 = vpop.f32.mrf.mxu3 }
 0x689   :  { %v1423_v27 = vmul.f32 %v1362_v48, %v3173_v29  ;;  %v1427_v20 = vmul.f32 %v1362_v48, %v3166_v4  ;;  %v1431_v57 = vmul.f32 %v1362_v48, %v3178_v6 }
 0x68b   :  { %1455 = vmatmul.f32.vlgmr.msra.gmra.mxu3 %v1423_v27 }
 0x690   :  { %v1365_v24 = vpop.f32.mrf.mxu3 }
 0x691   :  { %v1424_v44 = vmul.f32 %v1365_v24, %v3208_v38  ;;  %v1428_v52 = vmul.f32 %v1365_v24, %v3197_v40  ;;  %v1435_v40 = vmul.f32 %v1362_v48, %v3187_v11  ;;  %v122_v11 = vld [vmem:[%s3863_s4 + $0x88] sm:$0xff] }
 0x693   :  { %1458 = vmatmul.f32.gmra.mxu3 %v1424_v44  ;;  %v129_v44 = vld [vmem:[%s3863_s4 + $0xc0] sm:$0xff] }
 0x698   :  { %v1368_v45 = vpop.f32.mrf.mxu3 }
 0x699   :  { %v1425_v16 = vmul.f32 %v1368_v45, %v3247_v10  ;;  %v1429_v29 = vmul.f32 %v1368_v45, %v3240_v23  ;;  %v1432_v10 = vmul.f32 %v1365_v24, %v3213_v32  ;;  %v1436_v23 = vmul.f32 %v1365_v24, %v3234_v3  ;;  %v121_v32 = vld [vmem:[%s3863_s4 + $0x80] sm:$0xff] }
 0x69b   :  { %1461 = vmatmul.f32.gmra.mxu3 %v1425_v16 }
 0x6a0   :  { %v1371_v46 = vpop.f32.mrf.mxu3 }
 0x6a1   :  { %v1426_v54 = vmul.f32 %v1371_v46, %v3277_v30  ;;  %v1430_v38 = vmul.f32 %v1371_v46, %v3270_v2  ;;  %v1433_v30 = vmul.f32 %v1368_v45, %v3252_v56  ;;  %v1434_v4 = vmul.f32 %v1371_v46, %v3282_v7 }
 0x6a2   :  { %v1437_v2 = vmul.f32 %v1368_v45, %v3264_v9  ;;  %v1438_v6 = vmul.f32 %v1371_v46, %v3295_v35  ;;  %v123_v35 = vld [vmem:[%s3863_s4 + $0x90] sm:$0xff] }
 0x6a3   :  { %1464 = vmatmul.f32.gmra.mxu3 %v1426_v54 }
 0x6ab   :  { %1467 = vmatmul.f32.gmra.mxu3 %v1427_v20 }
 0x6b3   :  { %1470 = vmatmul.f32.gmra.mxu3 %v1428_v52 }
 0x6bb   :  { %1473 = vmatmul.f32.gmra.mxu3 %v1429_v29 }
 0x6c3   :  { %1476 = vmatmul.f32.gmra.mxu3 %v1430_v38 }
 0x6cb   :  { %1479 = vmatmul.f32.gmra.mxu3 %v1431_v57  ;;  %v130_v57 = vld [vmem:[%s3863_s4 + $0xc8] sm:$0xff] }
 0x6d3   :  { %1482 = vmatmul.f32.gmra.mxu3 %v1432_v10 }
 0x6db   :  { %1485 = vmatmul.f32.gmra.mxu3 %v1433_v30 }
 0x6e3   :  { %1488 = vmatmul.f32.gmra.mxu3 %v1434_v4 }
 0x6eb   :  { %1491 = vmatmul.f32.gmra.mxu3 %v1435_v40 }
 0x6f3   :  { %1494 = vmatmul.f32.gmra.mxu3 %v1436_v23 }
 0x6fb   :  { %1497 = vmatmul.f32.gmra.mxu3 %v1437_v2 }
 0x703   :  { %1500 = vmatmul.f32.gmra.mxu3 %v1438_v6 }
 0x70e   :  { %v1456_v56 = vpop.f32.mrf.mxu3 }
 0x70f   :  { %v1457_v49 = vadd.f32 %v1456_v56, %v121_v32  ;;  %v131_v32 = vld [vmem:[%s3863_s4 + $0xd0] sm:$0xff] }
 0x711   :  { %v1504_v7 = vsel %vm546_vm14, %v1457_v49, -inf }
 0x712   :  { %1505 = vmax.xlane.f32.xlu1 %v1504_v7 }
 0x716   :  { %v1459_v3 = vpop.f32.mrf.mxu3 }
 0x717   :  { %v1460_v58 = vadd.f32 %v1459_v3, %v122_v11 }
 0x719   :  { %v1507_v9 = vsel %vm546_vm14, %v1460_v58, -inf }
 0x71a   :  { %1508 = vmax.xlane.f32.xlu2 %v1507_v9 }
 0x71e   :  { %v1462_v21 = vpop.f32.mrf.mxu3 }
 0x71f   :  { %v1463_v59 = vadd.f32 %v1462_v21, %v123_v35  ;;  %v132_v21 = vld [vmem:[%s3863_s4 + $0xd8] sm:$0xff] }
 0x721   :  { %v1510_v17 = vsel %vm546_vm14, %v1463_v59, -inf }
 0x722   :  { %1511 = vmax.xlane.f32.xlu0 %v1510_v17 }
 0x726   :  { %v1465_v26 = vpop.f32.mrf.mxu3 }
 0x727   :  { %v1466_v31 = vadd.f32 %v1465_v26, %v124_v60 }
 0x729   :  { %v1513_v12 = vsel %vm546_vm14, %v1466_v31, -inf }
 0x72a   :  { %1514 = vmax.xlane.f32.xlu1 %v1513_v12 }
 0x72e   :  { %v1468_v19 = vpop.f32.mrf.mxu3 }
 0x72f   :  { %v1469_v47 = vadd.f32 %v1468_v19, %v125_v34 }
 0x731   :  { %v1516_v0 = vsel %vm546_vm14, %v1469_v47, -inf }
 0x732   :  { %1517 = vmax.xlane.f32.xlu2 %v1516_v0 }
 0x736   :  { %v1471_v37 = vpop.f32.mrf.mxu3 }
 0x737   :  { %v3433_v63 = vadd.f32 %v1471_v37, %v126_v62 }
 0x739   :  { %v1519_v25 = vsel %vm546_vm14, %v3433_v63, -inf }
 0x73a   :  { %1520 = vmax.xlane.f32.xlu0 %v1519_v25 }
 0x73e   :  { %v1474_v22 = vpop.f32.mrf.mxu3 }
 0x73f   :  { %v3440_v15 = vadd.f32 %v1474_v22, %v127_v8 }
 0x741   :  { %v1522_v5 = vsel %vm546_vm14, %v3440_v15, -inf }
 0x742   :  { %1523 = vmax.xlane.f32.xlu1 %v1522_v5 }
 0x746   :  { %v1477_v1 = vpop.f32.mrf.mxu3 }
 0x747   :  { %v3447_v13 = vadd.f32 %v1477_v1, %v128_v28  ;;  %v134_v28 = vld [vmem:[%s3863_s4 + $0xe8] sm:$0xff] }
 0x749   :  { %v1525_v55 = vsel %vm546_vm14, %v3447_v13, -inf }
 0x74a   :  { %1526 = vmax.xlane.f32.xlu0 %v1525_v55 }
 0x74e   :  { %v1480_v36 = vpop.f32.mrf.mxu3 }
 0x74f   :  { %v3458_v45 = vadd.f32 %v1480_v36, %v129_v44  ;;  %v136_v44 = vld [vmem:[%s3863_s4 + $0xf8] sm:$0xff] }
 0x751   :  { %v1528_v29 = vsel %vm546_vm14, %v3458_v45, -inf }
 0x756   :  { %v1483_v43 = vpop.f32.mrf.mxu3 }
 0x757   :  { %v3469_v10 = vadd.f32 %v1483_v43, %v130_v57  ;;  %v135_v43 = vld [vmem:[%s3863_s4 + $0xf0] sm:$0xff] }
 0x759   :  { %v1531_v6 = vsel %vm546_vm14, %v3469_v10, -inf }
 0x75e   :  { %v1486_v20 = vpop.f32.mrf.mxu3 }
 0x766   :  { %v1489_v56 = vpop.f32.mrf.mxu3 }
 0x767   :  { %v3491_v17 = vadd.f32 %v1489_v56, %v132_v21 }
 0x769   :  { %v1537_v19 = vsel %vm546_vm14, %v3491_v17, -inf }
 0x785   :  { %v1506_v18 = vpop.xlane.xlu1 %1505 }
 0x786   :  { %v1552_v53 = vsub.f32 %v1457_v49, %v1506_v18  ;;  %v3480_v49 = vadd.f32 %v1486_v20, %v131_v32 }
 0x788   :  { %v1568_v39 = vmul.f32 1.442695, %v1552_v53  ;;  %v1534_v9 = vsel %vm546_vm14, %v3480_v49, -inf }
 0x78a   :  { %2470 = vpow2.f32 %v1568_v39 }
 0x78d   :  { %v1509_v42 = vpop.xlane.xlu2 %1508 }
 0x78e   :  { %v1553_v33 = vsub.f32 %v1460_v58, %v1509_v42 }
 0x790   :  { %v3451_v48 = vpop.eup %2470  ;;  %v1570_v27 = vmul.f32 1.442695, %v1553_v33 }
 0x791   :  { %v1600_v24 = vsel %vm546_vm14, %v3451_v48, 0.0 }
 0x792   :  { %2472 = vpow2.f32 %v1570_v27  ;;  %1601 = vadd.xlane.f32.xlu2 %v1600_v24 }
 0x795   :  { %v1512_v16 = vpop.xlane.xlu0 %1511 }
 0x796   :  { %v1554_v46 = vsub.f32 %v1463_v59, %v1512_v16  ;;  %v1492_v59 = vpop.f32.mrf.mxu3 }
 0x798   :  { %v3460_v54 = vpop.eup %2472  ;;  %v1572_v52 = vmul.f32 1.442695, %v1554_v46 }
 0x799   :  { %v1603_v38 = vsel %vm546_vm14, %v3460_v54, 0.0 }
 0x79a   :  { %2474 = vpow2.f32 %v1572_v52  ;;  %1529 = vmax.xlane.f32.xlu2 %v1528_v29  ;;  %1604 = vadd.xlane.f32.xlu1 %v1603_v38 }
 0x79d   :  { %v1515_v30 = vpop.xlane.xlu1 %1514 }
 0x79e   :  { %v1555_v4 = vsub.f32 %v1466_v31, %v1515_v30  ;;  %v1495_v37 = vpop.f32.mrf.mxu3 }
 0x79f   :  { %v3515_v1 = vadd.f32 %v1495_v37, %v134_v28 }
 0x7a0   :  { %v3471_v40 = vpop.eup %2474  ;;  %v1574_v23 = vmul.f32 1.442695, %v1555_v4 }
 0x7a1   :  { %v1606_v2 = vsel %vm546_vm14, %v3471_v40, 0.0  ;;  %v1543_v39 = vsel %vm546_vm14, %v3515_v1, -inf }
 0x7a2   :  { %2476 = vpow2.f32 %v1574_v23  ;;  %1607 = vadd.xlane.f32.xlu0 %v1606_v2  ;;  %1532 = vmax.xlane.f32.xlu1 %v1531_v6 }
 0x7a5   :  { %v1518_v7 = vpop.xlane.xlu2 %1517 }
 0x7a6   :  { %v1556_v11 = vsub.f32 %v1469_v47, %v1518_v7  ;;  %v133_v47 = vld [vmem:[%s3863_s4 + $0xe0] sm:$0xff]  ;;  %v1498_v18 = vpop.f32.mrf.mxu3 }
 0x7a7   :  { %v3503_v0 = vadd.f32 %v1492_v59, %v133_v47  ;;  %v3527_v33 = vadd.f32 %v1498_v18, %v135_v43 }
 0x7a8   :  { %v3482_v3 = vpop.eup %2476  ;;  %v1576_v58 = vmul.f32 1.442695, %v1556_v11 }
 0x7a9   :  { %v1609_v35 = vsel %vm546_vm14, %v3482_v3, 0.0  ;;  %v1540_v5 = vsel %vm546_vm14, %v3503_v0, -inf  ;;  %v1546_v24 = vsel %vm546_vm14, %v3527_v33, -inf }
 0x7aa   :  { %2478 = vpow2.f32 %v1576_v58  ;;  %1535 = vmax.xlane.f32.xlu0 %v1534_v9  ;;  %1610 = vadd.xlane.f32.xlu2 %v1609_v35 }
 0x7ad   :  { %v1521_v60 = vpop.xlane.xlu0 %1520 }
 0x7ae   :  { %v1557_v26 = vsub.f32 %v3433_v63, %v1521_v60  ;;  %v1501_v16 = vpop.f32.mrf.mxu3 }
 0x7af   :  { %v3538_v46 = vadd.f32 %v1501_v16, %v136_v44 }
 0x7b0   :  { %v3494_v31 = vpop.eup %2478  ;;  %v1578_v12 = vmul.f32 1.442695, %v1557_v26 }
 0x7b1   :  { %v1612_v34 = vsel %vm546_vm14, %v3494_v31, 0.0  ;;  %v1549_v20 = vsel %vm546_vm14, %v3538_v46, -inf }
 0x7b2   :  { %2480 = vpow2.f32 %v1578_v12  ;;  %1613 = vadd.xlane.f32.xlu1 %v1612_v34  ;;  %1538 = vmax.xlane.f32.xlu2 %v1537_v19 }
 0x7b5   :  { %v1524_v62 = vpop.xlane.xlu1 %1523 }
 0x7b6   :  { %v1558_v63 = vsub.f32 %v3440_v15, %v1524_v62 }
 0x7b8   :  { %v3506_v25 = vpop.eup %2480  ;;  %v1580_v8 = vmul.f32 1.442695, %v1558_v63 }
 0x7b9   :  { %v1615_v22 = vsel %vm546_vm14, %v3506_v25, 0.0 }
 0x7ba   :  { %2482 = vpow2.f32 %v1580_v8  ;;  %1616 = vadd.xlane.f32.xlu0 %v1615_v22  ;;  %1541 = vmax.xlane.f32.xlu1 %v1540_v5 }
 0x7bd   :  { %v1527_v55 = vpop.xlane.xlu0 %1526 }
 0x7be   :  { %v1559_v15 = vsub.f32 %v3447_v13, %v1527_v55 }
 0x7c0   :  { %v3518_v36 = vpop.eup %2482  ;;  %v1582_v53 = vmul.f32 1.442695, %v1559_v15 }
 0x7c1   :  { %v1618_v42 = vsel %vm546_vm14, %v3518_v36, 0.0 }
 0x7c2   :  { %2484 = vpow2.f32 %v1582_v53  ;;  %1544 = vmax.xlane.f32.xlu0 %v1543_v39  ;;  %1619 = vadd.xlane.f32.xlu2 %v1618_v42 }
 0x7c8   :  { %v3529_v13 = vpop.eup %2484 }
 0x7c9   :  { %v1621_v27 = vsel %vm546_vm14, %v3529_v13, 0.0 }
 0x7ca   :  { %1622 = vadd.xlane.f32.xlu1 %v1621_v27  ;;  %1547 = vmax.xlane.f32.xlu2 %v1546_v24 }
 0x7d2   :  { %1550 = vmax.xlane.f32.xlu1 %v1549_v20 }
 0x805   :  { %v1602_v52 = vpop.xlane.xlu2 %1601 }
 0x806   :  { %2486 = vrcp.f32 %v1602_v52  ;;  %v1659_v2 = vand.u32 2147483648, %v1602_v52  ;;  %v1657_v56 = vand.u32 2147483647, %v1602_v52  ;;  %vm1653_vm7 = vweird.f32 %v1602_v52 }
 0x808   :  { %v1660_v58 = vor.u32 1.1754944e-38, %v1659_v2  ;;  %vm1658_vm9 = vcmp.eq.f32.partialorder %v1657_v56, 8.507059e+37 }
 0x80c   :  { %v2487_v29 = vpop.eup %2486 }
 0x80d   :  { %v1649_v38 = vmul.f32 %v2487_v29, %v1602_v52  ;;  %v1530_v57 = vpop.xlane.xlu2 %1529  ;;  %v1605_v30 = vpop.xlane.xlu1 %1604  ;;  %vm1654_vm6 = vweird.f32 %v2487_v29 }
 0x80e   :  { %v1560_v4 = vsub.f32 %v3458_v45, %v1530_v57  ;;  %2488 = vrcp.f32 %v1605_v30  ;;  %vm1655_vm8 = vmor %vm1653_vm7, %vm1654_vm6  ;;  %v1674_v19 = vand.u32 2147483648, %v1605_v30  ;;  %v1672_v63 = vand.u32 2147483647, %v1605_v30 }
 0x80f   :  { %v1650_v23 = vsub.f32 1.0, %v1649_v38  ;;  %vm1668_vm11 = vweird.f32 %v1605_v30 }
 0x810   :  { %v1584_v6 = vmul.f32 1.442695, %v1560_v4  ;;  %vm1673_vm13 = vcmp.eq.f32.partialorder %v1672_v63, 8.507059e+37 }
 0x811   :  { %v1651_v32 = vmul.f32 %v2487_v29, %v1650_v23 }
 0x812   :  { %2490 = vpow2.f32 %v1584_v6 }
 0x813   :  { %v1652_v7 = vadd.f32 %v2487_v29, %v1651_v32 }
 0x814   :  { %v2489_v11 = vpop.eup %2488 }
 0x815   :  { %v1656_v9 = vsel %vm1655_vm8, %v2487_v29, %v1652_v7  ;;  %v1664_v35 = vmul.f32 %v2489_v11, %v1605_v30  ;;  %v1608_v21 = vpop.xlane.xlu0 %1607  ;;  %v1533_v59 = vpop.xlane.xlu1 %1532  ;;  %vm1669_vm10 = vweird.f32 %v2489_v11 }
 0x816   :  { %v1661_v60 = vsel %vm1658_vm9, %v1660_v58, %v1656_v9  ;;  %2492 = vrcp.f32 %v1608_v21  ;;  %v1561_v26 = vsub.f32 %v3469_v10, %v1533_v59  ;;  %vm1670_vm12 = vmor %vm1668_vm11, %vm1669_vm10  ;;  %v1675_v10 = vor.u32 1.1754944e-38, %v1674_v19 }
 0x817   :  { %v1665_v45 = vsub.f32 1.0, %v1664_v35  ;;  %v1662_v12 = vmul.f32 %v3451_v48, %v1661_v60  ;;  %v1689_v24 = vand.u32 2147483648, %v1608_v21  ;;  %v1687_v16 = vand.u32 2147483647, %v1608_v21 }
 0x818   :  { %v3545_v34 = vpop.eup %2490  ;;  %v1586_v62 = vmul.f32 1.442695, %v1561_v26  ;;  %vm1683_vm1 = vweird.f32 %v1608_v21 }
 0x819   :  { %v1666_v47 = vmul.f32 %v2489_v11, %v1665_v45  ;;  %2351 = vmatmul.msk.f32.vlgmr.msrb.gmra.mxu2 %vm546_vm14, %v1662_v12  ;;  %v1624_v37 = vsel %vm546_vm14, %v3545_v34, 0.0  ;;  %v1690_v52 = vor.u32 1.1754944e-38, %v1689_v24  ;;  %vm1688_vm3 = vcmp.eq.f32.partialorder %v1687_v16, 8.507059e+37 }
 0x81a   :  { %1625 = vadd.xlane.f32.xlu0 %v1624_v37  ;;  %2494 = vpow2.f32 %v1586_v62 }
 0x81b   :  { %v1667_v8 = vadd.f32 %v2489_v11, %v1666_v47 }
 0x81c   :  { %v2493_v22 = vpop.eup %2492 }
 0x81d   :  { %v1679_v48 = vmul.f32 %v2493_v22, %v1608_v21  ;;  %v1536_v5 = vpop.xlane.xlu0 %1535  ;;  %v1611_v28 = vpop.xlane.xlu2 %1610  ;;  %v1671_v55 = vsel %vm1670_vm12, %v2489_v11, %v1667_v8  ;;  %vm1684_vm15 = vweird.f32 %v2493_v22 }
 0x81e   :  { %v1562_v15 = vsub.f32 %v3480_v49, %v1536_v5  ;;  %2496 = vrcp.f32 %v1611_v28  ;;  %v1676_v53 = vsel %vm1673_vm13, %v1675_v10, %v1671_v55  ;;  %vm1685_vm2 = vmor %vm1683_vm1, %vm1684_vm15  ;;  %v1704_v7 = vand.u32 2147483648, %v1611_v28 }
 0x81f   :  { %v1680_v18 = vsub.f32 1.0, %v1679_v48  ;;  %v1677_v42 = vmul.f32 %v3460_v54, %v1676_v53  ;;  %vm1698_vm5 = vweird.f32 %v1611_v28 }
 0x820   :  { %v1588_v39 = vmul.f32 1.442695, %v1562_v15  ;;  %v3552_v43 = vpop.eup %2494  ;;  %v1705_v35 = vor.u32 1.1754944e-38, %v1704_v7 }
 0x821   :  { %v1681_v27 = vmul.f32 %v2493_v22, %v1680_v18  ;;  %2352 = vmatmul.msk.f32.gmra.mxu2 %vm546_vm14, %v1677_v42  ;;  %v1627_v44 = vsel %vm546_vm14, %v3552_v43, 0.0 }
 0x822   :  { %2498 = vpow2.f32 %v1588_v39  ;;  %1628 = vadd.xlane.f32.xlu2 %v1627_v44 }
 0x823   :  { %v1682_v49 = vadd.f32 %v2493_v22, %v1681_v27 }
 0x824   :  { %v2497_v20 = vpop.eup %2496 }
 0x825   :  { %v1694_v29 = vmul.f32 %v2497_v20, %v1611_v28  ;;  %v1539_v54 = vpop.xlane.xlu2 %1538  ;;  %v1614_v38 = vpop.xlane.xlu1 %1613  ;;  %v1686_v57 = vsel %vm1685_vm2, %v2493_v22, %v1682_v49  ;;  %vm1699_vm4 = vweird.f32 %v2497_v20 }
 0x826   :  { %v1563_v30 = vsub.f32 %v3491_v17, %v1539_v54  ;;  %2500 = vrcp.f32 %v1614_v38  ;;  %v1691_v23 = vsel %vm1688_vm3, %v1690_v52, %v1686_v57  ;;  %v1702_v17 = vand.u32 2147483647, %v1611_v28  ;;  %vm1700_vm6 = vmor %vm1698_vm5, %vm1699_vm4 }
 0x827   :  { %v1695_v4 = vsub.f32 1.0, %v1694_v29  ;;  %v1692_v32 = vmul.f32 %v3471_v40, %v1691_v23  ;;  %v1719_v63 = vand.u32 2147483648, %v1614_v38  ;;  %v1717_v22 = vand.u32 2147483647, %v1614_v38 }
 0x828   :  { %v3558_v2 = vpop.eup %2498  ;;  %v1590_v6 = vmul.f32 1.442695, %v1563_v30  ;;  %vm1703_vm7 = vcmp.eq.f32.partialorder %v1702_v17, 8.507059e+37  ;;  %vm1713_vm9 = vweird.f32 %v1614_v38 }
 0x829   :  { %v1696_v56 = vmul.f32 %v2497_v20, %v1695_v4  ;;  %v1630_v11 = vsel %vm546_vm14, %v3558_v2, 0.0  ;;  %2353 = vmatmul.msk.f32.gmra.mxu2 %vm546_vm14, %v1692_v32  ;;  %v1720_v48 = vor.u32 1.1754944e-38, %v1719_v63  ;;  %vm1718_vm11 = vcmp.eq.f32.partialorder %v1717_v22, 8.507059e+37 }
 0x82a   :  { %2502 = vpow2.f32 %v1590_v6  ;;  %1631 = vadd.xlane.f32.xlu0 %v1630_v11 }
 0x82b   :  { %v1697_v58 = vadd.f32 %v2497_v20, %v1696_v56 }
 0x82c   :  { %v2501_v9 = vpop.eup %2500 }
 0x82d   :  { %v1709_v21 = vmul.f32 %v2501_v9, %v1614_v38  ;;  %v1617_v59 = vpop.xlane.xlu0 %1616  ;;  %v1542_v60 = vpop.xlane.xlu1 %1541  ;;  %v1701_v40 = vsel %vm1700_vm6, %v2497_v20, %v1697_v58  ;;  %vm1714_vm8 = vweird.f32 %v2501_v9 }
 0x82e   :  { %2504 = vrcp.f32 %v1617_v59  ;;  %v1564_v45 = vsub.f32 %v3503_v0, %v1542_v60  ;;  %v1706_v12 = vsel %vm1703_vm7, %v1705_v35, %v1701_v40  ;;  %vm1715_vm10 = vmor %vm1713_vm9, %vm1714_vm8  ;;  %v1734_v44 = vand.u32 2147483648, %v1617_v59 }
 0x82f   :  { %v1710_v26 = vsub.f32 1.0, %v1709_v21  ;;  %v1707_v62 = vmul.f32 %v3482_v3, %v1706_v12  ;;  %vm1728_vm13 = vweird.f32 %v1617_v59 }
 0x830   :  { %v3565_v19 = vpop.eup %2502  ;;  %v1592_v47 = vmul.f32 1.442695, %v1564_v45  ;;  %v1735_v52 = vor.u32 1.1754944e-38, %v1734_v44 }
 0x831   :  { %v1711_v37 = vmul.f32 %v2501_v9, %v1710_v26  ;;  %v1633_v8 = vsel %vm546_vm14, %v3565_v19, 0.0  ;;  %2354 = vmatmul.msk.f32.gmra.mxu2 %vm546_vm14, %v1707_v62 }
 0x832   :  { %2506 = vpow2.f32 %v1592_v47  ;;  %1634 = vadd.xlane.f32.xlu1 %v1633_v8 }
 0x833   :  { %v1712_v0 = vadd.f32 %v2501_v9, %v1711_v37 }
 0x834   :  { %v2505_v10 = vpop.eup %2504 }
 0x835   :  { %v1724_v5 = vmul.f32 %v2505_v10, %v1617_v59  ;;  %v1545_v28 = vpop.xlane.xlu0 %1544  ;;  %v1620_v55 = vpop.xlane.xlu2 %1619  ;;  %v1716_v3 = vsel %vm1715_vm10, %v2501_v9, %v1712_v0  ;;  %vm1729_vm12 = vweird.f32 %v2505_v10 }
 0x836   :  { %v1565_v15 = vsub.f32 %v3515_v1, %v1545_v28  ;;  %2508 = vrcp.f32 %v1620_v55  ;;  %v1721_v53 = vsel %vm1718_vm11, %v1720_v48, %v1716_v3  ;;  %v1732_v1 = vand.u32 2147483647, %v1617_v59  ;;  %vm1730_vm15 = vmor %vm1728_vm13, %vm1729_vm12 }
 0x837   :  { %v1725_v18 = vsub.f32 1.0, %v1724_v5  ;;  %v1722_v27 = vmul.f32 %v3494_v31, %v1721_v53  ;;  %v1749_v6 = vand.u32 2147483648, %v1620_v55  ;;  %v1747_v17 = vand.u32 2147483647, %v1620_v55 }
 0x838   :  { %v3572_v39 = vpop.eup %2506  ;;  %v1594_v42 = vmul.f32 1.442695, %v1565_v15  ;;  %vm1733_vm1 = vcmp.eq.f32.partialorder %v1732_v1, 8.507059e+37  ;;  %vm1743_vm3 = vweird.f32 %v1620_v55 }
 0x839   :  { %v1726_v24 = vmul.f32 %v2505_v10, %v1725_v18  ;;  %v1636_v16 = vsel %vm546_vm14, %v3572_v39, 0.0  ;;  %2355 = vmatmul.msk.f32.gmra.mxu2 %vm546_vm14, %v1722_v27  ;;  %v1750_v9 = vor.u32 1.1754944e-38, %v1749_v6  ;;  %vm1748_vm5 = vcmp.eq.f32.partialorder %v1747_v17, 8.507059e+37 }
 0x83a   :  { %2510 = vpow2.f32 %v1594_v42  ;;  %1637 = vadd.xlane.f32.xlu2 %v1636_v16 }
 0x83b   :  { %v1727_v49 = vadd.f32 %v2505_v10, %v1726_v24 }
 0x83c   :  { %v2509_v20 = vpop.eup %2508 }
 0x83d   :  { %v1739_v29 = vmul.f32 %v2509_v20, %v1620_v55  ;;  %v1548_v54 = vpop.xlane.xlu2 %1547  ;;  %v1623_v38 = vpop.xlane.xlu1 %1622  ;;  %v1731_v31 = vsel %vm1730_vm15, %v2505_v10, %v1727_v49  ;;  %vm1744_vm2 = vweird.f32 %v2509_v20 }
 0x83e   :  { %v1566_v57 = vsub.f32 %v3527_v33, %v1548_v54  ;;  %2512 = vrcp.f32 %v1623_v38  ;;  %v1736_v4 = vsel %vm1733_vm1, %v1735_v52, %v1731_v31  ;;  %vm1745_vm4 = vmor %vm1743_vm3, %vm1744_vm2  ;;  %v1764_v12 = vand.u32 2147483648, %v1623_v38 }
 0x83f   :  { %v1740_v30 = vsub.f32 1.0, %v1739_v29  ;;  %v1737_v56 = vmul.f32 %v3506_v25, %v1736_v4  ;;  %v1762_v63 = vand.u32 2147483647, %v1623_v38  ;;  %vm1758_vm7 = vweird.f32 %v1623_v38 }
 0x840   :  { %v3579_v23 = vpop.eup %2510  ;;  %v1596_v32 = vmul.f32 1.442695, %v1566_v57  ;;  %v1765_v8 = vor.u32 1.1754944e-38, %v1764_v12 }
 0x841   :  { %v1741_v7 = vmul.f32 %v2509_v20, %v1740_v30  ;;  %v1639_v11 = vsel %vm546_vm14, %v3579_v23, 0.0  ;;  %2356 = vmatmul.msk.f32.gmra.mxu2 %vm546_vm14, %v1737_v56  ;;  %vm1763_vm9 = vcmp.eq.f32.partialorder %v1762_v63, 8.507059e+37 }
 0x842   :  { %2514 = vpow2.f32 %v1596_v32  ;;  %1640 = vadd.xlane.f32.xlu0 %v1639_v11 }
 0x843   :  { %v1742_v33 = vadd.f32 %v2509_v20, %v1741_v7 }
 0x844   :  { %v2513_v58 = vpop.eup %2512 }
 0x845   :  { %v1754_v35 = vmul.f32 %v2513_v58, %v1623_v38  ;;  %v1551_v21 = vpop.xlane.xlu1 %1550  ;;  %v1746_v59 = vsel %vm1745_vm4, %v2509_v20, %v1742_v33  ;;  %vm1759_vm6 = vweird.f32 %v2513_v58 }
 0x846   :  { %v1567_v25 = vsub.f32 %v3538_v46, %v1551_v21  ;;  %v1751_v60 = vsel %vm1748_vm5, %v1750_v9, %v1746_v59  ;;  %vm1760_vm8 = vmor %vm1758_vm7, %vm1759_vm6 }
 0x847   :  { %v1755_v40 = vsub.f32 1.0, %v1754_v35  ;;  %v1752_v45 = vmul.f32 %v3518_v36, %v1751_v60 }
 0x848   :  { %v3587_v26 = vpop.eup %2514  ;;  %v1598_v47 = vmul.f32 1.442695, %v1567_v25 }
 0x849   :  { %v1756_v62 = vmul.f32 %v2513_v58, %v1755_v40  ;;  %v1642_v37 = vsel %vm546_vm14, %v3587_v26, 0.0  ;;  %2357 = vmatmul.msk.f32.gmra.mxu2 %vm546_vm14, %v1752_v45 }
 0x84a   :  { %2516 = vpow2.f32 %v1598_v47  ;;  %1643 = vadd.xlane.f32.xlu1 %v1642_v37 }
 0x84b   :  { %v1757_v46 = vadd.f32 %v2513_v58, %v1756_v62 }
 0x84d   :  { %v1761_v22 = vsel %vm1760_vm8, %v2513_v58, %v1757_v46 }
 0x84e   :  { %v1766_v36 = vsel %vm1763_vm9, %v1765_v8, %v1761_v22 }
 0x84f   :  { %v1767_v0 = vmul.f32 %v3529_v13, %v1766_v36 }
 0x850   :  { %v3593_v10 = vpop.eup %2516 }
 0x851   :  { %v1645_v48 = vsel %vm546_vm14, %v3593_v10, 0.0  ;;  %2358 = vmatmul.msk.f32.gmra.mxu2 %vm546_vm14, %v1767_v0 }
 0x852   :  { %1646 = vadd.xlane.f32.xlu2 %v1645_v48 }
 0x88d   :  { %v1626_v5 = vpop.xlane.xlu0 %1625 }
 0x88e   :  { %2518 = vrcp.f32 %v1626_v5  ;;  %v1779_v53 = vand.u32 2147483648, %v1626_v5  ;;  %v1777_v42 = vand.u32 2147483647, %v1626_v5  ;;  %vm1773_vm11 = vweird.f32 %v1626_v5 }
 0x890   :  { %v1780_v24 = vor.u32 1.1754944e-38, %v1779_v53  ;;  %vm1778_vm13 = vcmp.eq.f32.partialorder %v1777_v42, 8.507059e+37 }
 0x894   :  { %v2519_v28 = vpop.eup %2518 }
 0x895   :  { %v1769_v55 = vmul.f32 %v2519_v28, %v1626_v5  ;;  %v1629_v3 = vpop.xlane.xlu2 %1628  ;;  %vm1774_vm10 = vweird.f32 %v2519_v28 }
 0x896   :  { %2520 = vrcp.f32 %v1629_v3  ;;  %vm1775_vm12 = vmor %vm1773_vm11, %vm1774_vm10  ;;  %v1794_v54 = vand.u32 2147483648, %v1629_v3  ;;  %v1792_v38 = vand.u32 2147483647, %v1629_v3  ;;  %vm1788_vm1 = vweird.f32 %v1629_v3 }
 0x897   :  { %v1770_v15 = vsub.f32 1.0, %v1769_v55 }
 0x898   :  { %v1795_v6 = vor.u32 1.1754944e-38, %v1794_v54  ;;  %vm1793_vm3 = vcmp.eq.f32.partialorder %v1792_v38, 8.507059e+37  ;;  %v2039_v38 = vld [vmem:[%s3861_s2 + $0xd0] sm:$0xff] }
 0x899   :  { %v1771_v18 = vmul.f32 %v2519_v28, %v1770_v15  ;;  %v2043_v15 = vld [vmem:[%s3861_s2 + $0xf0] sm:$0xff] }
 0x89b   :  { %v1772_v13 = vadd.f32 %v2519_v28, %v1771_v18 }
 0x89c   :  { %v2521_v27 = vpop.eup %2520 }
 0x89d   :  { %v1632_v44 = vpop.xlane.xlu0 %1631  ;;  %v1776_v16 = vsel %vm1775_vm12, %v2519_v28, %v1772_v13  ;;  %v1784_v1 = vmul.f32 %v2521_v27, %v1629_v3  ;;  %vm1789_vm15 = vweird.f32 %v2521_v27  ;;  %v2044_v3 = vld [vmem:[%s3861_s2 + $0xf8] sm:$0xff] }
 0x89e   :  { %2522 = vrcp.f32 %v1632_v44  ;;  %v1781_v49 = vsel %vm1778_vm13, %v1780_v24, %v1776_v16  ;;  %vm1790_vm2 = vmor %vm1788_vm1, %vm1789_vm15  ;;  %v1807_v33 = vand.u32 2147483647, %v1632_v44  ;;  %vm1803_vm5 = vweird.f32 %v1632_v44  ;;  %2045 = vmatpush.msra.mxu1 %v2044_v3  ;;  %v2041_v16 = vld [vmem:[%s3861_s2 + $0xe0] sm:$0xff] }
 0x89f   :  { %v1785_v20 = vsub.f32 1.0, %v1784_v1  ;;  %v1782_v52 = vmul.f32 %v3545_v34, %v1781_v49  ;;  %v1809_v34 = vand.u32 2147483648, %v1632_v44 }
 0x8a0   :  { %vm1808_vm7 = vcmp.eq.f32.partialorder %v1807_v33, 8.507059e+37  ;;  %2046 = vmatpush.msra.mxu1 %v2043_v15  ;;  %v2031_v15 = vld [vmem:[%s3861_s2 + $0x90] sm:$0xff] }
 0x8a1   :  { %v1786_v29 = vmul.f32 %v2521_v27, %v1785_v20  ;;  %2359 = vmatmul.msk.f32.gmra.mxu2 %vm546_vm14, %v1782_v52  ;;  %v1810_v35 = vor.u32 1.1754944e-38, %v1809_v34  ;;  %v2040_v52 = vld [vmem:[%s3861_s2 + $0xd8] sm:$0xff] }
 0x8a3   :  { %v1787_v57 = vadd.f32 %v2521_v27, %v1786_v29 }
 0x8a4   :  { %v2523_v31 = vpop.eup %2522 }
 0x8a5   :  { %v1799_v30 = vmul.f32 %v2523_v31, %v1632_v44  ;;  %v1635_v4 = vpop.xlane.xlu1 %1634  ;;  %v1791_v56 = vsel %vm1790_vm2, %v2521_v27, %v1787_v57  ;;  %vm1804_vm4 = vweird.f32 %v2523_v31  ;;  %v2042_v27 = vld [vmem:[%s3861_s2 + $0xe8] sm:$0xff] }
 0x8a6   :  { %2524 = vrcp.f32 %v1635_v4  ;;  %v1796_v7 = vsel %vm1793_vm3, %v1795_v6, %v1791_v56  ;;  %vm1805_vm6 = vmor %vm1803_vm5, %vm1804_vm4  ;;  %v1822_v47 = vand.u32 2147483647, %v1635_v4  ;;  %vm1818_vm9 = vweird.f32 %v1635_v4  ;;  %2047 = vmatpush.msra.mxu1 %v2042_v27  ;;  %v2038_v6 = vld [vmem:[%s3861_s2 + $0xc8] sm:$0xff]  ;;  %v93_v27 = vld [vmem:[%s3862_s3 + $0x160] sm:$0xff] }
 0x8a7   :  { %v1800_v32 = vsub.f32 1.0, %v1799_v30  ;;  %v1797_v17 = vmul.f32 %v3552_v43, %v1796_v7  ;;  %v1824_v43 = vand.u32 2147483648, %v1635_v4  ;;  %v2037_v7 = vld [vmem:[%s3861_s2 + $0xc0] sm:$0xff] }
 0x8a8   :  { %vm1823_vm11 = vcmp.eq.f32.partialorder %v1822_v47, 8.507059e+37  ;;  %2048 = vmatpush.msra.mxu1 %v2041_v16  ;;  %v97_v16 = vld [vmem:[%s3862_s3 + $0x180] sm:$0xff] }
 0x8a9   :  { %v1801_v11 = vmul.f32 %v2523_v31, %v1800_v32  ;;  %2360 = vmatmul.msk.f32.gmra.mxu2 %vm546_vm14, %v1797_v17  ;;  %v1825_v63 = vor.u32 1.1754944e-38, %v1824_v43 }
 0x8aa   :  { %2049 = vmatpush.msra.mxu1 %v2040_v52  ;;  %v101_v52 = vld [vmem:[%s3862_s3 + $0x1a0] sm:$0xff] }
 0x8ab   :  { %v1802_v58 = vadd.f32 %v2523_v31, %v1801_v11 }
 0x8ac   :  { %v2525_v9 = vpop.eup %2524  ;;  %2050 = vmatpush.msra.mxu1 %v2039_v38 }
 0x8ad   :  { %v1814_v21 = vmul.f32 %v2525_v9, %v1635_v4  ;;  %v1638_v59 = vpop.xlane.xlu2 %1637  ;;  %v1806_v25 = vsel %vm1805_vm6, %v2523_v31, %v1802_v58  ;;  %vm1819_vm8 = vweird.f32 %v2525_v9  ;;  %v2036_v58 = vld [vmem:[%s3861_s2 + $0xb8] sm:$0xff] }
 0x8ae   :  { %2526 = vrcp.f32 %v1638_v59  ;;  %v1811_v40 = vsel %vm1808_vm7, %v1810_v35, %v1806_v25  ;;  %vm1820_vm10 = vmor %vm1818_vm9, %vm1819_vm8  ;;  %v1839_v5 = vand.u32 2147483648, %v1638_v59  ;;  %v1837_v28 = vand.u32 2147483647, %v1638_v59  ;;  %2051 = vmatpush.msra.mxu1 %v2038_v6  ;;  %v2035_v35 = vld [vmem:[%s3861_s2 + $0xb0] sm:$0xff] }
 0x8af   :  { %v1815_v60 = vsub.f32 1.0, %v1814_v21  ;;  %v1812_v45 = vmul.f32 %v3558_v2, %v1811_v40  ;;  %vm1833_vm13 = vweird.f32 %v1638_v59 }
 0x8b0   :  { %vm1838_vm1 = vcmp.eq.f32.partialorder %v1837_v28, 8.507059e+37  ;;  %2052 = vmatpush.msra.mxu1 %v2037_v7  ;;  %v2033_v28 = vld [vmem:[%s3861_s2 + $0xa0] sm:$0xff]  ;;  %v102_v7 = vld [vmem:[%s3862_s3 + $0x1a8] sm:$0xff] }
 0x8b1   :  { %v1816_v12 = vmul.f32 %v2525_v9, %v1815_v60  ;;  %2361 = vmatmul.msk.f32.gmra.mxu2 %vm546_vm14, %v1812_v45 }
 0x8b2   :  { %2053 = vmatpush.msra.mxu1 %v2036_v58 }
 0x8b3   :  { %v1817_v62 = vadd.f32 %v2525_v9, %v1816_v12 }
 0x8b4   :  { %v2527_v37 = vpop.eup %2526  ;;  %2054 = vmatpush.msra.mxu1 %v2035_v35  ;;  %v99_v35 = vld [vmem:[%s3862_s3 + $0x190] sm:$0xff] }
 0x8b5   :  { %v1829_v46 = vmul.f32 %v2527_v37, %v1638_v59  ;;  %v1641_v8 = vpop.xlane.xlu0 %1640  ;;  %v1821_v22 = vsel %vm1820_vm10, %v2525_v9, %v1817_v62  ;;  %vm1834_vm12 = vweird.f32 %v2527_v37 }
 0x8b6   :  { %2528 = vrcp.f32 %v1641_v8  ;;  %v1826_v0 = vsel %vm1823_vm11, %v1825_v63, %v1821_v22  ;;  %vm1835_vm15 = vmor %vm1833_vm13, %vm1834_vm12  ;;  %v1854_v20 = vand.u32 2147483648, %v1641_v8  ;;  %v1852_v29 = vand.u32 2147483647, %v1641_v8 }
 0x8b7   :  { %v1830_v36 = vsub.f32 1.0, %v1829_v46  ;;  %v1827_v2 = vmul.f32 %v3565_v19, %v1826_v0  ;;  %v1840_v19 = vor.u32 1.1754944e-38, %v1839_v5  ;;  %vm1848_vm3 = vweird.f32 %v1641_v8 }
 0x8b8   :  { %vm1853_vm5 = vcmp.eq.f32.partialorder %v1852_v29, 8.507059e+37 }
 0x8b9   :  { %v1831_v48 = vmul.f32 %v2527_v37, %v1830_v36  ;;  %2362 = vmatmul.msk.f32.gmra.mxu2 %vm546_vm14, %v1827_v2 }
 0x8bb   :  { %v1832_v55 = vadd.f32 %v2527_v37, %v1831_v48  ;;  %v2034_v48 = vld [vmem:[%s3861_s2 + $0xa8] sm:$0xff] }
 0x8bc   :  { %v2529_v18 = vpop.eup %2528  ;;  %2055 = vmatpush.msra.mxu1 %v2034_v48 }
 0x8bd   :  { %v1844_v53 = vmul.f32 %v2529_v18, %v1641_v8  ;;  %v1644_v42 = vpop.xlane.xlu1 %1643  ;;  %v1836_v13 = vsel %vm1835_vm15, %v2527_v37, %v1832_v55  ;;  %vm1849_vm2 = vweird.f32 %v2529_v18  ;;  %v1953_v8 = vpop.f32.mrf.mxu2 }
 0x8be   :  { %2530 = vrcp.f32 %v1644_v42  ;;  %v1841_v44 = vsel %vm1838_vm1, %v1840_v19, %v1836_v13  ;;  %vm1850_vm4 = vmor %vm1848_vm3, %vm1849_vm2  ;;  %v1869_v11 = vand.u32 2147483648, %v1644_v42  ;;  %v1867_v33 = vand.u32 2147483647, %v1644_v42  ;;  %2056 = vmatpush.msra.mxu1 %v2033_v28  ;;  %v2030_v19 = vld [vmem:[%s3861_s2 + $0x88] sm:$0xff] }
 0x8bf   :  { %v1845_v24 = vsub.f32 1.0, %v1844_v53  ;;  %v1842_v1 = vmul.f32 %v3572_v39, %v1841_v44  ;;  %v1855_v39 = vor.u32 1.1754944e-38, %v1854_v20  ;;  %vm1863_vm7 = vweird.f32 %v1644_v42  ;;  %v2029_v53 = vld [vmem:[%s3861_s2 + $0x80] sm:$0xff] }
 0x8c0   :  { %vm1868_vm9 = vcmp.eq.f32.partialorder %v1867_v33, 8.507059e+37  ;;  %v89_v44 = vld [vmem:[%s3862_s3 + $0x140] sm:$0xff] }
 0x8c1   :  { %v1846_v49 = vmul.f32 %v2529_v18, %v1845_v24  ;;  %2363 = vmatmul.msk.f32.gmra.mxu2 %vm546_vm14, %v1842_v1 }
 0x8c3   :  { %v1847_v54 = vadd.f32 %v2529_v18, %v1846_v49  ;;  %v2001_v49 = vmul.f32 %v1953_v8, %v89_v44 }
 0x8c4   :  { %v2531_v31 = vpop.eup %2530 }
 0x8c5   :  { %v1859_v57 = vmul.f32 %v2531_v31, %v1644_v42  ;;  %v1647_v30 = vpop.xlane.xlu2 %1646  ;;  %v1851_v4 = vsel %vm1850_vm4, %v2529_v18, %v1847_v54  ;;  %vm1864_vm6 = vweird.f32 %v2531_v31  ;;  %v1956_v36 = vpop.f32.mrf.mxu2  ;;  %v94_v54 = vld [vmem:[%s3862_s3 + $0x168] sm:$0xff] }
 0x8c6   :  { %2532 = vrcp.f32 %v1647_v30  ;;  %v1856_v56 = vsel %vm1853_vm5, %v1855_v39, %v1851_v4  ;;  %vm1865_vm8 = vmor %vm1863_vm7, %vm1864_vm6  ;;  %v1884_v12 = vand.u32 2147483648, %v1647_v30  ;;  %v1882_v47 = vand.u32 2147483647, %v1647_v30 }
 0x8c7   :  { %v1860_v32 = vsub.f32 1.0, %v1859_v57  ;;  %v1857_v34 = vmul.f32 %v3579_v23, %v1856_v56  ;;  %v1870_v23 = vor.u32 1.1754944e-38, %v1869_v11  ;;  %vm1878_vm11 = vweird.f32 %v1647_v30  ;;  %v90_v57 = vld [vmem:[%s3862_s3 + $0x148] sm:$0xff] }
 0x8c8   :  { %v1885_v37 = vor.u32 1.1754944e-38, %v1884_v12  ;;  %vm1883_vm13 = vcmp.eq.f32.partialorder %v1882_v47, 8.507059e+37 }
 0x8c9   :  { %v1861_v17 = vmul.f32 %v2531_v31, %v1860_v32  ;;  %2364 = vmatmul.msk.f32.gmra.mxu2 %vm546_vm14, %v1857_v34  ;;  %v2002_v32 = vmul.f32 %v1956_v36, %v90_v57  ;;  %v95_v34 = vld [vmem:[%s3862_s3 + $0x170] sm:$0xff]  ;;  %v104_v36 = vld [vmem:[%s3862_s3 + $0x1b8] sm:$0xff] }
 0x8cb   :  { %v1862_v9 = vadd.f32 %v2531_v31, %v1861_v17 }
 0x8cc   :  { %v2533_v21 = vpop.eup %2532 }
 0x8cd   :  { %v1874_v59 = vmul.f32 %v2533_v21, %v1647_v30  ;;  %v1866_v25 = vsel %vm1865_vm8, %v2531_v31, %v1862_v9  ;;  %vm1879_vm10 = vweird.f32 %v2533_v21  ;;  %v98_v30 = vld [vmem:[%s3862_s3 + $0x188] sm:$0xff]  ;;  %v91_v9 = vld [vmem:[%s3862_s3 + $0x150] sm:$0xff] }
 0x8ce   :  { %v1871_v60 = vsel %vm1868_vm9, %v1870_v23, %v1866_v25  ;;  %vm1880_vm12 = vmor %vm1878_vm11, %vm1879_vm10 }
 0x8cf   :  { %v1875_v40 = vsub.f32 1.0, %v1874_v59  ;;  %v1872_v45 = vmul.f32 %v3587_v26, %v1871_v60  ;;  %v1959_v26 = vpop.f32.mrf.mxu2  ;;  %v103_v60 = vld [vmem:[%s3862_s3 + $0x1b0] sm:$0xff] }
 0x8d0   :  { %v2003_v59 = vmul.f32 %v1959_v26, %v91_v9  ;;  %v2178_v9 = vld [vmem:[#allocation2 + $0x180] sm:$0xff] }
 0x8d1   :  { %v1876_v43 = vmul.f32 %v2533_v21, %v1875_v40  ;;  %2365 = vmatmul.msk.f32.gmra.mxu2 %vm546_vm14, %v1872_v45  ;;  %v96_v45 = vld [vmem:[%s3862_s3 + $0x178] sm:$0xff] }
 0x8d3   :  { %v1877_v62 = vadd.f32 %v2533_v21, %v1876_v43 }
 0x8d5   :  { %v1881_v63 = vsel %vm1880_vm12, %v2533_v21, %v1877_v62  ;;  %v92_v62 = vld [vmem:[%s3862_s3 + $0x158] sm:$0xff] }
 0x8d6   :  { %v1886_v46 = vsel %vm1883_vm13, %v1885_v37, %v1881_v63  ;;  %v100_v37 = vld [vmem:[%s3862_s3 + $0x198] sm:$0xff] }
 0x8d7   :  { %v1887_v22 = vmul.f32 %v3593_v10, %v1886_v46  ;;  %v3644_v0 = vpop.f32.mrf.mxu2  ;;  %v2032_v10 = vld [vmem:[%s3861_s2 + $0x98] sm:$0xff] }
 0x8d8   :  { %2057 = vmatpush.msra.mxu1 %v2032_v10  ;;  %v2004_v8 = vmul.f32 %v3644_v0, %v92_v62 }
 0x8d9   :  { %2366 = vmatmul.msk.f32.gmra.mxu2 %vm546_vm14, %v1887_v22 }
 0x8da   :  { %2058 = vmatpush.msra.mxu1 %v2031_v15 }
 0x8dc   :  { %2059 = vmatpush.msra.mxu1 %v2030_v19 }
 0x8de   :  { %2060 = vmatpush.msra.mxu1 %v2029_v53 }
 0x8df   :  { %v1965_v2 = vpop.f32.mrf.mxu2 }
 0x8e0   :  { %v2005_v1 = vmul.f32 %v1965_v2, %v93_v27 }
 0x8e2   :  { %v2017_v29 = vadd.f32 %v2005_v1, %v2001_v49 }
 0x8e7   :  { %v1968_v5 = vpop.f32.mrf.mxu2 }
 0x8e8   :  { %v2006_v4 = vmul.f32 %v1968_v5, %v94_v54 }
 0x8ea   :  { %v2018_v11 = vadd.f32 %v2006_v4, %v2002_v32 }
 0x8ef   :  { %v1971_v55 = vpop.f32.mrf.mxu2 }
 0x8f0   :  { %v2007_v21 = vmul.f32 %v1971_v55, %v95_v34  ;;  %v2182_v34 = vld [vmem:[#allocation2 + $0x1a0] sm:$0xff] }
 0x8f2   :  { %v2019_v40 = vadd.f32 %v2007_v21, %v2003_v59 }
 0x8f7   :  { %v1974_v3 = vpop.f32.mrf.mxu2 }
 0x8f8   :  { %v2008_v63 = vmul.f32 %v1974_v3, %v96_v45 }
 0x8fa   :  { %v2020_v26 = vadd.f32 %v2008_v63, %v2004_v8 }
 0x924   :  { %v1977_v18 = vpop.f32.mrf.mxu2 }
 0x925   :  { %v2009_v20 = vmul.f32 %v1977_v18, %v97_v16 }
 0x927   :  { %v2021_v31 = vadd.f32 %v2017_v29, %v2009_v20 }
 0x92c   :  { %v1980_v42 = vpop.f32.mrf.mxu2 }
 0x92d   :  { %v2010_v56 = vmul.f32 %v1980_v42, %v98_v30 }
 0x92f   :  { %v2022_v33 = vadd.f32 %v2018_v11, %v2010_v56  ;;  %v2185_v56 = vld [vmem:[#allocation2 + $0x1b8] sm:$0xff]  ;;  %v2183_v11 = vld [vmem:[#allocation2 + $0x1a8] sm:$0xff] }
 0x930   :  { %2208 = vmatpush.msrb.mxu1 %v2185_v56 }
 0x934   :  { %v1983_v13 = vpop.f32.mrf.mxu2 }
 0x935   :  { %v2011_v25 = vmul.f32 %v1983_v13, %v99_v35 }
 0x937   :  { %v2023_v43 = vadd.f32 %v2019_v40, %v2011_v25 }
 0x93c   :  { %v1986_v24 = vpop.f32.mrf.mxu2 }
 0x93d   :  { %v2012_v22 = vmul.f32 %v1986_v24, %v100_v37 }
 0x93f   :  { %v2024_v48 = vadd.f32 %v2020_v26, %v2012_v22  ;;  %v3770_v22 = vld [vmem:[%s3859_s0 + $0x64] ss:$0 sm:$0xff] }
 0x944   :  { %v1989_v38 = vpop.f32.mrf.mxu2 }
 0x945   :  { %v2013_v39 = vmul.f32 %v1989_v38, %v101_v52 }
 0x947   :  { %v2025_v6 = vadd.f32 %v2021_v31, %v2013_v39 }
 0x949   :  { %2061 = vmatmul.f32.vlgmr.msra.gmra.mxu1 %v2025_v6 }
 0x94c   :  { %v1992_v17 = vpop.f32.mrf.mxu2 }
 0x94d   :  { %v2014_v58 = vmul.f32 %v1992_v17, %v102_v7  ;;  %v2184_v7 = vld [vmem:[#allocation2 + $0x1b0] sm:$0xff]  ;;  %v2181_v17 = vld [vmem:[#allocation2 + $0x198] sm:$0xff] }
 0x94e   :  { %2209 = vmatpush.msrb.mxu1 %v2184_v7 }
 0x94f   :  { %v2026_v23 = vadd.f32 %v2022_v33, %v2014_v58  ;;  %v2180_v33 = vld [vmem:[#allocation2 + $0x190] sm:$0xff]  ;;  %v2179_v58 = vld [vmem:[#allocation2 + $0x188] sm:$0xff] }
 0x950   :  { %2210 = vmatpush.msrb.mxu1 %v2183_v11  ;;  %v2238_v11 = vld [vmem:[%s3861_s2 + $0x128] sm:$0xff] }
 0x951   :  { %2064 = vmatmul.f32.gmra.mxu1 %v2026_v23 }
 0x952   :  { %2211 = vmatpush.msrb.mxu1 %v2182_v34 }
 0x954   :  { %v1995_v12 = vpop.f32.mrf.mxu2  ;;  %2212 = vmatpush.msrb.mxu1 %v2181_v17 }
 0x955   :  { %v2015_v47 = vmul.f32 %v1995_v12, %v103_v60 }
 0x956   :  { %2213 = vmatpush.msrb.mxu1 %v2180_v33 }
 0x957   :  { %v2027_v46 = vadd.f32 %v2023_v43, %v2015_v47  ;;  %v2248_v43 = vld [vmem:[%s3861_s2 + $0x178] sm:$0xff] }
 0x958   :  { %2214 = vmatpush.msrb.mxu1 %v2179_v58  ;;  %2249 = vmatpush.msrb.mxu3 %v2248_v43  ;;  %v2237_v58 = vld [vmem:[%s3861_s2 + $0x120] sm:$0xff]  ;;  %v2234_v43 = vld [vmem:[%s3861_s2 + $0x108] sm:$0xff] }
 0x959   :  { %2067 = vmatmul.f32.gmra.mxu1 %v2027_v46 }
 0x95a   :  { %2215 = vmatpush.msrb.mxu1 %v2178_v9 }
 0x95c   :  { %v1998_v2 = vpop.f32.mrf.mxu2 }
 0x95d   :  { %v2016_v5 = vmul.f32 %v1998_v2, %v104_v36  ;;  %v2247_v2 = vld [vmem:[%s3861_s2 + $0x170] sm:$0xff] }
 0x95e   :  { %2250 = vmatpush.msrb.mxu3 %v2247_v2 }
 0x95f   :  { %v2028_v28 = vadd.f32 %v2024_v48, %v2016_v5  ;;  %v2246_v48 = vld [vmem:[%s3861_s2 + $0x168] sm:$0xff] }
 0x960   :  { %2251 = vmatpush.msrb.mxu3 %v2246_v48 }
 0x961   :  { %2070 = vmatmul.f32.gmra.mxu1 %v2028_v28 }
 0x9c6   :  { %v2062_v55 = vpop.f32.mrf.mxu1 }
 0x9c7   :  { %v3714_v10 = vadd.f32 %v2062_v55, %v3307_v61  ;;  %v3781_v55 = vld [vmem:[%s3859_s0 + $0x65] ss:$0 sm:$0xff] }
 0x9c9   :  { %v2080_v3 = vsel %vm139_vm0, %v3714_v10, 0.0 }
 0x9ca   :  { %2081 = vadd.xlane.f32.xlu0 %v2080_v3 }
 0x9ce   :  { %v2065_v0 = vpop.f32.mrf.mxu1 }
 0x9cf   :  { %v3719_v15 = vadd.f32 %v2065_v0, %v3314_v41  ;;  %v2245_v0 = vld [vmem:[%s3861_s2 + $0x160] sm:$0xff] }
 0x9d0   :  { %2252 = vmatpush.msrb.mxu3 %v2245_v0 }
 0x9d1   :  { %v2083_v18 = vsel %vm139_vm0, %v3719_v15, 0.0 }
 0x9d2   :  { %2084 = vadd.xlane.f32.xlu1 %v2083_v18 }
 0x9d6   :  { %v2068_v19 = vpop.f32.mrf.mxu1 }
 0x9d7   :  { %v3724_v53 = vadd.f32 %v2068_v19, %v3321_v51 }
 0x9d9   :  { %v2086_v61 = vsel %vm139_vm0, %v3724_v53, 0.0 }
 0x9da   :  { %2087 = vadd.xlane.f32.xlu2 %v2086_v61 }
 0x9de   :  { %v2071_v42 = vpop.f32.mrf.mxu1 }
 0x9df   :  { %v3729_v13 = vadd.f32 %v2071_v42, %v3328_v50 }
 0x9e1   :  { %v2089_v41 = vsel %vm139_vm0, %v3729_v13, 0.0 }
 0x9e2   :  { %2090 = vadd.xlane.f32.xlu0 %v2089_v41  ;;  %v2244_v41 = vld [vmem:[%s3861_s2 + $0x158] sm:$0xff] }
 0x9e3   :  { %2253 = vmatpush.msrb.mxu3 %v2244_v41 }
 0xa3d   :  { %v2082_v27 = vpop.xlane.xlu0 %2081 }
 0xa3e   :  { %v2092_v24 = vmul.f32 %v2082_v27, %v2655_v14 }
 0xa40   :  { %v3735_v44 = vsub.f32 %v3714_v10, %v2092_v24 }
 0xa42   :  { %v2100_v51 = vmul.f32 %v3735_v44, %v3735_v44 }
 0xa44   :  { %v2104_v16 = vsel %vm139_vm0, %v2100_v51, 0.0 }
 0xa45   :  { %2105 = vadd.xlane.f32.xlu1 %v2104_v16  ;;  %v2085_v1 = vpop.xlane.xlu1 %2084  ;;  %v2243_v16 = vld [vmem:[%s3861_s2 + $0x150] sm:$0xff] }
 0xa46   :  { %v2093_v50 = vmul.f32 %v2085_v1, %v2655_v14  ;;  %2254 = vmatpush.msrb.mxu3 %v2243_v16 }
 0xa48   :  { %v3742_v49 = vsub.f32 %v3719_v15, %v2093_v50 }
 0xa4a   :  { %v2101_v20 = vmul.f32 %v3742_v49, %v3742_v49 }
 0xa4c   :  { %v2107_v52 = vsel %vm139_vm0, %v2101_v20, 0.0 }
 0xa4d   :  { %v2088_v29 = vpop.xlane.xlu2 %2087  ;;  %2108 = vadd.xlane.f32.xlu2 %v2107_v52 }
 0xa4e   :  { %v2094_v54 = vmul.f32 %v2088_v29, %v2655_v14 }
 0xa50   :  { %v3749_v38 = vsub.f32 %v3724_v53, %v2094_v54  ;;  %v2241_v54 = vld [vmem:[%s3861_s2 + $0x140] sm:$0xff] }
 0xa52   :  { %v2102_v31 = vmul.f32 %v3749_v38, %v3749_v38 }
 0xa54   :  { %v2110_v39 = vsel %vm139_vm0, %v2102_v31, 0.0 }
 0xa55   :  { %2111 = vadd.xlane.f32.xlu0 %v2110_v39  ;;  %v2091_v57 = vpop.xlane.xlu0 %2090 }
 0xa56   :  { %v2095_v30 = vmul.f32 %v2091_v57, %v2655_v14  ;;  %v2240_v57 = vld [vmem:[%s3861_s2 + $0x138] sm:$0xff] }
 0xa58   :  { %v3756_v4 = vsub.f32 %v3729_v13, %v2095_v30 }
 0xa5a   :  { %v2103_v6 = vmul.f32 %v3756_v4, %v3756_v4 }
 0xa5c   :  { %v2113_v32 = vsel %vm139_vm0, %v2103_v6, 0.0 }
 0xa5d   :  { %2114 = vadd.xlane.f32.xlu1 %v2113_v32 }
 0xab8   :  { %v2106_v35 = vpop.xlane.xlu1 %2105 }
 0xab9   :  { %v2116_v21 = vmul.f32 %v2106_v35, %v2655_v14 }
 0xabb   :  { %v2120_v23 = vadd.f32 1e-05, %v2116_v21  ;;  %v2236_v21 = vld [vmem:[%s3861_s2 + $0x118] sm:$0xff] }
 0xabd   :  { %2534 = vrsqrt.f32 %v2120_v23  ;;  %vm2130_vm15 = vweird.f32 %v2120_v23 }
 0xac0   :  { %v2109_v59 = vpop.xlane.xlu2 %2108 }
 0xac1   :  { %v2117_v25 = vmul.f32 %v2109_v59, %v2655_v14 }
 0xac3   :  { %v2535_v60 = vpop.eup %2534  ;;  %v2121_v40 = vadd.f32 1e-05, %v2117_v25 }
 0xac4   :  { %v2125_v45 = vmul.f32 %v2535_v60, %v2120_v23  ;;  %vm2131_vm14 = vweird.f32 %v2535_v60 }
 0xac5   :  { %2536 = vrsqrt.f32 %v2121_v40  ;;  %vm2132_vm1 = vmor %vm2130_vm15, %vm2131_vm14  ;;  %vm2140_vm3 = vweird.f32 %v2121_v40 }
 0xac6   :  { %v2126_v12 = vmul.f32 %v2535_v60, %v2125_v45 }
 0xac8   :  { %v2127_v47 = vmul.f32 0.5, %v2126_v12  ;;  %v2112_v62 = vpop.xlane.xlu0 %2111 }
 0xac9   :  { %v2118_v37 = vmul.f32 %v2112_v62, %v2655_v14 }
 0xaca   :  { %v2128_v63 = vsub.f32 1.5, %v2127_v47  ;;  %v2233_v47 = vld [vmem:[%s3861_s2 + $0x100] sm:$0xff] }
 0xacb   :  { %v2537_v46 = vpop.eup %2536  ;;  %v2122_v8 = vadd.f32 1e-05, %v2118_v37 }
 0xacc   :  { %v2129_v36 = vmul.f32 %v2535_v60, %v2128_v63  ;;  %v2135_v26 = vmul.f32 %v2537_v46, %v2121_v40  ;;  %vm2141_vm2 = vweird.f32 %v2537_v46 }
 0xacd   :  { %2538 = vrsqrt.f32 %v2122_v8  ;;  %vm2142_vm4 = vmor %vm2140_vm3, %vm2141_vm2  ;;  %vm2150_vm6 = vweird.f32 %v2122_v8 }
 0xace   :  { %v2133_v5 = vsel %vm2132_vm1, %v2535_v60, %v2129_v36  ;;  %v2136_v28 = vmul.f32 %v2537_v46, %v2135_v26 }
 0xacf   :  { %v2164_v3 = vmul.f32 %v2133_v5, %v3735_v44 }
 0xad0   :  { %v2137_v18 = vmul.f32 0.5, %v2136_v28  ;;  %v2115_v19 = vpop.xlane.xlu1 %2114 }
 0xad1   :  { %v2169_v61 = vmul.f32 %v3770_v22, %v2164_v3  ;;  %v2119_v42 = vmul.f32 %v2115_v19, %v2655_v14  ;;  %v2242_v14 = vld [vmem:[%s3861_s2 + $0x148] sm:$0xff] }
 0xad2   :  { %v2138_v27 = vsub.f32 1.5, %v2137_v18  ;;  %2255 = vmatpush.msrb.mxu3 %v2242_v14 }
 0xad3   :  { %v2539_v24 = vpop.eup %2538  ;;  %v2174_v44 = vadd.f32 %v3781_v55, %v2169_v61  ;;  %v2123_v51 = vadd.f32 1e-05, %v2119_v42 }
 0xad4   :  { %v2139_v1 = vmul.f32 %v2537_v46, %v2138_v27  ;;  %v2145_v50 = vmul.f32 %v2539_v24, %v2122_v8  ;;  %vm2151_vm5 = vweird.f32 %v2539_v24  ;;  %2256 = vmatpush.msrb.mxu3 %v2241_v54 }
 0xad5   :  { %2540 = vrsqrt.f32 %v2123_v51  ;;  %2367 = vmatmul.msk.f32.vlgmr.msrb.gmra.mxu1 %vm139_vm0, %v2174_v44  ;;  %vm2152_vm7 = vmor %vm2150_vm6, %vm2151_vm5  ;;  %vm2160_vm9 = vweird.f32 %v2123_v51 }
 0xad6   :  { %v2143_v20 = vsel %vm2142_vm4, %v2537_v46, %v2139_v1  ;;  %v2146_v52 = vmul.f32 %v2539_v24, %v2145_v50  ;;  %2257 = vmatpush.msrb.mxu3 %v2240_v57 }
 0xad7   :  { %v2165_v29 = vmul.f32 %v2143_v20, %v3742_v49  ;;  %v2239_v49 = vld [vmem:[%s3861_s2 + $0x130] sm:$0xff] }
 0xad8   :  { %v2147_v31 = vmul.f32 0.5, %v2146_v52  ;;  %2258 = vmatpush.msrb.mxu3 %v2239_v49 }
 0xad9   :  { %v2170_v39 = vmul.f32 %v3770_v22, %v2165_v29 }
 0xada   :  { %v2148_v30 = vsub.f32 1.5, %v2147_v31  ;;  %2259 = vmatpush.msrb.mxu3 %v2238_v11 }
 0xadb   :  { %v2541_v6 = vpop.eup %2540  ;;  %v2175_v32 = vadd.f32 %v3781_v55, %v2170_v39 }
 0xadc   :  { %v2149_v56 = vmul.f32 %v2539_v24, %v2148_v30  ;;  %v2155_v7 = vmul.f32 %v2541_v6, %v2123_v51  ;;  %vm2161_vm8 = vweird.f32 %v2541_v6  ;;  %2260 = vmatpush.msrb.mxu3 %v2237_v58 }
 0xadd   :  { %2368 = vmatmul.msk.f32.gmra.mxu1 %vm139_vm0, %v2175_v32  ;;  %vm2162_vm10 = vmor %vm2160_vm9, %vm2161_vm8 }
 0xade   :  { %v2153_v34 = vsel %vm2152_vm7, %v2539_v24, %v2149_v56  ;;  %v2156_v17 = vmul.f32 %v2541_v6, %v2155_v7  ;;  %2261 = vmatpush.msrb.mxu3 %v2236_v21 }
 0xadf   :  { %v2166_v33 = vmul.f32 %v2153_v34, %v3749_v38  ;;  %v2235_v38 = vld [vmem:[%s3861_s2 + $0x110] sm:$0xff] }
 0xae0   :  { %v2157_v9 = vmul.f32 0.5, %v2156_v17  ;;  %2262 = vmatpush.msrb.mxu3 %v2235_v38 }
 0xae1   :  { %v2171_v35 = vmul.f32 %v3770_v22, %v2166_v33 }
 0xae2   :  { %v2158_v23 = vsub.f32 1.5, %v2157_v9  ;;  %2263 = vmatpush.msrb.mxu3 %v2234_v43 }
 0xae3   :  { %v2176_v59 = vadd.f32 %v3781_v55, %v2171_v35 }
 0xae4   :  { %v2159_v25 = vmul.f32 %v2541_v6, %v2158_v23  ;;  %2264 = vmatpush.msrb.mxu3 %v2233_v47 }
 0xae5   :  { %2369 = vmatmul.msk.f32.gmra.mxu1 %vm139_vm0, %v2176_v59 }
 0xae6   :  { %v2163_v60 = vsel %vm2162_vm10, %v2541_v6, %v2159_v25 }
 0xae7   :  { %v2167_v40 = vmul.f32 %v2163_v60, %v3756_v4  ;;  %v2386_v4 = vld [vmem:[%s3862_s3 + $0x1c4] ss:$0 sm:$0xff] }
 0xae9   :  { %v2172_v45 = vmul.f32 %v3770_v22, %v2167_v40 }
 0xaeb   :  { %v2177_v12 = vadd.f32 %v3781_v55, %v2172_v45  ;;  %v2387_v55 = vld [vmem:[%s3859_s0 + $0x66] ss:$0 sm:$0xff]  ;;  %s2602_s0 = smov [#allocation5]  }
 0xaec   :  { %s2296_s3 = sshll.u32 %s2602_s0, 4  ;;  %s2297_s3 = int_to_ptr.vmem [resolvable:$true] %s2296_s3 }
 0xaed   :  { %2370 = vmatmul.msk.f32.gmra.mxu1 %vm139_vm0, %v2177_v12 }
 0xb52   :  { %v2217_v62 = vpop.f32.mrf.mxu1 }
 0xb53   :  { %v2218_v37 = vadd.f32 %v2386_v4, %v2217_v62 }
 0xb55   :  { %v2229_v63 = vmax.f32 %v2218_v37, 0.0 }
 0xb57   :  { %2265 = vmatmul.f32.vlgmr.msrb.gmra.mxu3 %v2229_v63 }
 0xb5a   :  { %v2220_v46 = vpop.f32.mrf.mxu1 }
 0xb5b   :  { %v2221_v8 = vadd.f32 %v2386_v4, %v2220_v46 }
 0xb5d   :  { %v2230_v22 = vmax.f32 %v2221_v8, 0.0 }
 0xb5f   :  { %2268 = vmatmul.f32.gmra.mxu3 %v2230_v22 }
 0xb62   :  { %v2223_v36 = vpop.f32.mrf.mxu1 }
 0xb63   :  { %v2224_v26 = vadd.f32 %v2386_v4, %v2223_v36 }
 0xb65   :  { %v2231_v2 = vmax.f32 %v2224_v26, 0.0 }
 0xb67   :  { %2271 = vmatmul.f32.gmra.mxu3 %v2231_v2 }
 0xb6a   :  { %v2226_v48 = vpop.f32.mrf.mxu1 }
 0xb6b   :  { %v2227_v5 = vadd.f32 %v2386_v4, %v2226_v48 }
 0xb6d   :  { %v2232_v28 = vmax.f32 %v2227_v5, 0.0 }
 0xb6f   :  { %2274 = vmatmul.f32.gmra.mxu3 %v2232_v28 }
 0xbda   :  { %v2266_v3 = vpop.f32.mrf.mxu3 }
 0xbdb   :  { %v2278_v0 = vadd.f32 %v2266_v3, %v3714_v10 }
 0xbdd   :  { %v2284_v18 = vadd.f32 %v2387_v55, %v2278_v0 }
 0xbdf   :  { %2288 = vst.msk [vmem:[#allocation5] sm:$0xff] %vm139_vm0, %v2284_v18 }
 0xbe2   :  { %v2269_v19 = vpop.f32.mrf.mxu3 }
 0xbe3   :  { %v2279_v61 = vadd.f32 %v2269_v19, %v3719_v15 }
 0xbe5   :  { %v2285_v42 = vadd.f32 %v2387_v55, %v2279_v61 }
 0xbe7   :  { %2289 = vst.msk [vmem:[#allocation5 + $0x8] sm:$0xff] %vm139_vm0, %v2285_v42 }
 0xbea   :  { %v2272_v41 = vpop.f32.mrf.mxu3 }
 0xbeb   :  { %v2280_v27 = vadd.f32 %v2272_v41, %v3724_v53 }
 0xbed   :  { %v2286_v24 = vadd.f32 %v2387_v55, %v2280_v27 }
 0xbef   :  { %2290 = vst.msk [vmem:[#allocation5 + $0x10] sm:$0xff] %vm139_vm0, %v2286_v24 }
 0xbf2   :  { %v2275_v44 = vpop.f32.mrf.mxu3 }
 0xbf3   :  { %v2281_v10 = vadd.f32 %v2275_v44, %v3729_v13 }
 0xbf5   :  { %v2287_v51 = vadd.f32 %v2387_v55, %v2281_v10 }
 0xbf7   :  { %2291 = vst.msk [vmem:[#allocation5 + $0x18] sm:$0xff] %vm139_vm0, %v2287_v51 }
 0xbf8   :  { %2304 = dma.vmem_to_hbm [thread:$0]  %s2297_s3, 512, %s2299_s11, [#allocation4], %s2599_s23, %s2599_s23, %s2600_s24  }
 0xbf9   :  { %2596 = dma.done.wait [#allocation4], 512  }
 0xbfa   :  { %2597 = vsyncadd [#allocation4], 4294966784 }
 0xbfb   :  { %2309 = vsyncpa [#allocation3], 1 }
 0xbfc   :  { %2310 = vsyncpa [#allocation4], 1 }

</bundles_post_ra>
